<compile_context>
chip_gen: v7x
topology: tpu7x:2x2x1
jax: 0.10.0
libtpu: 0.0.40
codegen_flags: <defaults>
</compile_context>

<pallas_src>
import numpy as np
import jax
import jax.numpy as jnp
from jax import lax
from jax.experimental import pallas as pl
from jax.experimental.pallas import tpu as pltpu

TB = 4  # images lane-packed per grid step


# ------------------------------ in-kernel helpers ----------------------------

def _dot(a, b):
    return jnp.dot(a, b, preferred_element_type=jnp.float32)


def _mac_sum(terms):
    acc = terms[0]
    for t in terms[1:]:
        acc = acc + t
    return acc


# ---------------------------------- kernel -----------------------------------

def _net_kernel(x_ref, w1_ref, b1_ref, w2_ref, b2_ref,
                cs1_ref, te1_ref, cs2_ref, te2_ref,
                k_ref, wfe_ref, k2_ref, bf_ref, o_ref):
    # x block: (1, 30, 30*TB) -- TB zero-padded 30x30 images side by side.
    xp = x_ref[0]                                   # (30, 120)
    W1 = 30 * TB - 2                                # conv1 output width (118)
    W2 = 16 * TB - 2                                # conv2 output width (62)

    # ---- layer 1: conv(1->2, 3x3) + relu (padding already in the input) ----
    # hoist the 9 shifted windows; reuse across both output channels.
    win1 = [[xp[kh:kh + 28, kw:kw + W1] for kw in range(3)] for kh in range(3)]
    y1 = []
    for co in range(2):
        terms = [w1_ref[(co * 3 + kh) * 3 + kw] * win1[kh][kw]
                 for kh in range(3) for kw in range(3)]
        y1.append(jnp.maximum(_mac_sum(terms) + b1_ref[co], 0.0))   # (28, 118)

    # ---- maxpool 2x2; layer-2 zero border fused into the selectors ----
    cs1 = cs1_ref[...]                              # (117, 16*TB)
    te1 = te1_ref[...]                              # (16, 27)
    h1p = []
    for c in range(2):
        cm = jnp.maximum(y1[c][:, :W1 - 1], y1[c][:, 1:W1])         # (28, 117)
        wm = jnp.maximum(cm[:27, :], cm[1:28, :])                   # (27, 117)
        h1p.append(_dot(_dot(te1, wm), cs1))        # (16, 64), zero-bordered

    # ---- layer 2: conv(2->4, 3x3) + relu on the packed, padded layout ----
    win2 = [[[h1p[ci][kh:kh + 14, kw:kw + W2] for kw in range(3)]
             for kh in range(3)] for ci in range(2)]
    y2 = []
    for co in range(4):
        terms = [w2_ref[((co * 2 + ci) * 3 + kh) * 3 + kw] * win2[ci][kh][kw]
                 for ci in range(2) for kh in range(3) for kw in range(3)]
        y2.append(jnp.maximum(_mac_sum(terms) + b2_ref[co], 0.0))   # (14, 62)

    # ---- maxpool 2x2; channel stacking fused into the row selectors ----
    cs2 = cs2_ref[...]                              # (61, 7*TB)
    h2all = None                                    # (28, 7*TB): row c*7+i, col 7*t+j
    for c in range(4):
        cm = jnp.maximum(y2[c][:, :W2 - 1], y2[c][:, 1:W2])         # (14, 61)
        wm = jnp.maximum(cm[:13, :], cm[1:14, :])                   # (13, 61)
        part = _dot(_dot(te2_ref[c], wm), cs2)      # rows 7c..7c+6 active
        h2all = part if h2all is None else h2all + part

    # ---- fully fused fc: flatten in (C,H,W) order, @ wf + bf ----
    hexp = _dot(h2all, k_ref[...])                  # (28, 70*TB)
    q = hexp * wfe_ref[...]                         # (28, 70*TB)
    r = _dot(q, k2_ref[...])                        # (28, 10*TB)
    o_ref[0] = jnp.sum(r, axis=0, keepdims=True) + bf_ref[...]      # (1, 10*TB)


# ------------------------- compile-time selector constants -------------------

def _selectors(tb):
    W1 = 30 * tb - 2
    W2 = 16 * tb - 2
    # pool1 column selector: 2x2-max col 30t+2j -> padded col 16t+1+j
    cs1 = np.zeros((W1 - 1, 16 * tb), np.float32)
    for t in range(tb):
        for j in range(14):
            cs1[30 * t + 2 * j, 16 * t + 1 + j] = 1.0
    # pool1 row selector: 2x2-max row 2i -> padded row 1+i
    te1 = np.zeros((16, 27), np.float32)
    for i in range(14):
        te1[1 + i, 2 * i] = 1.0
    # pool2 column selector: col 16t+2j -> col 7t+j
    cs2 = np.zeros((W2 - 1, 7 * tb), np.float32)
    for t in range(tb):
        for j in range(7):
            cs2[16 * t + 2 * j, 7 * t + j] = 1.0
    # pool2 row selectors, one per channel, placing rows at 7c+i (stacking)
    te2 = np.zeros((4, 28, 13), np.float32)
    for c in range(4):
        for i in range(7):
            te2[c, 7 * c + i, 2 * i] = 1.0
    # fc expansion (j -> j*10+n per image) and reduction (sum over j, keep t,n)
    K = np.zeros((7 * tb, 70 * tb), np.float32)
    K2 = np.zeros((70 * tb, 10 * tb), np.float32)
    for t in range(tb):
        for j in range(7):
            for n in range(10):
                K[7 * t + j, 70 * t + 10 * j + n] = 1.0
                K2[70 * t + 10 * j + n, 10 * t + n] = 1.0
    return cs1, te1, cs2, te2, K, K2


# ---------------------------------- wrapper -----------------------------------

@jax.jit
def net_forward(x, params):
    w1, b1, w2, b2, wf, bf = params
    B = x.shape[0]
    G = -(-B // TB)
    Bp = G * TB

    # pre-pad (layer-1 "same" padding) and lane-pack TB images per group
    ximg = x[:, 0]
    if Bp != B:
        ximg = jnp.pad(ximg, ((0, Bp - B), (0, 0), (0, 0)))
    xpad = jnp.pad(ximg, ((0, 0), (1, 1), (1, 1)))                   # (Bp, 30, 30)
    xg = xpad.reshape(G, TB, 30, 30).transpose(0, 2, 1, 3).reshape(G, 30, 30 * TB)

    w1f = w1.reshape(-1)                      # (18,)  idx ((co*Cin+ci)*3+kh)*3+kw
    w2f = w2.reshape(-1)                      # (72,)
    wfe = jnp.tile(wf.reshape(28, 70), (1, TB))                      # (28, 70*TB)
    bfr = jnp.tile(bf, TB).reshape(1, 10 * TB)                       # (1, 10*TB)

    cs1, te1, cs2, te2, K, K2 = _selectors(TB)

    smem = pl.BlockSpec(memory_space=pltpu.MemorySpace.SMEM)

    def resident(shape):  # VMEM-resident constant (fetched once, never re-DMA'd)
        return pl.BlockSpec(shape, lambda g: (0,) * len(shape))

    out = pl.pallas_call(
        _net_kernel,
        out_shape=jax.ShapeDtypeStruct((G, 1, 10 * TB), jnp.float32),
        grid=(G,),
        in_specs=[
            pl.BlockSpec((1, 30, 30 * TB), lambda g: (g, 0, 0)),     # packed images
            smem, smem, smem, smem,                                  # conv weights/biases
            resident(cs1.shape), resident(te1.shape),
            resident(cs2.shape), resident(te2.shape),
            resident(K.shape), resident(wfe.shape),
            resident(K2.shape), resident(bfr.shape),
        ],
        out_specs=pl.BlockSpec((1, 1, 10 * TB), lambda g: (g, 0, 0)),
        compiler_params=pltpu.CompilerParams(
            dimension_semantics=("parallel",)),
    )(xg, w1f, b1, w2f, b2, cs1, te1, cs2, te2, K, wfe, K2, bfr)

    return out.reshape(G * TB, 10)[:B]


# ------------------------------ pure-JAX reference ----------------------------

def net_reference(x, params):
    w1, b1, w2, b2, wf, bf = params

    def conv(h, w):
        dn = lax.conv_dimension_numbers(h.shape, w.shape,
                                        ('NCHW', 'OIHW', 'NCHW'))
        return lax.conv_general_dilated(h, w, (1, 1), ((1, 1), (1, 1)),
                                        dimension_numbers=dn)

    def pool(h):
        return lax.reduce_window(h, -jnp.inf, lax.max,
                                 (1, 1, 2, 2), (1, 1, 2, 2), 'VALID')

    h = pool(jnp.maximum(conv(x, w1) + b1.reshape(1, -1, 1, 1), 0.0))
    h = pool(jnp.maximum(conv(h, w2) + b2.reshape(1, -1, 1, 1), 0.0))
    flat = h.reshape(x.shape[0], 4 * 7 * 7)
    return flat @ wf + bf


# ------------------------------------ main ------------------------------------

if __name__ == "__main__":
    key = jax.random.PRNGKey(0)
    k_x, k_w1, k_b1, k_w2, k_b2, k_wf, k_bf = jax.random.split(key, 7)

    B = 8   # two lane-packed groups of 4 -> grid=(2,), one block per v7x core
    x = jax.random.normal(k_x, (B, 1, 28, 28), dtype=jnp.float32)

    w1 = 0.2 * jax.random.normal(k_w1, (2, 1, 3, 3), dtype=jnp.float32)
    b1 = 0.1 * jax.random.normal(k_b1, (2,), dtype=jnp.float32)
    w2 = 0.2 * jax.random.normal(k_w2, (4, 2, 3, 3), dtype=jnp.float32)
    b2 = 0.1 * jax.random.normal(k_b2, (4,), dtype=jnp.float32)
    wf = 0.1 * jax.random.normal(k_wf, (7 * 7 * 4, 10), dtype=jnp.float32)
    bf = 0.1 * jax.random.normal(k_bf, (10,), dtype=jnp.float32)
    params = (w1, b1, w2, b2, wf, bf)

    out = jax.block_until_ready(net_forward(x, params))
    assert out.shape == (B, 10), out.shape

    ref = jax.block_until_ready(net_reference(x, params))
    err = np.max(np.abs(np.asarray(out) - np.asarray(ref)))
    assert np.allclose(np.asarray(out), np.asarray(ref), atol=1e-4, rtol=1e-4), err

    print("KERNEL_OK")
</pallas_src>

<mosaic_0001>
module attributes {stable_mosaic.version = 11 : i64} {
  func.func @_net_kernel(%arg0: i32, %arg1: memref<1x30x120xf32, #tpu.memory_space<vmem>>, %arg2: memref<18xf32, #tpu.memory_space<smem>>, %arg3: memref<2xf32, #tpu.memory_space<smem>>, %arg4: memref<72xf32, #tpu.memory_space<smem>>, %arg5: memref<4xf32, #tpu.memory_space<smem>>, %arg6: memref<117x64xf32, #tpu.memory_space<vmem>>, %arg7: memref<16x27xf32, #tpu.memory_space<vmem>>, %arg8: memref<61x28xf32, #tpu.memory_space<vmem>>, %arg9: memref<4x28x13xf32, #tpu.memory_space<vmem>>, %arg10: memref<28x280xf32, #tpu.memory_space<vmem>>, %arg11: memref<28x280xf32, #tpu.memory_space<vmem>>, %arg12: memref<280x40xf32, #tpu.memory_space<vmem>>, %arg13: memref<1x40xf32, #tpu.memory_space<vmem>>, %arg14: memref<1x1x40xf32, #tpu.memory_space<vmem>>) attributes {dimension_semantics = [#tpu.dimension_semantics<parallel>], iteration_bounds = array<i64: 2>, scalar_prefetch = 0 : i64, scratch_operands = 0 : i64, tpu.core_type = #tpu.core_type<tc>, window_params = [{transform_indices = @transform_0, window_bounds = array<i64: 1, 30, 120>}, {transform_indices = @transform_1, window_bounds = array<i64: 18>}, {transform_indices = @transform_2, window_bounds = array<i64: 2>}, {transform_indices = @transform_3, window_bounds = array<i64: 72>}, {transform_indices = @transform_4, window_bounds = array<i64: 4>}, {pipeline_mode = #tpu.pipeline_mode<synchronous>, transform_indices = @transform_5, window_bounds = array<i64: 117, 64>}, {pipeline_mode = #tpu.pipeline_mode<synchronous>, transform_indices = @transform_6, window_bounds = array<i64: 16, 27>}, {pipeline_mode = #tpu.pipeline_mode<synchronous>, transform_indices = @transform_7, window_bounds = array<i64: 61, 28>}, {pipeline_mode = #tpu.pipeline_mode<synchronous>, transform_indices = @transform_8, window_bounds = array<i64: 4, 28, 13>}, {pipeline_mode = #tpu.pipeline_mode<synchronous>, transform_indices = @transform_9, window_bounds = array<i64: 28, 280>}, {pipeline_mode = #tpu.pipeline_mode<synchronous>, transform_indices = @transform_10, window_bounds = array<i64: 28, 280>}, {pipeline_mode = #tpu.pipeline_mode<synchronous>, transform_indices = @transform_11, window_bounds = array<i64: 280, 40>}, {pipeline_mode = #tpu.pipeline_mode<synchronous>, transform_indices = @transform_12, window_bounds = array<i64: 1, 40>}, {transform_indices = @transform_13, window_bounds = array<i64: 1, 1, 40>}]} {
    %c0 = arith.constant 0 : index
    %c0_0 = arith.constant 0 : index
    %c0_1 = arith.constant 0 : index
    %0 = vector.load %arg1[%c0, %c0_0, %c0_1] : memref<1x30x120xf32, #tpu.memory_space<vmem>>, vector<1x30x120xf32>
    %1 = vector.shape_cast %0 : vector<1x30x120xf32> to vector<30x120xf32>
    %2 = vector.extract_strided_slice %1 {offsets = [0, 0], sizes = [28, 118], strides = [1, 1]} : vector<30x120xf32> to vector<28x118xf32>
    %3 = vector.extract_strided_slice %1 {offsets = [0, 1], sizes = [28, 118], strides = [1, 1]} : vector<30x120xf32> to vector<28x118xf32>
    %4 = vector.extract_strided_slice %1 {offsets = [0, 2], sizes = [28, 118], strides = [1, 1]} : vector<30x120xf32> to vector<28x118xf32>
    %5 = vector.extract_strided_slice %1 {offsets = [1, 0], sizes = [28, 118], strides = [1, 1]} : vector<30x120xf32> to vector<28x118xf32>
    %6 = vector.extract_strided_slice %1 {offsets = [1, 1], sizes = [28, 118], strides = [1, 1]} : vector<30x120xf32> to vector<28x118xf32>
    %7 = vector.extract_strided_slice %1 {offsets = [1, 2], sizes = [28, 118], strides = [1, 1]} : vector<30x120xf32> to vector<28x118xf32>
    %8 = vector.extract_strided_slice %1 {offsets = [2, 0], sizes = [28, 118], strides = [1, 1]} : vector<30x120xf32> to vector<28x118xf32>
    %9 = vector.extract_strided_slice %1 {offsets = [2, 1], sizes = [28, 118], strides = [1, 1]} : vector<30x120xf32> to vector<28x118xf32>
    %10 = vector.extract_strided_slice %1 {offsets = [2, 2], sizes = [28, 118], strides = [1, 1]} : vector<30x120xf32> to vector<28x118xf32>
    %c0_2 = arith.constant 0 : index
    %11 = memref.load %arg2[%c0_2] : memref<18xf32, #tpu.memory_space<smem>>
    %12 = vector.broadcast %11 : f32 to vector<28x118xf32>
    %13 = arith.mulf %12, %2 : vector<28x118xf32>
    %c1 = arith.constant 1 : index
    %14 = memref.load %arg2[%c1] : memref<18xf32, #tpu.memory_space<smem>>
    %15 = vector.broadcast %14 : f32 to vector<28x118xf32>
    %16 = arith.mulf %15, %3 : vector<28x118xf32>
    %c2 = arith.constant 2 : index
    %17 = memref.load %arg2[%c2] : memref<18xf32, #tpu.memory_space<smem>>
    %18 = vector.broadcast %17 : f32 to vector<28x118xf32>
    %19 = arith.mulf %18, %4 : vector<28x118xf32>
    %c3 = arith.constant 3 : index
    %20 = memref.load %arg2[%c3] : memref<18xf32, #tpu.memory_space<smem>>
    %21 = vector.broadcast %20 : f32 to vector<28x118xf32>
    %22 = arith.mulf %21, %5 : vector<28x118xf32>
    %c4 = arith.constant 4 : index
    %23 = memref.load %arg2[%c4] : memref<18xf32, #tpu.memory_space<smem>>
    %24 = vector.broadcast %23 : f32 to vector<28x118xf32>
    %25 = arith.mulf %24, %6 : vector<28x118xf32>
    %c5 = arith.constant 5 : index
    %26 = memref.load %arg2[%c5] : memref<18xf32, #tpu.memory_space<smem>>
    %27 = vector.broadcast %26 : f32 to vector<28x118xf32>
    %28 = arith.mulf %27, %7 : vector<28x118xf32>
    %c6 = arith.constant 6 : index
    %29 = memref.load %arg2[%c6] : memref<18xf32, #tpu.memory_space<smem>>
    %30 = vector.broadcast %29 : f32 to vector<28x118xf32>
    %31 = arith.mulf %30, %8 : vector<28x118xf32>
    %c7 = arith.constant 7 : index
    %32 = memref.load %arg2[%c7] : memref<18xf32, #tpu.memory_space<smem>>
    %33 = vector.broadcast %32 : f32 to vector<28x118xf32>
    %34 = arith.mulf %33, %9 : vector<28x118xf32>
    %c8 = arith.constant 8 : index
    %35 = memref.load %arg2[%c8] : memref<18xf32, #tpu.memory_space<smem>>
    %36 = vector.broadcast %35 : f32 to vector<28x118xf32>
    %37 = arith.mulf %36, %10 : vector<28x118xf32>
    %38 = arith.addf %13, %16 : vector<28x118xf32>
    %39 = arith.addf %38, %19 : vector<28x118xf32>
    %40 = arith.addf %39, %22 : vector<28x118xf32>
    %41 = arith.addf %40, %25 : vector<28x118xf32>
    %42 = arith.addf %41, %28 : vector<28x118xf32>
    %43 = arith.addf %42, %31 : vector<28x118xf32>
    %44 = arith.addf %43, %34 : vector<28x118xf32>
    %45 = arith.addf %44, %37 : vector<28x118xf32>
    %c0_3 = arith.constant 0 : index
    %46 = memref.load %arg3[%c0_3] : memref<2xf32, #tpu.memory_space<smem>>
    %47 = vector.broadcast %46 : f32 to vector<28x118xf32>
    %48 = arith.addf %45, %47 : vector<28x118xf32>
    %cst = arith.constant 0.000000e+00 : f32
    %49 = vector.broadcast %cst : f32 to vector<28x118xf32>
    %50 = arith.maximumf %48, %49 : vector<28x118xf32>
    %c9 = arith.constant 9 : index
    %51 = memref.load %arg2[%c9] : memref<18xf32, #tpu.memory_space<smem>>
    %52 = vector.broadcast %51 : f32 to vector<28x118xf32>
    %53 = arith.mulf %52, %2 : vector<28x118xf32>
    %c10 = arith.constant 10 : index
    %54 = memref.load %arg2[%c10] : memref<18xf32, #tpu.memory_space<smem>>
    %55 = vector.broadcast %54 : f32 to vector<28x118xf32>
    %56 = arith.mulf %55, %3 : vector<28x118xf32>
    %c11 = arith.constant 11 : index
    %57 = memref.load %arg2[%c11] : memref<18xf32, #tpu.memory_space<smem>>
    %58 = vector.broadcast %57 : f32 to vector<28x118xf32>
    %59 = arith.mulf %58, %4 : vector<28x118xf32>
    %c12 = arith.constant 12 : index
    %60 = memref.load %arg2[%c12] : memref<18xf32, #tpu.memory_space<smem>>
    %61 = vector.broadcast %60 : f32 to vector<28x118xf32>
    %62 = arith.mulf %61, %5 : vector<28x118xf32>
    %c13 = arith.constant 13 : index
    %63 = memref.load %arg2[%c13] : memref<18xf32, #tpu.memory_space<smem>>
    %64 = vector.broadcast %63 : f32 to vector<28x118xf32>
    %65 = arith.mulf %64, %6 : vector<28x118xf32>
    %c14 = arith.constant 14 : index
    %66 = memref.load %arg2[%c14] : memref<18xf32, #tpu.memory_space<smem>>
    %67 = vector.broadcast %66 : f32 to vector<28x118xf32>
    %68 = arith.mulf %67, %7 : vector<28x118xf32>
    %c15 = arith.constant 15 : index
    %69 = memref.load %arg2[%c15] : memref<18xf32, #tpu.memory_space<smem>>
    %70 = vector.broadcast %69 : f32 to vector<28x118xf32>
    %71 = arith.mulf %70, %8 : vector<28x118xf32>
    %c16 = arith.constant 16 : index
    %72 = memref.load %arg2[%c16] : memref<18xf32, #tpu.memory_space<smem>>
    %73 = vector.broadcast %72 : f32 to vector<28x118xf32>
    %74 = arith.mulf %73, %9 : vector<28x118xf32>
    %c17 = arith.constant 17 : index
    %75 = memref.load %arg2[%c17] : memref<18xf32, #tpu.memory_space<smem>>
    %76 = vector.broadcast %75 : f32 to vector<28x118xf32>
    %77 = arith.mulf %76, %10 : vector<28x118xf32>
    %78 = arith.addf %53, %56 : vector<28x118xf32>
    %79 = arith.addf %78, %59 : vector<28x118xf32>
    %80 = arith.addf %79, %62 : vector<28x118xf32>
    %81 = arith.addf %80, %65 : vector<28x118xf32>
    %82 = arith.addf %81, %68 : vector<28x118xf32>
    %83 = arith.addf %82, %71 : vector<28x118xf32>
    %84 = arith.addf %83, %74 : vector<28x118xf32>
    %85 = arith.addf %84, %77 : vector<28x118xf32>
    %c1_4 = arith.constant 1 : index
    %86 = memref.load %arg3[%c1_4] : memref<2xf32, #tpu.memory_space<smem>>
    %87 = vector.broadcast %86 : f32 to vector<28x118xf32>
    %88 = arith.addf %85, %87 : vector<28x118xf32>
    %cst_5 = arith.constant 0.000000e+00 : f32
    %89 = vector.broadcast %cst_5 : f32 to vector<28x118xf32>
    %90 = arith.maximumf %88, %89 : vector<28x118xf32>
    %c0_6 = arith.constant 0 : index
    %c0_7 = arith.constant 0 : index
    %91 = vector.load %arg6[%c0_6, %c0_7] : memref<117x64xf32, #tpu.memory_space<vmem>>, vector<117x64xf32>
    %c0_8 = arith.constant 0 : index
    %c0_9 = arith.constant 0 : index
    %92 = vector.load %arg7[%c0_8, %c0_9] : memref<16x27xf32, #tpu.memory_space<vmem>>, vector<16x27xf32>
    %93 = vector.extract_strided_slice %50 {offsets = [0, 0], sizes = [28, 117], strides = [1, 1]} : vector<28x118xf32> to vector<28x117xf32>
    %94 = vector.extract_strided_slice %50 {offsets = [0, 1], sizes = [28, 117], strides = [1, 1]} : vector<28x118xf32> to vector<28x117xf32>
    %95 = arith.maximumf %93, %94 : vector<28x117xf32>
    %96 = vector.extract_strided_slice %95 {offsets = [0, 0], sizes = [27, 117], strides = [1, 1]} : vector<28x117xf32> to vector<27x117xf32>
    %97 = vector.extract_strided_slice %95 {offsets = [1, 0], sizes = [27, 117], strides = [1, 1]} : vector<28x117xf32> to vector<27x117xf32>
    %98 = arith.maximumf %96, %97 : vector<27x117xf32>
    %cst_10 = arith.constant dense<0.000000e+00> : vector<16x117xf32>
    %99 = tpu.matmul %92, %98, %cst_10 {dimension_numbers = #tpu.dot_dimension_numbers<[1], [0], [0], [1], [0, 0, 1, 1], [], []>} : vector<16x27xf32>, vector<27x117xf32>, vector<16x117xf32> -> vector<16x117xf32>
    %cst_11 = arith.constant dense<0.000000e+00> : vector<16x64xf32>
    %100 = tpu.matmul %99, %91, %cst_11 {dimension_numbers = #tpu.dot_dimension_numbers<[1], [0], [0], [1], [0, 0, 1, 1], [], []>} : vector<16x117xf32>, vector<117x64xf32>, vector<16x64xf32> -> vector<16x64xf32>
    %101 = vector.extract_strided_slice %90 {offsets = [0, 0], sizes = [28, 117], strides = [1, 1]} : vector<28x118xf32> to vector<28x117xf32>
    %102 = vector.extract_strided_slice %90 {offsets = [0, 1], sizes = [28, 117], strides = [1, 1]} : vector<28x118xf32> to vector<28x117xf32>
    %103 = arith.maximumf %101, %102 : vector<28x117xf32>
    %104 = vector.extract_strided_slice %103 {offsets = [0, 0], sizes = [27, 117], strides = [1, 1]} : vector<28x117xf32> to vector<27x117xf32>
    %105 = vector.extract_strided_slice %103 {offsets = [1, 0], sizes = [27, 117], strides = [1, 1]} : vector<28x117xf32> to vector<27x117xf32>
    %106 = arith.maximumf %104, %105 : vector<27x117xf32>
    %cst_12 = arith.constant dense<0.000000e+00> : vector<16x117xf32>
    %107 = tpu.matmul %92, %106, %cst_12 {dimension_numbers = #tpu.dot_dimension_numbers<[1], [0], [0], [1], [0, 0, 1, 1], [], []>} : vector<16x27xf32>, vector<27x117xf32>, vector<16x117xf32> -> vector<16x117xf32>
    %cst_13 = arith.constant dense<0.000000e+00> : vector<16x64xf32>
    %108 = tpu.matmul %107, %91, %cst_13 {dimension_numbers = #tpu.dot_dimension_numbers<[1], [0], [0], [1], [0, 0, 1, 1], [], []>} : vector<16x117xf32>, vector<117x64xf32>, vector<16x64xf32> -> vector<16x64xf32>
    %109 = vector.extract_strided_slice %100 {offsets = [0, 0], sizes = [14, 62], strides = [1, 1]} : vector<16x64xf32> to vector<14x62xf32>
    %110 = vector.extract_strided_slice %100 {offsets = [0, 1], sizes = [14, 62], strides = [1, 1]} : vector<16x64xf32> to vector<14x62xf32>
    %111 = vector.extract_strided_slice %100 {offsets = [0, 2], sizes = [14, 62], strides = [1, 1]} : vector<16x64xf32> to vector<14x62xf32>
    %112 = vector.extract_strided_slice %100 {offsets = [1, 0], sizes = [14, 62], strides = [1, 1]} : vector<16x64xf32> to vector<14x62xf32>
    %113 = vector.extract_strided_slice %100 {offsets = [1, 1], sizes = [14, 62], strides = [1, 1]} : vector<16x64xf32> to vector<14x62xf32>
    %114 = vector.extract_strided_slice %100 {offsets = [1, 2], sizes = [14, 62], strides = [1, 1]} : vector<16x64xf32> to vector<14x62xf32>
    %115 = vector.extract_strided_slice %100 {offsets = [2, 0], sizes = [14, 62], strides = [1, 1]} : vector<16x64xf32> to vector<14x62xf32>
    %116 = vector.extract_strided_slice %100 {offsets = [2, 1], sizes = [14, 62], strides = [1, 1]} : vector<16x64xf32> to vector<14x62xf32>
    %117 = vector.extract_strided_slice %100 {offsets = [2, 2], sizes = [14, 62], strides = [1, 1]} : vector<16x64xf32> to vector<14x62xf32>
    %118 = vector.extract_strided_slice %108 {offsets = [0, 0], sizes = [14, 62], strides = [1, 1]} : vector<16x64xf32> to vector<14x62xf32>
    %119 = vector.extract_strided_slice %108 {offsets = [0, 1], sizes = [14, 62], strides = [1, 1]} : vector<16x64xf32> to vector<14x62xf32>
    %120 = vector.extract_strided_slice %108 {offsets = [0, 2], sizes = [14, 62], strides = [1, 1]} : vector<16x64xf32> to vector<14x62xf32>
    %121 = vector.extract_strided_slice %108 {offsets = [1, 0], sizes = [14, 62], strides = [1, 1]} : vector<16x64xf32> to vector<14x62xf32>
    %122 = vector.extract_strided_slice %108 {offsets = [1, 1], sizes = [14, 62], strides = [1, 1]} : vector<16x64xf32> to vector<14x62xf32>
    %123 = vector.extract_strided_slice %108 {offsets = [1, 2], sizes = [14, 62], strides = [1, 1]} : vector<16x64xf32> to vector<14x62xf32>
    %124 = vector.extract_strided_slice %108 {offsets = [2, 0], sizes = [14, 62], strides = [1, 1]} : vector<16x64xf32> to vector<14x62xf32>
    %125 = vector.extract_strided_slice %108 {offsets = [2, 1], sizes = [14, 62], strides = [1, 1]} : vector<16x64xf32> to vector<14x62xf32>
    %126 = vector.extract_strided_slice %108 {offsets = [2, 2], sizes = [14, 62], strides = [1, 1]} : vector<16x64xf32> to vector<14x62xf32>
    %c0_14 = arith.constant 0 : index
    %127 = memref.load %arg4[%c0_14] : memref<72xf32, #tpu.memory_space<smem>>
    %128 = vector.broadcast %127 : f32 to vector<14x62xf32>
    %129 = arith.mulf %128, %109 : vector<14x62xf32>
    %c1_15 = arith.constant 1 : index
    %130 = memref.load %arg4[%c1_15] : memref<72xf32, #tpu.memory_space<smem>>
    %131 = vector.broadcast %130 : f32 to vector<14x62xf32>
    %132 = arith.mulf %131, %110 : vector<14x62xf32>
    %c2_16 = arith.constant 2 : index
    %133 = memref.load %arg4[%c2_16] : memref<72xf32, #tpu.memory_space<smem>>
    %134 = vector.broadcast %133 : f32 to vector<14x62xf32>
    %135 = arith.mulf %134, %111 : vector<14x62xf32>
    %c3_17 = arith.constant 3 : index
    %136 = memref.load %arg4[%c3_17] : memref<72xf32, #tpu.memory_space<smem>>
    %137 = vector.broadcast %136 : f32 to vector<14x62xf32>
    %138 = arith.mulf %137, %112 : vector<14x62xf32>
    %c4_18 = arith.constant 4 : index
    %139 = memref.load %arg4[%c4_18] : memref<72xf32, #tpu.memory_space<smem>>
    %140 = vector.broadcast %139 : f32 to vector<14x62xf32>
    %141 = arith.mulf %140, %113 : vector<14x62xf32>
    %c5_19 = arith.constant 5 : index
    %142 = memref.load %arg4[%c5_19] : memref<72xf32, #tpu.memory_space<smem>>
    %143 = vector.broadcast %142 : f32 to vector<14x62xf32>
    %144 = arith.mulf %143, %114 : vector<14x62xf32>
    %c6_20 = arith.constant 6 : index
    %145 = memref.load %arg4[%c6_20] : memref<72xf32, #tpu.memory_space<smem>>
    %146 = vector.broadcast %145 : f32 to vector<14x62xf32>
    %147 = arith.mulf %146, %115 : vector<14x62xf32>
    %c7_21 = arith.constant 7 : index
    %148 = memref.load %arg4[%c7_21] : memref<72xf32, #tpu.memory_space<smem>>
    %149 = vector.broadcast %148 : f32 to vector<14x62xf32>
    %150 = arith.mulf %149, %116 : vector<14x62xf32>
    %c8_22 = arith.constant 8 : index
    %151 = memref.load %arg4[%c8_22] : memref<72xf32, #tpu.memory_space<smem>>
    %152 = vector.broadcast %151 : f32 to vector<14x62xf32>
    %153 = arith.mulf %152, %117 : vector<14x62xf32>
    %c9_23 = arith.constant 9 : index
    %154 = memref.load %arg4[%c9_23] : memref<72xf32, #tpu.memory_space<smem>>
    %155 = vector.broadcast %154 : f32 to vector<14x62xf32>
    %156 = arith.mulf %155, %118 : vector<14x62xf32>
    %c10_24 = arith.constant 10 : index
    %157 = memref.load %arg4[%c10_24] : memref<72xf32, #tpu.memory_space<smem>>
    %158 = vector.broadcast %157 : f32 to vector<14x62xf32>
    %159 = arith.mulf %158, %119 : vector<14x62xf32>
    %c11_25 = arith.constant 11 : index
    %160 = memref.load %arg4[%c11_25] : memref<72xf32, #tpu.memory_space<smem>>
    %161 = vector.broadcast %160 : f32 to vector<14x62xf32>
    %162 = arith.mulf %161, %120 : vector<14x62xf32>
    %c12_26 = arith.constant 12 : index
    %163 = memref.load %arg4[%c12_26] : memref<72xf32, #tpu.memory_space<smem>>
    %164 = vector.broadcast %163 : f32 to vector<14x62xf32>
    %165 = arith.mulf %164, %121 : vector<14x62xf32>
    %c13_27 = arith.constant 13 : index
    %166 = memref.load %arg4[%c13_27] : memref<72xf32, #tpu.memory_space<smem>>
    %167 = vector.broadcast %166 : f32 to vector<14x62xf32>
    %168 = arith.mulf %167, %122 : vector<14x62xf32>
    %c14_28 = arith.constant 14 : index
    %169 = memref.load %arg4[%c14_28] : memref<72xf32, #tpu.memory_space<smem>>
    %170 = vector.broadcast %169 : f32 to vector<14x62xf32>
    %171 = arith.mulf %170, %123 : vector<14x62xf32>
    %c15_29 = arith.constant 15 : index
    %172 = memref.load %arg4[%c15_29] : memref<72xf32, #tpu.memory_space<smem>>
    %173 = vector.broadcast %172 : f32 to vector<14x62xf32>
    %174 = arith.mulf %173, %124 : vector<14x62xf32>
    %c16_30 = arith.constant 16 : index
    %175 = memref.load %arg4[%c16_30] : memref<72xf32, #tpu.memory_space<smem>>
    %176 = vector.broadcast %175 : f32 to vector<14x62xf32>
    %177 = arith.mulf %176, %125 : vector<14x62xf32>
    %c17_31 = arith.constant 17 : index
    %178 = memref.load %arg4[%c17_31] : memref<72xf32, #tpu.memory_space<smem>>
    %179 = vector.broadcast %178 : f32 to vector<14x62xf32>
    %180 = arith.mulf %179, %126 : vector<14x62xf32>
    %181 = arith.addf %129, %132 : vector<14x62xf32>
    %182 = arith.addf %181, %135 : vector<14x62xf32>
    %183 = arith.addf %182, %138 : vector<14x62xf32>
    %184 = arith.addf %183, %141 : vector<14x62xf32>
    %185 = arith.addf %184, %144 : vector<14x62xf32>
    %186 = arith.addf %185, %147 : vector<14x62xf32>
    %187 = arith.addf %186, %150 : vector<14x62xf32>
    %188 = arith.addf %187, %153 : vector<14x62xf32>
    %189 = arith.addf %188, %156 : vector<14x62xf32>
    %190 = arith.addf %189, %159 : vector<14x62xf32>
    %191 = arith.addf %190, %162 : vector<14x62xf32>
    %192 = arith.addf %191, %165 : vector<14x62xf32>
    %193 = arith.addf %192, %168 : vector<14x62xf32>
    %194 = arith.addf %193, %171 : vector<14x62xf32>
    %195 = arith.addf %194, %174 : vector<14x62xf32>
    %196 = arith.addf %195, %177 : vector<14x62xf32>
    %197 = arith.addf %196, %180 : vector<14x62xf32>
    %c0_32 = arith.constant 0 : index
    %198 = memref.load %arg5[%c0_32] : memref<4xf32, #tpu.memory_space<smem>>
    %199 = vector.broadcast %198 : f32 to vector<14x62xf32>
    %200 = arith.addf %197, %199 : vector<14x62xf32>
    %cst_33 = arith.constant 0.000000e+00 : f32
    %201 = vector.broadcast %cst_33 : f32 to vector<14x62xf32>
    %202 = arith.maximumf %200, %201 : vector<14x62xf32>
    %c18 = arith.constant 18 : index
    %203 = memref.load %arg4[%c18] : memref<72xf32, #tpu.memory_space<smem>>
    %204 = vector.broadcast %203 : f32 to vector<14x62xf32>
    %205 = arith.mulf %204, %109 : vector<14x62xf32>
    %c19 = arith.constant 19 : index
    %206 = memref.load %arg4[%c19] : memref<72xf32, #tpu.memory_space<smem>>
    %207 = vector.broadcast %206 : f32 to vector<14x62xf32>
    %208 = arith.mulf %207, %110 : vector<14x62xf32>
    %c20 = arith.constant 20 : index
    %209 = memref.load %arg4[%c20] : memref<72xf32, #tpu.memory_space<smem>>
    %210 = vector.broadcast %209 : f32 to vector<14x62xf32>
    %211 = arith.mulf %210, %111 : vector<14x62xf32>
    %c21 = arith.constant 21 : index
    %212 = memref.load %arg4[%c21] : memref<72xf32, #tpu.memory_space<smem>>
    %213 = vector.broadcast %212 : f32 to vector<14x62xf32>
    %214 = arith.mulf %213, %112 : vector<14x62xf32>
    %c22 = arith.constant 22 : index
    %215 = memref.load %arg4[%c22] : memref<72xf32, #tpu.memory_space<smem>>
    %216 = vector.broadcast %215 : f32 to vector<14x62xf32>
    %217 = arith.mulf %216, %113 : vector<14x62xf32>
    %c23 = arith.constant 23 : index
    %218 = memref.load %arg4[%c23] : memref<72xf32, #tpu.memory_space<smem>>
    %219 = vector.broadcast %218 : f32 to vector<14x62xf32>
    %220 = arith.mulf %219, %114 : vector<14x62xf32>
    %c24 = arith.constant 24 : index
    %221 = memref.load %arg4[%c24] : memref<72xf32, #tpu.memory_space<smem>>
    %222 = vector.broadcast %221 : f32 to vector<14x62xf32>
    %223 = arith.mulf %222, %115 : vector<14x62xf32>
    %c25 = arith.constant 25 : index
    %224 = memref.load %arg4[%c25] : memref<72xf32, #tpu.memory_space<smem>>
    %225 = vector.broadcast %224 : f32 to vector<14x62xf32>
    %226 = arith.mulf %225, %116 : vector<14x62xf32>
    %c26 = arith.constant 26 : index
    %227 = memref.load %arg4[%c26] : memref<72xf32, #tpu.memory_space<smem>>
    %228 = vector.broadcast %227 : f32 to vector<14x62xf32>
    %229 = arith.mulf %228, %117 : vector<14x62xf32>
    %c27 = arith.constant 27 : index
    %230 = memref.load %arg4[%c27] : memref<72xf32, #tpu.memory_space<smem>>
    %231 = vector.broadcast %230 : f32 to vector<14x62xf32>
    %232 = arith.mulf %231, %118 : vector<14x62xf32>
    %c28 = arith.constant 28 : index
    %233 = memref.load %arg4[%c28] : memref<72xf32, #tpu.memory_space<smem>>
    %234 = vector.broadcast %233 : f32 to vector<14x62xf32>
    %235 = arith.mulf %234, %119 : vector<14x62xf32>
    %c29 = arith.constant 29 : index
    %236 = memref.load %arg4[%c29] : memref<72xf32, #tpu.memory_space<smem>>
    %237 = vector.broadcast %236 : f32 to vector<14x62xf32>
    %238 = arith.mulf %237, %120 : vector<14x62xf32>
    %c30 = arith.constant 30 : index
    %239 = memref.load %arg4[%c30] : memref<72xf32, #tpu.memory_space<smem>>
    %240 = vector.broadcast %239 : f32 to vector<14x62xf32>
    %241 = arith.mulf %240, %121 : vector<14x62xf32>
    %c31 = arith.constant 31 : index
    %242 = memref.load %arg4[%c31] : memref<72xf32, #tpu.memory_space<smem>>
    %243 = vector.broadcast %242 : f32 to vector<14x62xf32>
    %244 = arith.mulf %243, %122 : vector<14x62xf32>
    %c32 = arith.constant 32 : index
    %245 = memref.load %arg4[%c32] : memref<72xf32, #tpu.memory_space<smem>>
    %246 = vector.broadcast %245 : f32 to vector<14x62xf32>
    %247 = arith.mulf %246, %123 : vector<14x62xf32>
    %c33 = arith.constant 33 : index
    %248 = memref.load %arg4[%c33] : memref<72xf32, #tpu.memory_space<smem>>
    %249 = vector.broadcast %248 : f32 to vector<14x62xf32>
    %250 = arith.mulf %249, %124 : vector<14x62xf32>
    %c34 = arith.constant 34 : index
    %251 = memref.load %arg4[%c34] : memref<72xf32, #tpu.memory_space<smem>>
    %252 = vector.broadcast %251 : f32 to vector<14x62xf32>
    %253 = arith.mulf %252, %125 : vector<14x62xf32>
    %c35 = arith.constant 35 : index
    %254 = memref.load %arg4[%c35] : memref<72xf32, #tpu.memory_space<smem>>
    %255 = vector.broadcast %254 : f32 to vector<14x62xf32>
    %256 = arith.mulf %255, %126 : vector<14x62xf32>
    %257 = arith.addf %205, %208 : vector<14x62xf32>
    %258 = arith.addf %257, %211 : vector<14x62xf32>
    %259 = arith.addf %258, %214 : vector<14x62xf32>
    %260 = arith.addf %259, %217 : vector<14x62xf32>
    %261 = arith.addf %260, %220 : vector<14x62xf32>
    %262 = arith.addf %261, %223 : vector<14x62xf32>
    %263 = arith.addf %262, %226 : vector<14x62xf32>
    %264 = arith.addf %263, %229 : vector<14x62xf32>
    %265 = arith.addf %264, %232 : vector<14x62xf32>
    %266 = arith.addf %265, %235 : vector<14x62xf32>
    %267 = arith.addf %266, %238 : vector<14x62xf32>
    %268 = arith.addf %267, %241 : vector<14x62xf32>
    %269 = arith.addf %268, %244 : vector<14x62xf32>
    %270 = arith.addf %269, %247 : vector<14x62xf32>
    %271 = arith.addf %270, %250 : vector<14x62xf32>
    %272 = arith.addf %271, %253 : vector<14x62xf32>
    %273 = arith.addf %272, %256 : vector<14x62xf32>
    %c1_34 = arith.constant 1 : index
    %274 = memref.load %arg5[%c1_34] : memref<4xf32, #tpu.memory_space<smem>>
    %275 = vector.broadcast %274 : f32 to vector<14x62xf32>
    %276 = arith.addf %273, %275 : vector<14x62xf32>
    %cst_35 = arith.constant 0.000000e+00 : f32
    %277 = vector.broadcast %cst_35 : f32 to vector<14x62xf32>
    %278 = arith.maximumf %276, %277 : vector<14x62xf32>
    %c36 = arith.constant 36 : index
    %279 = memref.load %arg4[%c36] : memref<72xf32, #tpu.memory_space<smem>>
    %280 = vector.broadcast %279 : f32 to vector<14x62xf32>
    %281 = arith.mulf %280, %109 : vector<14x62xf32>
    %c37 = arith.constant 37 : index
    %282 = memref.load %arg4[%c37] : memref<72xf32, #tpu.memory_space<smem>>
    %283 = vector.broadcast %282 : f32 to vector<14x62xf32>
    %284 = arith.mulf %283, %110 : vector<14x62xf32>
    %c38 = arith.constant 38 : index
    %285 = memref.load %arg4[%c38] : memref<72xf32, #tpu.memory_space<smem>>
    %286 = vector.broadcast %285 : f32 to vector<14x62xf32>
    %287 = arith.mulf %286, %111 : vector<14x62xf32>
    %c39 = arith.constant 39 : index
    %288 = memref.load %arg4[%c39] : memref<72xf32, #tpu.memory_space<smem>>
    %289 = vector.broadcast %288 : f32 to vector<14x62xf32>
    %290 = arith.mulf %289, %112 : vector<14x62xf32>
    %c40 = arith.constant 40 : index
    %291 = memref.load %arg4[%c40] : memref<72xf32, #tpu.memory_space<smem>>
    %292 = vector.broadcast %291 : f32 to vector<14x62xf32>
    %293 = arith.mulf %292, %113 : vector<14x62xf32>
    %c41 = arith.constant 41 : index
    %294 = memref.load %arg4[%c41] : memref<72xf32, #tpu.memory_space<smem>>
    %295 = vector.broadcast %294 : f32 to vector<14x62xf32>
    %296 = arith.mulf %295, %114 : vector<14x62xf32>
    %c42 = arith.constant 42 : index
    %297 = memref.load %arg4[%c42] : memref<72xf32, #tpu.memory_space<smem>>
    %298 = vector.broadcast %297 : f32 to vector<14x62xf32>
    %299 = arith.mulf %298, %115 : vector<14x62xf32>
    %c43 = arith.constant 43 : index
    %300 = memref.load %arg4[%c43] : memref<72xf32, #tpu.memory_space<smem>>
    %301 = vector.broadcast %300 : f32 to vector<14x62xf32>
    %302 = arith.mulf %301, %116 : vector<14x62xf32>
    %c44 = arith.constant 44 : index
    %303 = memref.load %arg4[%c44] : memref<72xf32, #tpu.memory_space<smem>>
    %304 = vector.broadcast %303 : f32 to vector<14x62xf32>
    %305 = arith.mulf %304, %117 : vector<14x62xf32>
    %c45 = arith.constant 45 : index
    %306 = memref.load %arg4[%c45] : memref<72xf32, #tpu.memory_space<smem>>
    %307 = vector.broadcast %306 : f32 to vector<14x62xf32>
    %308 = arith.mulf %307, %118 : vector<14x62xf32>
    %c46 = arith.constant 46 : index
    %309 = memref.load %arg4[%c46] : memref<72xf32, #tpu.memory_space<smem>>
    %310 = vector.broadcast %309 : f32 to vector<14x62xf32>
    %311 = arith.mulf %310, %119 : vector<14x62xf32>
    %c47 = arith.constant 47 : index
    %312 = memref.load %arg4[%c47] : memref<72xf32, #tpu.memory_space<smem>>
    %313 = vector.broadcast %312 : f32 to vector<14x62xf32>
    %314 = arith.mulf %313, %120 : vector<14x62xf32>
    %c48 = arith.constant 48 : index
    %315 = memref.load %arg4[%c48] : memref<72xf32, #tpu.memory_space<smem>>
    %316 = vector.broadcast %315 : f32 to vector<14x62xf32>
    %317 = arith.mulf %316, %121 : vector<14x62xf32>
    %c49 = arith.constant 49 : index
    %318 = memref.load %arg4[%c49] : memref<72xf32, #tpu.memory_space<smem>>
    %319 = vector.broadcast %318 : f32 to vector<14x62xf32>
    %320 = arith.mulf %319, %122 : vector<14x62xf32>
    %c50 = arith.constant 50 : index
    %321 = memref.load %arg4[%c50] : memref<72xf32, #tpu.memory_space<smem>>
    %322 = vector.broadcast %321 : f32 to vector<14x62xf32>
    %323 = arith.mulf %322, %123 : vector<14x62xf32>
    %c51 = arith.constant 51 : index
    %324 = memref.load %arg4[%c51] : memref<72xf32, #tpu.memory_space<smem>>
    %325 = vector.broadcast %324 : f32 to vector<14x62xf32>
    %326 = arith.mulf %325, %124 : vector<14x62xf32>
    %c52 = arith.constant 52 : index
    %327 = memref.load %arg4[%c52] : memref<72xf32, #tpu.memory_space<smem>>
    %328 = vector.broadcast %327 : f32 to vector<14x62xf32>
    %329 = arith.mulf %328, %125 : vector<14x62xf32>
    %c53 = arith.constant 53 : index
    %330 = memref.load %arg4[%c53] : memref<72xf32, #tpu.memory_space<smem>>
    %331 = vector.broadcast %330 : f32 to vector<14x62xf32>
    %332 = arith.mulf %331, %126 : vector<14x62xf32>
    %333 = arith.addf %281, %284 : vector<14x62xf32>
    %334 = arith.addf %333, %287 : vector<14x62xf32>
    %335 = arith.addf %334, %290 : vector<14x62xf32>
    %336 = arith.addf %335, %293 : vector<14x62xf32>
    %337 = arith.addf %336, %296 : vector<14x62xf32>
    %338 = arith.addf %337, %299 : vector<14x62xf32>
    %339 = arith.addf %338, %302 : vector<14x62xf32>
    %340 = arith.addf %339, %305 : vector<14x62xf32>
    %341 = arith.addf %340, %308 : vector<14x62xf32>
    %342 = arith.addf %341, %311 : vector<14x62xf32>
    %343 = arith.addf %342, %314 : vector<14x62xf32>
    %344 = arith.addf %343, %317 : vector<14x62xf32>
    %345 = arith.addf %344, %320 : vector<14x62xf32>
    %346 = arith.addf %345, %323 : vector<14x62xf32>
    %347 = arith.addf %346, %326 : vector<14x62xf32>
    %348 = arith.addf %347, %329 : vector<14x62xf32>
    %349 = arith.addf %348, %332 : vector<14x62xf32>
    %c2_36 = arith.constant 2 : index
    %350 = memref.load %arg5[%c2_36] : memref<4xf32, #tpu.memory_space<smem>>
    %351 = vector.broadcast %350 : f32 to vector<14x62xf32>
    %352 = arith.addf %349, %351 : vector<14x62xf32>
    %cst_37 = arith.constant 0.000000e+00 : f32
    %353 = vector.broadcast %cst_37 : f32 to vector<14x62xf32>
    %354 = arith.maximumf %352, %353 : vector<14x62xf32>
    %c54 = arith.constant 54 : index
    %355 = memref.load %arg4[%c54] : memref<72xf32, #tpu.memory_space<smem>>
    %356 = vector.broadcast %355 : f32 to vector<14x62xf32>
    %357 = arith.mulf %356, %109 : vector<14x62xf32>
    %c55 = arith.constant 55 : index
    %358 = memref.load %arg4[%c55] : memref<72xf32, #tpu.memory_space<smem>>
    %359 = vector.broadcast %358 : f32 to vector<14x62xf32>
    %360 = arith.mulf %359, %110 : vector<14x62xf32>
    %c56 = arith.constant 56 : index
    %361 = memref.load %arg4[%c56] : memref<72xf32, #tpu.memory_space<smem>>
    %362 = vector.broadcast %361 : f32 to vector<14x62xf32>
    %363 = arith.mulf %362, %111 : vector<14x62xf32>
    %c57 = arith.constant 57 : index
    %364 = memref.load %arg4[%c57] : memref<72xf32, #tpu.memory_space<smem>>
    %365 = vector.broadcast %364 : f32 to vector<14x62xf32>
    %366 = arith.mulf %365, %112 : vector<14x62xf32>
    %c58 = arith.constant 58 : index
    %367 = memref.load %arg4[%c58] : memref<72xf32, #tpu.memory_space<smem>>
    %368 = vector.broadcast %367 : f32 to vector<14x62xf32>
    %369 = arith.mulf %368, %113 : vector<14x62xf32>
    %c59 = arith.constant 59 : index
    %370 = memref.load %arg4[%c59] : memref<72xf32, #tpu.memory_space<smem>>
    %371 = vector.broadcast %370 : f32 to vector<14x62xf32>
    %372 = arith.mulf %371, %114 : vector<14x62xf32>
    %c60 = arith.constant 60 : index
    %373 = memref.load %arg4[%c60] : memref<72xf32, #tpu.memory_space<smem>>
    %374 = vector.broadcast %373 : f32 to vector<14x62xf32>
    %375 = arith.mulf %374, %115 : vector<14x62xf32>
    %c61 = arith.constant 61 : index
    %376 = memref.load %arg4[%c61] : memref<72xf32, #tpu.memory_space<smem>>
    %377 = vector.broadcast %376 : f32 to vector<14x62xf32>
    %378 = arith.mulf %377, %116 : vector<14x62xf32>
    %c62 = arith.constant 62 : index
    %379 = memref.load %arg4[%c62] : memref<72xf32, #tpu.memory_space<smem>>
    %380 = vector.broadcast %379 : f32 to vector<14x62xf32>
    %381 = arith.mulf %380, %117 : vector<14x62xf32>
    %c63 = arith.constant 63 : index
    %382 = memref.load %arg4[%c63] : memref<72xf32, #tpu.memory_space<smem>>
    %383 = vector.broadcast %382 : f32 to vector<14x62xf32>
    %384 = arith.mulf %383, %118 : vector<14x62xf32>
    %c64 = arith.constant 64 : index
    %385 = memref.load %arg4[%c64] : memref<72xf32, #tpu.memory_space<smem>>
    %386 = vector.broadcast %385 : f32 to vector<14x62xf32>
    %387 = arith.mulf %386, %119 : vector<14x62xf32>
    %c65 = arith.constant 65 : index
    %388 = memref.load %arg4[%c65] : memref<72xf32, #tpu.memory_space<smem>>
    %389 = vector.broadcast %388 : f32 to vector<14x62xf32>
    %390 = arith.mulf %389, %120 : vector<14x62xf32>
    %c66 = arith.constant 66 : index
    %391 = memref.load %arg4[%c66] : memref<72xf32, #tpu.memory_space<smem>>
    %392 = vector.broadcast %391 : f32 to vector<14x62xf32>
    %393 = arith.mulf %392, %121 : vector<14x62xf32>
    %c67 = arith.constant 67 : index
    %394 = memref.load %arg4[%c67] : memref<72xf32, #tpu.memory_space<smem>>
    %395 = vector.broadcast %394 : f32 to vector<14x62xf32>
    %396 = arith.mulf %395, %122 : vector<14x62xf32>
    %c68 = arith.constant 68 : index
    %397 = memref.load %arg4[%c68] : memref<72xf32, #tpu.memory_space<smem>>
    %398 = vector.broadcast %397 : f32 to vector<14x62xf32>
    %399 = arith.mulf %398, %123 : vector<14x62xf32>
    %c69 = arith.constant 69 : index
    %400 = memref.load %arg4[%c69] : memref<72xf32, #tpu.memory_space<smem>>
    %401 = vector.broadcast %400 : f32 to vector<14x62xf32>
    %402 = arith.mulf %401, %124 : vector<14x62xf32>
    %c70 = arith.constant 70 : index
    %403 = memref.load %arg4[%c70] : memref<72xf32, #tpu.memory_space<smem>>
    %404 = vector.broadcast %403 : f32 to vector<14x62xf32>
    %405 = arith.mulf %404, %125 : vector<14x62xf32>
    %c71 = arith.constant 71 : index
    %406 = memref.load %arg4[%c71] : memref<72xf32, #tpu.memory_space<smem>>
    %407 = vector.broadcast %406 : f32 to vector<14x62xf32>
    %408 = arith.mulf %407, %126 : vector<14x62xf32>
    %409 = arith.addf %357, %360 : vector<14x62xf32>
    %410 = arith.addf %409, %363 : vector<14x62xf32>
    %411 = arith.addf %410, %366 : vector<14x62xf32>
    %412 = arith.addf %411, %369 : vector<14x62xf32>
    %413 = arith.addf %412, %372 : vector<14x62xf32>
    %414 = arith.addf %413, %375 : vector<14x62xf32>
    %415 = arith.addf %414, %378 : vector<14x62xf32>
    %416 = arith.addf %415, %381 : vector<14x62xf32>
    %417 = arith.addf %416, %384 : vector<14x62xf32>
    %418 = arith.addf %417, %387 : vector<14x62xf32>
    %419 = arith.addf %418, %390 : vector<14x62xf32>
    %420 = arith.addf %419, %393 : vector<14x62xf32>
    %421 = arith.addf %420, %396 : vector<14x62xf32>
    %422 = arith.addf %421, %399 : vector<14x62xf32>
    %423 = arith.addf %422, %402 : vector<14x62xf32>
    %424 = arith.addf %423, %405 : vector<14x62xf32>
    %425 = arith.addf %424, %408 : vector<14x62xf32>
    %c3_38 = arith.constant 3 : index
    %426 = memref.load %arg5[%c3_38] : memref<4xf32, #tpu.memory_space<smem>>
    %427 = vector.broadcast %426 : f32 to vector<14x62xf32>
    %428 = arith.addf %425, %427 : vector<14x62xf32>
    %cst_39 = arith.constant 0.000000e+00 : f32
    %429 = vector.broadcast %cst_39 : f32 to vector<14x62xf32>
    %430 = arith.maximumf %428, %429 : vector<14x62xf32>
    %c0_40 = arith.constant 0 : index
    %c0_41 = arith.constant 0 : index
    %431 = vector.load %arg8[%c0_40, %c0_41] : memref<61x28xf32, #tpu.memory_space<vmem>>, vector<61x28xf32>
    %432 = vector.extract_strided_slice %202 {offsets = [0, 0], sizes = [14, 61], strides = [1, 1]} : vector<14x62xf32> to vector<14x61xf32>
    %433 = vector.extract_strided_slice %202 {offsets = [0, 1], sizes = [14, 61], strides = [1, 1]} : vector<14x62xf32> to vector<14x61xf32>
    %434 = arith.maximumf %432, %433 : vector<14x61xf32>
    %435 = vector.extract_strided_slice %434 {offsets = [0, 0], sizes = [13, 61], strides = [1, 1]} : vector<14x61xf32> to vector<13x61xf32>
    %436 = vector.extract_strided_slice %434 {offsets = [1, 0], sizes = [13, 61], strides = [1, 1]} : vector<14x61xf32> to vector<13x61xf32>
    %437 = arith.maximumf %435, %436 : vector<13x61xf32>
    %c0_42 = arith.constant 0 : index
    %c0_43 = arith.constant 0 : index
    %c0_44 = arith.constant 0 : index
    %438 = vector.load %arg9[%c0_42, %c0_43, %c0_44] : memref<4x28x13xf32, #tpu.memory_space<vmem>>, vector<1x28x13xf32>
    %439 = vector.shape_cast %438 : vector<1x28x13xf32> to vector<28x13xf32>
    %cst_45 = arith.constant dense<0.000000e+00> : vector<28x61xf32>
    %440 = tpu.matmul %439, %437, %cst_45 {dimension_numbers = #tpu.dot_dimension_numbers<[1], [0], [0], [1], [0, 0, 1, 1], [], []>} : vector<28x13xf32>, vector<13x61xf32>, vector<28x61xf32> -> vector<28x61xf32>
    %cst_46 = arith.constant dense<0.000000e+00> : vector<28x28xf32>
    %441 = tpu.matmul %440, %431, %cst_46 {dimension_numbers = #tpu.dot_dimension_numbers<[1], [0], [0], [1], [0, 0, 1, 1], [], []>} : vector<28x61xf32>, vector<61x28xf32>, vector<28x28xf32> -> vector<28x28xf32>
    %442 = vector.extract_strided_slice %278 {offsets = [0, 0], sizes = [14, 61], strides = [1, 1]} : vector<14x62xf32> to vector<14x61xf32>
    %443 = vector.extract_strided_slice %278 {offsets = [0, 1], sizes = [14, 61], strides = [1, 1]} : vector<14x62xf32> to vector<14x61xf32>
    %444 = arith.maximumf %442, %443 : vector<14x61xf32>
    %445 = vector.extract_strided_slice %444 {offsets = [0, 0], sizes = [13, 61], strides = [1, 1]} : vector<14x61xf32> to vector<13x61xf32>
    %446 = vector.extract_strided_slice %444 {offsets = [1, 0], sizes = [13, 61], strides = [1, 1]} : vector<14x61xf32> to vector<13x61xf32>
    %447 = arith.maximumf %445, %446 : vector<13x61xf32>
    %c1_47 = arith.constant 1 : index
    %c0_48 = arith.constant 0 : index
    %c0_49 = arith.constant 0 : index
    %448 = vector.load %arg9[%c1_47, %c0_48, %c0_49] : memref<4x28x13xf32, #tpu.memory_space<vmem>>, vector<1x28x13xf32>
    %449 = vector.shape_cast %448 : vector<1x28x13xf32> to vector<28x13xf32>
    %cst_50 = arith.constant dense<0.000000e+00> : vector<28x61xf32>
    %450 = tpu.matmul %449, %447, %cst_50 {dimension_numbers = #tpu.dot_dimension_numbers<[1], [0], [0], [1], [0, 0, 1, 1], [], []>} : vector<28x13xf32>, vector<13x61xf32>, vector<28x61xf32> -> vector<28x61xf32>
    %cst_51 = arith.constant dense<0.000000e+00> : vector<28x28xf32>
    %451 = tpu.matmul %450, %431, %cst_51 {dimension_numbers = #tpu.dot_dimension_numbers<[1], [0], [0], [1], [0, 0, 1, 1], [], []>} : vector<28x61xf32>, vector<61x28xf32>, vector<28x28xf32> -> vector<28x28xf32>
    %452 = arith.addf %441, %451 : vector<28x28xf32>
    %453 = vector.extract_strided_slice %354 {offsets = [0, 0], sizes = [14, 61], strides = [1, 1]} : vector<14x62xf32> to vector<14x61xf32>
    %454 = vector.extract_strided_slice %354 {offsets = [0, 1], sizes = [14, 61], strides = [1, 1]} : vector<14x62xf32> to vector<14x61xf32>
    %455 = arith.maximumf %453, %454 : vector<14x61xf32>
    %456 = vector.extract_strided_slice %455 {offsets = [0, 0], sizes = [13, 61], strides = [1, 1]} : vector<14x61xf32> to vector<13x61xf32>
    %457 = vector.extract_strided_slice %455 {offsets = [1, 0], sizes = [13, 61], strides = [1, 1]} : vector<14x61xf32> to vector<13x61xf32>
    %458 = arith.maximumf %456, %457 : vector<13x61xf32>
    %c2_52 = arith.constant 2 : index
    %c0_53 = arith.constant 0 : index
    %c0_54 = arith.constant 0 : index
    %459 = vector.load %arg9[%c2_52, %c0_53, %c0_54] : memref<4x28x13xf32, #tpu.memory_space<vmem>>, vector<1x28x13xf32>
    %460 = vector.shape_cast %459 : vector<1x28x13xf32> to vector<28x13xf32>
    %cst_55 = arith.constant dense<0.000000e+00> : vector<28x61xf32>
    %461 = tpu.matmul %460, %458, %cst_55 {dimension_numbers = #tpu.dot_dimension_numbers<[1], [0], [0], [1], [0, 0, 1, 1], [], []>} : vector<28x13xf32>, vector<13x61xf32>, vector<28x61xf32> -> vector<28x61xf32>
    %cst_56 = arith.constant dense<0.000000e+00> : vector<28x28xf32>
    %462 = tpu.matmul %461, %431, %cst_56 {dimension_numbers = #tpu.dot_dimension_numbers<[1], [0], [0], [1], [0, 0, 1, 1], [], []>} : vector<28x61xf32>, vector<61x28xf32>, vector<28x28xf32> -> vector<28x28xf32>
    %463 = arith.addf %452, %462 : vector<28x28xf32>
    %464 = vector.extract_strided_slice %430 {offsets = [0, 0], sizes = [14, 61], strides = [1, 1]} : vector<14x62xf32> to vector<14x61xf32>
    %465 = vector.extract_strided_slice %430 {offsets = [0, 1], sizes = [14, 61], strides = [1, 1]} : vector<14x62xf32> to vector<14x61xf32>
    %466 = arith.maximumf %464, %465 : vector<14x61xf32>
    %467 = vector.extract_strided_slice %466 {offsets = [0, 0], sizes = [13, 61], strides = [1, 1]} : vector<14x61xf32> to vector<13x61xf32>
    %468 = vector.extract_strided_slice %466 {offsets = [1, 0], sizes = [13, 61], strides = [1, 1]} : vector<14x61xf32> to vector<13x61xf32>
    %469 = arith.maximumf %467, %468 : vector<13x61xf32>
    %c3_57 = arith.constant 3 : index
    %c0_58 = arith.constant 0 : index
    %c0_59 = arith.constant 0 : index
    %470 = vector.load %arg9[%c3_57, %c0_58, %c0_59] : memref<4x28x13xf32, #tpu.memory_space<vmem>>, vector<1x28x13xf32>
    %471 = vector.shape_cast %470 : vector<1x28x13xf32> to vector<28x13xf32>
    %cst_60 = arith.constant dense<0.000000e+00> : vector<28x61xf32>
    %472 = tpu.matmul %471, %469, %cst_60 {dimension_numbers = #tpu.dot_dimension_numbers<[1], [0], [0], [1], [0, 0, 1, 1], [], []>} : vector<28x13xf32>, vector<13x61xf32>, vector<28x61xf32> -> vector<28x61xf32>
    %cst_61 = arith.constant dense<0.000000e+00> : vector<28x28xf32>
    %473 = tpu.matmul %472, %431, %cst_61 {dimension_numbers = #tpu.dot_dimension_numbers<[1], [0], [0], [1], [0, 0, 1, 1], [], []>} : vector<28x61xf32>, vector<61x28xf32>, vector<28x28xf32> -> vector<28x28xf32>
    %474 = arith.addf %463, %473 : vector<28x28xf32>
    %c0_62 = arith.constant 0 : index
    %c0_63 = arith.constant 0 : index
    %475 = vector.load %arg10[%c0_62, %c0_63] : memref<28x280xf32, #tpu.memory_space<vmem>>, vector<28x280xf32>
    %cst_64 = arith.constant dense<0.000000e+00> : vector<28x280xf32>
    %476 = tpu.matmul %474, %475, %cst_64 {dimension_numbers = #tpu.dot_dimension_numbers<[1], [0], [0], [1], [0, 0, 1, 1], [], []>} : vector<28x28xf32>, vector<28x280xf32>, vector<28x280xf32> -> vector<28x280xf32>
    %c0_65 = arith.constant 0 : index
    %c0_66 = arith.constant 0 : index
    %477 = vector.load %arg11[%c0_65, %c0_66] : memref<28x280xf32, #tpu.memory_space<vmem>>, vector<28x280xf32>
    %478 = arith.mulf %476, %477 : vector<28x280xf32>
    %c0_67 = arith.constant 0 : index
    %c0_68 = arith.constant 0 : index
    %479 = vector.load %arg12[%c0_67, %c0_68] : memref<280x40xf32, #tpu.memory_space<vmem>>, vector<280x40xf32>
    %cst_69 = arith.constant dense<0.000000e+00> : vector<28x40xf32>
    %480 = tpu.matmul %478, %479, %cst_69 {dimension_numbers = #tpu.dot_dimension_numbers<[1], [0], [0], [1], [0, 0, 1, 1], [], []>} : vector<28x280xf32>, vector<280x40xf32>, vector<28x40xf32> -> vector<28x40xf32>
    %cst_70 = arith.constant dense<0.000000e+00> : vector<40xf32>
    %481 = vector.multi_reduction <add>, %480, %cst_70 [0] : vector<28x40xf32> to vector<40xf32>
    %482 = vector.shape_cast %481 : vector<40xf32> to vector<1x40xf32>
    %c0_71 = arith.constant 0 : index
    %c0_72 = arith.constant 0 : index
    %483 = vector.load %arg13[%c0_71, %c0_72] : memref<1x40xf32, #tpu.memory_space<vmem>>, vector<1x40xf32>
    %484 = arith.addf %482, %483 : vector<1x40xf32>
    %c0_73 = arith.constant 0 : index
    %c0_74 = arith.constant 0 : index
    %c0_75 = arith.constant 0 : index
    %485 = vector.load %arg14[%c0_73, %c0_74, %c0_75] : memref<1x1x40xf32, #tpu.memory_space<vmem>>, vector<1x1x40xf32>
    %486 = vector.shape_cast %485 : vector<1x1x40xf32> to vector<1x40xf32>
    %487 = vector.shape_cast %484 : vector<1x40xf32> to vector<1x1x40xf32>
    tpu.vector_store %arg14[%c0_73, %c0_74, %c0_75], %487 {strides = array<i32>} : memref<1x1x40xf32, #tpu.memory_space<vmem>>, vector<1x1x40xf32>,
    return
  }
  func.func @transform_0(%arg0: i32) -> (i32, i32, i32) {
    %c0_i32 = arith.constant 0 : i32
    %c0_i32_0 = arith.constant 0 : i32
    %c0_i32_1 = arith.constant 0 : i32
    return %arg0, %c0_i32, %c0_i32_0 : i32, i32, i32
  }
  func.func @transform_1(%arg0: i32) -> i32 {
    %c0_i32 = arith.constant 0 : i32
    %c0_i32_0 = arith.constant 0 : i32
    return %c0_i32 : i32
  }
  func.func @transform_2(%arg0: i32) -> i32 {
    %c0_i32 = arith.constant 0 : i32
    %c0_i32_0 = arith.constant 0 : i32
    return %c0_i32 : i32
  }
  func.func @transform_3(%arg0: i32) -> i32 {
    %c0_i32 = arith.constant 0 : i32
    %c0_i32_0 = arith.constant 0 : i32
    return %c0_i32 : i32
  }
  func.func @transform_4(%arg0: i32) -> i32 {
    %c0_i32 = arith.constant 0 : i32
    %c0_i32_0 = arith.constant 0 : i32
    return %c0_i32 : i32
  }
  func.func @transform_5(%arg0: i32) -> (i32, i32) {
    %c0_i32 = arith.constant 0 : i32
    %c0_i32_0 = arith.constant 0 : i32
    %c0_i32_1 = arith.constant 0 : i32
    return %c0_i32, %c0_i32_0 : i32, i32
  }
  func.func @transform_6(%arg0: i32) -> (i32, i32) {
    %c0_i32 = arith.constant 0 : i32
    %c0_i32_0 = arith.constant 0 : i32
    %c0_i32_1 = arith.constant 0 : i32
    return %c0_i32, %c0_i32_0 : i32, i32
  }
  func.func @transform_7(%arg0: i32) -> (i32, i32) {
    %c0_i32 = arith.constant 0 : i32
    %c0_i32_0 = arith.constant 0 : i32
    %c0_i32_1 = arith.constant 0 : i32
    return %c0_i32, %c0_i32_0 : i32, i32
  }
  func.func @transform_8(%arg0: i32) -> (i32, i32, i32) {
    %c0_i32 = arith.constant 0 : i32
    %c0_i32_0 = arith.constant 0 : i32
    %c0_i32_1 = arith.constant 0 : i32
    %c0_i32_2 = arith.constant 0 : i32
    return %c0_i32, %c0_i32_0, %c0_i32_1 : i32, i32, i32
  }
  func.func @transform_9(%arg0: i32) -> (i32, i32) {
    %c0_i32 = arith.constant 0 : i32
    %c0_i32_0 = arith.constant 0 : i32
    %c0_i32_1 = arith.constant 0 : i32
    return %c0_i32, %c0_i32_0 : i32, i32
  }
  func.func @transform_10(%arg0: i32) -> (i32, i32) {
    %c0_i32 = arith.constant 0 : i32
    %c0_i32_0 = arith.constant 0 : i32
    %c0_i32_1 = arith.constant 0 : i32
    return %c0_i32, %c0_i32_0 : i32, i32
  }
  func.func @transform_11(%arg0: i32) -> (i32, i32) {
    %c0_i32 = arith.constant 0 : i32
    %c0_i32_0 = arith.constant 0 : i32
    %c0_i32_1 = arith.constant 0 : i32
    return %c0_i32, %c0_i32_0 : i32, i32
  }
  func.func @transform_12(%arg0: i32) -> (i32, i32) {
    %c0_i32 = arith.constant 0 : i32
    %c0_i32_0 = arith.constant 0 : i32
    %c0_i32_1 = arith.constant 0 : i32
    return %c0_i32, %c0_i32_0 : i32, i32
  }
  func.func @transform_13(%arg0: i32) -> (i32, i32, i32) {
    %c0_i32 = arith.constant 0 : i32
    %c0_i32_0 = arith.constant 0 : i32
    %c0_i32_1 = arith.constant 0 : i32
    return %arg0, %c0_i32, %c0_i32_0 : i32, i32, i32
  }
}

</mosaic_0001>

<bundles_post_ra>
// kernel: tile.12
= control target key start
LH: loop header
LB: loop body
LE: loop exit
PB: predicated region body
PF: predicated region fallthrough
CT: control target
= control target key end

     0   :  { %vm142_vm0 = vcmask 1047556   ;;  %vm181_vm1 = vcmask 375808   ;;  %vm263_vm2 = vcmask 474112   ;;  %s462_s4 = smov 70   ;;  %vm144_vm3 = vcmask 572416   ;;  %s463_s13 = smov 12   ;;  %s679_s0 = inlined_call_operand.vmem [shape: f32[28,4,70], index: 0, kind: input, shape index: {}]   ;;  %s680_s1 = inlined_call_operand.vmem [shape: f32[28,280], index: 1, kind: output, shape index: {}]  }
   0x1   :  { %v408_v0 = vld [vmem:[%s679_s0 + $0x5c] sm:$0xf]  ;;  %v409_v1 = vld [vmem:[%s679_s0 + $0x58] sm:$0xf]  ;;  %v410_v2 = vld [vmem:[%s679_s0 + $0x54] sm:$0xf] }
   0x2   :  { %28 = vst [vmem:[#allocation0 + $0xb8] sm:$0xf] %v408_v0  ;;  %33 = vst [vmem:[#allocation0 + $0xb0] sm:$0xf] %v409_v1  ;;  %v411_v3 = vld [vmem:[%s679_s0 + $0x50] sm:$0xf] }
   0x3   :  { %38 = vst [vmem:[#allocation0 + $0xa8] sm:$0xf] %v410_v2  ;;  %v412_v4 = vld [vmem:[%s679_s0 + $0x4c] sm:$0xf]  ;;  %v413_v5 = vld [vmem:[%s679_s0 + $0x48] sm:$0xf] }
   0x4   :  { %43 = vst [vmem:[#allocation0 + $0xa0] sm:$0xf] %v411_v3  ;;  %48 = vst [vmem:[#allocation0 + $0x98] sm:$0xf] %v412_v4  ;;  %v414_v6 = vld [vmem:[%s679_s0 + $0x44] sm:$0xf] }
   0x5   :  { %53 = vst [vmem:[#allocation0 + $0x90] sm:$0xf] %v413_v5  ;;  %v415_v7 = vld [vmem:[%s679_s0 + $0x40] sm:$0xf]  ;;  %v416_v8 = vld [vmem:[%s679_s0 + $0x3c] sm:$0xf] }
   0x6   :  { %58 = vst [vmem:[#allocation0 + $0x88] sm:$0xf] %v414_v6  ;;  %63 = vst [vmem:[#allocation0 + $0x80] sm:$0xf] %v415_v7  ;;  %v417_v9 = vld [vmem:[%s679_s0 + $0x38] sm:$0xf] }
   0x7   :  { %68 = vst [vmem:[#allocation0 + $0x78] sm:$0xf] %v416_v8  ;;  %v418_v10 = vld [vmem:[%s679_s0 + $0x34] sm:$0xf]  ;;  %v419_v11 = vld [vmem:[%s679_s0 + $0x30] sm:$0xf] }
   0x8   :  { %73 = vst [vmem:[#allocation0 + $0x70] sm:$0xf] %v417_v9  ;;  %78 = vst [vmem:[#allocation0 + $0x68] sm:$0xf] %v418_v10  ;;  %v420_v12 = vld [vmem:[%s679_s0 + $0x2c] sm:$0xf] }
   0x9   :  { %83 = vst [vmem:[#allocation0 + $0x60] sm:$0xf] %v419_v11  ;;  %v421_v13 = vld [vmem:[%s679_s0 + $0x28] sm:$0xf]  ;;  %v422_v14 = vld [vmem:[%s679_s0 + $0x24] sm:$0xf] }
   0xa   :  { %88 = vst [vmem:[#allocation0 + $0x58] sm:$0xf] %v420_v12  ;;  %93 = vst [vmem:[#allocation0 + $0x50] sm:$0xf] %v421_v13  ;;  %v423_v15 = vld [vmem:[%s679_s0 + $0x20] sm:$0xf] }
   0xb   :  { %98 = vst [vmem:[#allocation0 + $0x48] sm:$0xf] %v422_v14  ;;  %103 = vst [vmem:[#allocation0 + $0x40] sm:$0xf] %v423_v15  ;;  %v404_v16 = vld [vmem:[%s679_s0 + $0x6c] sm:$0xf] }
   0xc   :  { %v405_v17 = vld [vmem:[%s679_s0 + $0x68] sm:$0xf]  ;;  %v406_v18 = vld [vmem:[%s679_s0 + $0x64] sm:$0xf]  ;;  %8 = vst [vmem:[#allocation0 + $0xd8] sm:$0xf] %v404_v16 }
   0xd   :  { %13 = vst [vmem:[#allocation0 + $0xd0] sm:$0xf] %v405_v17  ;;  %18 = vst [vmem:[#allocation0 + $0xc8] sm:$0xf] %v406_v18  ;;  %v407_v19 = vld [vmem:[%s679_s0 + $0x60] sm:$0xf] }
   0xe   :  { %v424_v20 = vld [vmem:[%s679_s0 + $0x1c] sm:$0xf]  ;;  %v425_v21 = vld [vmem:[%s679_s0 + $0x18] sm:$0xf]  ;;  %23 = vst [vmem:[#allocation0 + $0xc0] sm:$0xf] %v407_v19 }
   0xf   :  { %108 = vst [vmem:[#allocation0 + $0x38] sm:$0xf] %v424_v20  ;;  %113 = vst [vmem:[#allocation0 + $0x30] sm:$0xf] %v425_v21  ;;  %v426_v22 = vld [vmem:[%s679_s0 + $0x14] sm:$0xf] }
  0x10   :  { %v427_v23 = vld [vmem:[%s679_s0 + $0x10] sm:$0xf]  ;;  %v428_v24 = vld [vmem:[%s679_s0 + $0xc] sm:$0xf]  ;;  %118 = vst [vmem:[#allocation0 + $0x28] sm:$0xf] %v426_v22 }
  0x11   :  { %v172_v25 = vld [vmem:[#allocation0 + $0x83] ss:$8 sm:$0xf0]   ;;  %123 = vst [vmem:[#allocation0 + $0x20] sm:$0xf] %v427_v23  ;;  %vm185_vm4 = vcmask 195584  }
  0x12   :  { %128 = vst [vmem:[#allocation0 + $0x18] sm:$0xf] %v428_v24  ;;  %v170_v26 = vld [vmem:[#allocation0 + $0x83] ss:$8 sm:$0xf]   ;;  %vm188_vm5 = vcmask 1048208  }
  0x13   :  { %v429_v27 = vld [vmem:[%s679_s0 + $0x8] sm:$0xf]  ;;  %v430_v29 = vld [vmem:[%s679_s0 + $0x4] sm:$0xf]  ;;  %v174_v30 = vsel %vm142_vm0, %v172_v25, %v170_v26  ;;  %v138_v31 = vld [vmem:[%s679_s0] sm:$0xf] }
  0x14   :  { %v178_v28 = vld [vmem:[#allocation0 + $0x43] ss:$8 sm:$0xf0]   ;;  %133 = vst [vmem:[#allocation0 + $0x10] sm:$0xf] %v429_v27  ;;  %s461_s0 = smov 82  }
  0x15   :  { %137 = vst [vmem:[#allocation0 + $0x8] sm:$0xf] %v430_v29  ;;  %v176_v32 = vld [vmem:[#allocation0 + $0x43] ss:$8 sm:$0xf]   ;;  %vm267_vm6 = vcmask 97280  }
  0x16   :  { %v240_v33 = vld [vmem:[#allocation0 + $0xa3] ss:$8 sm:$0xf]   ;;  %139 = vst [vmem:[#allocation0] sm:$0xf] %v138_v31  ;;  %v180_v34 = vsel %vm142_vm0, %v178_v28, %v176_v32  ;;  %vm270_vm7 = vcmask 1048112  }
  0x17   :  { %v192_v35 = vld [vmem:[#allocation0 + $0x43] ss:$8 sm:$0xf]   ;;  %v182_v37 = vsel %vm181_vm1, %v180_v34, %v174_v30  ;;  %v252_v43 = vld [vmem:[#allocation0 + $0x41] ss:$8 sm:$0xf]  }
  0x18   :  { %v194_v36 = vld [vmem:[#allocation0 + $0x43] ss:$8 sm:$0xf0]   ;;  %183 = vrot.lane.b32.xlu0 %v182_v37, %s461_s0  ;;  %v254_v45 = vld [vmem:[#allocation0 + $0x41] ss:$8 sm:$0xf0]  }
  0x19   :  { %v238_v38 = vld [vmem:[#allocation0 + $0xc3] ss:$8 sm:$0xf]   ;;  %v260_v46 = vld [vmem:[#allocation0 + $0x1] ss:$8 sm:$0xf0]   ;;  %v196_v48 = vsel %vm142_vm0, %v194_v36, %v192_v35  ;;  %v256_v57 = vsel %vm142_vm0, %v254_v45, %v252_v43 }
  0x1a   :  { %v222_v39 = vld [vmem:[#allocation0 + $0x63] ss:$8 sm:$0xf0]   ;;  %v242_v40 = vsel %vm181_vm1, %v240_v33, %v238_v38  ;;  %v279_v47 = vld [vmem:[#allocation0 + $0xc1] ss:$8 sm:$0xf]  }
  0x1b   :  { %v200_v41 = vld [vmem:[#allocation0 + $0x3] ss:$8 sm:$0xf0]   ;;  %243 = vrot.lane.b32.xlu1 %v242_v40, %s461_s0  ;;  %v275_v50 = vld [vmem:[#allocation0 + $0x1] ss:$8 sm:$0xf0]  }
  0x1c   :  { %v220_v42 = vld [vmem:[#allocation0 + $0xc3] ss:$8 sm:$0xf]   ;;  %v281_v51 = vld [vmem:[#allocation0 + $0x61] ss:$8 sm:$0xf0]  }
  0x1d   :  { %v216_v44 = vld [vmem:[#allocation0 + $0x3] ss:$8 sm:$0xf0]   ;;  %v224_v49 = vsel %vm142_vm0, %v222_v39, %v220_v42  ;;  %v297_v54 = vld [vmem:[#allocation0 + $0xc1] ss:$8 sm:$0xf]   ;;  %v283_v60 = vsel %vm142_vm0, %v281_v51, %v279_v47 }
  0x1e   :  { %v198_v52 = vld [vmem:[#allocation0 + $0x3] ss:$8 sm:$0xf]   ;;  %v258_v58 = vld [vmem:[#allocation0 + $0x1] ss:$8 sm:$0xf]  }
  0x1f   :  { %v214_v53 = vld [vmem:[#allocation0 + $0x3] ss:$8 sm:$0xf]   ;;  %v202_v55 = vsel %vm142_vm0, %v200_v41, %v198_v52  ;;  %v273_v59 = vld [vmem:[#allocation0 + $0x1] ss:$8 sm:$0xf]   ;;  %v262_v63 = vsel %vm142_vm0, %v260_v46, %v258_v58 }
  0x20   :  { %v218_v56 = vsel %vm142_vm0, %v216_v44, %v214_v53  ;;  %v204_v61 = vsel %vm181_vm1, %v202_v55, %v196_v48  ;;  %v277_v0 = vsel %vm142_vm0, %v275_v50, %v273_v59  ;;  %v299_v1 = vld [vmem:[#allocation0 + $0x61] ss:$8 sm:$0xf0]   ;;  %v264_v4 = vsel %vm263_vm2, %v262_v63, %v256_v57  ;;  %v337_v10 = vld [vmem:[#allocation0 + $0x42] ss:$8 sm:$0xf]  }
  0x21   :  { %v226_v62 = vsel %vm181_vm1, %v224_v49, %v218_v56  ;;  %v303_v2 = vld [vmem:[#allocation0 + $0xa1] ss:$8 sm:$0xf]   ;;  %205 = vrot.lane.b32.xlu0 %v204_v61, %s461_s0  ;;  %v285_v5 = vsel %vm263_vm2, %v283_v60, %v277_v0  ;;  %v301_v6 = vsel %vm142_vm0, %v299_v1, %v297_v54  ;;  %v339_v11 = vld [vmem:[#allocation0 + $0x42] ss:$8 sm:$0xf0]  }
  0x22   :  { %227 = vrot.lane.b32.xlu1 %v226_v62, %s461_s0  ;;  %v305_v3 = vld [vmem:[#allocation0 + $0x21] ss:$8 sm:$0xf0]   ;;  %v348_v12 = vld [vmem:[#allocation0 + $0x2] ss:$8 sm:$0xf]   ;;  %v341_v24 = vsel %vm142_vm0, %v339_v11, %v337_v10 }
  0x23   :  { %v307_v7 = vsel %vm142_vm0, %v305_v3, %v303_v2  ;;  %v323_v8 = vld [vmem:[#allocation0 + $0xa1] ss:$8 sm:$0xf]   ;;  %v140_v15 = vld [vmem:[#allocation0] ss:$8 sm:$0xf]  }
  0x24   :  { %v325_v9 = vld [vmem:[#allocation0 + $0x61] ss:$8 sm:$0xf]   ;;  %v309_v13 = vsel %vm263_vm2, %v307_v7, %v301_v6  ;;  %v350_v16 = vld [vmem:[#allocation0 + $0x2] ss:$8 sm:$0xf0]  }
  0x25   :  { %265 = vrot.lane.b32.xlu0 %v264_v4, %s462_s4  ;;  %v327_v14 = vsel %vm263_vm2, %v325_v9, %v323_v8  ;;  %v141_v17 = vld [vmem:[#allocation0] ss:$8 sm:$0xf0]   ;;  %v352_v25 = vsel %vm142_vm0, %v350_v16, %v348_v12  ;;  %v359_v27 = vld [vmem:[#allocation0 + $0xc2] ss:$8 sm:$0xf]  }
  0x26   :  { %286 = vrot.lane.b32.xlu1 %v285_v5, %s462_s4  ;;  %v143_v18 = vsel %vm142_vm0, %v141_v17, %v140_v15  ;;  %v156_v19 = vld [vmem:[#allocation0 + $0x80] ss:$8 sm:$0xf]   ;;  %v361_v28 = vld [vmem:[#allocation0 + $0x62] ss:$8 sm:$0xf0]  }
  0x27   :  { %v158_v20 = vld [vmem:[#allocation0 + $0x80] ss:$8 sm:$0xf0]   ;;  %145 = vst.msk [vmem:[%s680_s1] sm:$0xff] %vm144_vm3, %v143_v18   ;;  %v363_v30 = vsel %vm142_vm0, %v361_v28, %v359_v27  ;;  %vm344_vm8 = vcmask 670816  }
  0x28   :  { %v160_v21 = vsel %vm142_vm0, %v158_v20, %v156_v19  ;;  %v165_v22 = vld [vmem:[#allocation0 + $0xc0] ss:$8 sm:$0xf]   ;;  %v372_v31 = vld [vmem:[#allocation0 + $0xa2] ss:$8 sm:$0xf]  }
  0x29   :  { %310 = vrot.lane.b32.xlu0 %v309_v13, %s462_s4  ;;  %v147_v23 = vld [vmem:[#allocation0 + $0x40] ss:$8 sm:$0xf]   ;;  %432 = vst.msk [vmem:[%s680_s1 + $0x30] sm:$0xff] %vm144_vm3, %v160_v21   ;;  %433 = vst.msk [vmem:[%s680_s1 + $0x48] sm:$0xf] %vm144_vm3, %v165_v22  }
  0x2a   :  { %328 = vrot.lane.b32.xlu1 %v327_v14, %s462_s4  ;;  %v149_v26 = vld [vmem:[#allocation0 + $0x40] ss:$8 sm:$0xf0]  }
  0x2b   :  { %v151_v29 = vsel %vm142_vm0, %v149_v26, %v147_v23 }
  0x2c   :  { %431 = vst.msk [vmem:[%s680_s1 + $0x18] sm:$0xff] %vm144_vm3, %v151_v29  }
  0x2d   :  { %342 = vrot.lane.b32.xlu0 %v341_v24, %s463_s13 }
  0x2e   :  { %353 = vrot.lane.b32.xlu1 %v352_v25, %s463_s13 }
  0x31   :  { %364 = vrot.lane.b32.xlu0 %v363_v30, %s463_s13 }
  0x32   :  { %373 = vrot.lane.b32.xlu1 %v372_v31, %s463_s13 }
  0x8a   :  { %v184_v32 = vpop.permute.xlu0 %183  }
  0x8b   :  { %434 = vst.msk [vmem:[%s680_s1 + $0x40] sm:$0xff] %vm185_vm4, %v184_v32  }
  0x8c   :  { %435 = vst.msk [vmem:[%s680_s1 + $0x20] sm:$0xff] %vm188_vm5, %v184_v32  }
  0x8d   :  { %v244_v33 = vpop.permute.xlu1 %243  }
  0x8e   :  { %441 = vst.msk [vmem:[%s680_s1 + $0x58] sm:$0xf] %vm185_vm4, %v244_v33  }
  0x8f   :  { %442 = vst.msk [vmem:[%s680_s1 + $0x3c] sm:$0xf] %vm188_vm5, %v244_v33  }
  0x93   :  { %v206_v34 = vpop.permute.xlu0 %205  }
  0x94   :  { %v228_v35 = vpop.permute.xlu1 %227   ;;  %436 = vst.msk [vmem:[%s680_s1 + $0x28] sm:$0xff] %vm185_vm4, %v206_v34  }
  0x95   :  { %437 = vst.msk [vmem:[%s680_s1 + $0x8] sm:$0xff] %vm188_vm5, %v206_v34   ;;  %439 = vst.msk [vmem:[%s680_s1 + $0x50] sm:$0xf] %vm188_vm5, %v228_v35  }
  0x96   :  { %438 = vst.msk [vmem:[%s680_s1 + $0x10] sm:$0xff] %vm185_vm4, %v228_v35  }
  0x97   :  { %440 = vst.msk [vmem:[%s680_s1 + $0x34] sm:$0xf0] %vm188_vm5, %v228_v35   ;;  %v266_v36 = vpop.permute.xlu0 %265  }
  0x98   :  { %v287_v37 = vpop.permute.xlu1 %286   ;;  %443 = vst.msk [vmem:[%s680_s1 + $0x20] sm:$0xff] %vm267_vm6, %v266_v36  }
  0x99   :  { %271 = vst.msk [vmem:[%s680_s1] sm:$0xff] %vm270_vm7, %v266_v36   ;;  %445 = vst.msk [vmem:[%s680_s1 + $0x48] sm:$0xf] %vm270_vm7, %v287_v37  }
  0x9a   :  { %444 = vst.msk [vmem:[%s680_s1 + $0x8] sm:$0xff] %vm267_vm6, %v287_v37  }
  0x9b   :  { %446 = vst.msk [vmem:[%s680_s1 + $0x2c] sm:$0xf0] %vm270_vm7, %v287_v37   ;;  %v311_v38 = vpop.permute.xlu0 %310  }
  0x9c   :  { %v329_v39 = vpop.permute.xlu1 %328   ;;  %449 = vst.msk [vmem:[%s680_s1 + $0x34] sm:$0xf] %vm270_vm7, %v311_v38   ;;  %450 = vst.msk [vmem:[%s680_s1 + $0x14] sm:$0xf0] %vm270_vm7, %v311_v38  }
  0x9d   :  { %447 = vst.msk [vmem:[%s680_s1 + $0x50] sm:$0xf] %vm267_vm6, %v311_v38   ;;  %448 = vst.msk [vmem:[%s680_s1 + $0x34] sm:$0xf0] %vm267_vm6, %v311_v38  }
  0x9e   :  { %451 = vst.msk [vmem:[%s680_s1 + $0x3c] sm:$0xf] %vm267_vm6, %v329_v39  }
  0x9f   :  { %452 = vst.msk [vmem:[%s680_s1 + $0x1c] sm:$0xf] %vm270_vm7, %v329_v39   ;;  %v343_v40 = vpop.permute.xlu0 %342  }
  0xa0   :  { %v354_v41 = vpop.permute.xlu1 %353   ;;  %453 = vst.msk [vmem:[%s680_s1 + $0x20] sm:$0xff] %vm344_vm8, %v343_v40  }
  0xa1   :  { %454 = vst.msk [vmem:[%s680_s1 + $0x8] sm:$0xff] %vm344_vm8, %v354_v41  }
  0xa3   :  { %v365_v42 = vpop.permute.xlu0 %364  }
  0xa4   :  { %v374_v43 = vpop.permute.xlu1 %373   ;;  %455 = vst.msk [vmem:[%s680_s1 + $0x50] sm:$0xf] %vm344_vm8, %v365_v42   ;;  %456 = vst.msk [vmem:[%s680_s1 + $0x34] sm:$0xf0] %vm344_vm8, %v365_v42  }
  0xa5   :  { %457 = vst.msk [vmem:[%s680_s1 + $0x3c] sm:$0xf] %vm344_vm8, %v374_v43  }

// kernel: tile.16
= control target key start
LH: loop header
LB: loop body
LE: loop exit
PB: predicated region body
PF: predicated region fallthrough
CT: control target
= control target key end

     0   :  { %s22_s0 = inlined_call_operand.vmem [shape: f32[10], index: 0, kind: input, shape index: {}]   ;;  %s23_s1 = inlined_call_operand.vmem [shape: f32[4,10], index: 1, kind: output, shape index: {}]  }
   0x1   :  { %v4_v0 = vld [vmem:[%s22_s0] ss:$0 sm:$0xff] }
   0x2   :  { %5 = vst [vmem:[%s23_s1] sm:$0xf] %v4_v0 }

// kernel: tile.17
= control target key start
LH: loop header
LB: loop body
LE: loop exit
PB: predicated region body
PF: predicated region fallthrough
CT: control target
= control target key end

     0   :  { %vm7_vm0 = vcmask 80896   ;;  %s37_s8 = smov 10   ;;  %s38_s9 = smov 20   ;;  %vm13_vm1 = vcmask 326896   ;;  %vm19_vm2 = vcmask 244896   ;;  %vm25_vm3 = vcmask 162896   ;;  %s55_s0 = inlined_call_operand.vmem [shape: f32[4,10], index: 0, kind: input, shape index: {}]   ;;  %s56_s1 = inlined_call_operand.vmem [shape: f32[1,40], index: 1, kind: output, shape index: {}]  }
   0x1   :  { %v4_v0 = vld [vmem:[%s55_s0] sm:$0xf]  ;;  %s36_s0 = smov 30  }
   0x2   :  { %5 = vst [vmem:[#allocation1] sm:$0xf] %v4_v0 }
   0x9   :  { %v10_v1 = vld [vmem:[#allocation1 + $0x3] sm:$0x1]   ;;  %v22_v2 = vld [vmem:[#allocation1 + $0x1] sm:$0x1]   ;;  %v6_v3 = vld [vmem:[#allocation1] sm:$0x1]  }
   0xa   :  { %11 = vrot.lane.b32.xlu0 %v10_v1, %s36_s0  ;;  %23 = vrot.lane.b32.xlu1 %v22_v2, %s37_s8  ;;  %v16_v4 = vld [vmem:[#allocation1 + $0x2] sm:$0x1]   ;;  %8 = vst.msk [vmem:[#allocation0] sm:$0x1] %vm7_vm0, %v6_v3  }
   0xe   :  { %17 = vrot.lane.b32.xlu0 %v16_v4, %s38_s9 }
  0x7c   :  { %v12_v5 = vpop.permute.xlu0 %11   ;;  %v24_v6 = vpop.permute.xlu1 %23  }
  0x7d   :  { %14 = vst.msk [vmem:[#allocation0] sm:$0x1] %vm13_vm1, %v12_v5  }
  0x80   :  { %v18_v7 = vpop.permute.xlu0 %17  }
  0x81   :  { %20 = vst.msk [vmem:[#allocation0] sm:$0x1] %vm19_vm2, %v18_v7  }
  0x82   :  { %26 = vst.msk [vmem:[#allocation0] sm:$0x1] %vm25_vm3, %v24_v6  }
  0x89   :  { %v30_v8 = vld [vmem:[#allocation0] sm:$0x1] }
  0x8a   :  { %32 = vst [vmem:[%s56_s1] sm:$0x1] %v30_v8 }

// kernel: net_forward.1
= control target key start
LH: loop header
LB: loop body
LE: loop exit
PB: predicated region body
PF: predicated region fallthrough
CT: control target
= control target key end

     0   :  { %s7003_s0 = inlined_call_operand.vmem [shape: f32[2,30,120], index: 0, kind: input, shape index: {}]   ;;  %s7004_s1 = inlined_call_operand.vmem [shape: f32[18], index: 1, kind: input, shape index: {}]   ;;  %s7005_s2 = inlined_call_operand.vmem [shape: f32[2], index: 2, kind: input, shape index: {}]   ;;  %s7006_s3 = inlined_call_operand.vmem [shape: f32[72], index: 3, kind: input, shape index: {}]   ;;  %s7007_s4 = inlined_call_operand.vmem [shape: f32[4], index: 4, kind: input, shape index: {}]   ;;  %s7008_s5 = inlined_call_operand.vmem [shape: f32[117,64], index: 5, kind: input, shape index: {}]   ;;  %s7009_s6 = inlined_call_operand.vmem [shape: f32[16,27], index: 6, kind: input, shape index: {}]   ;;  %s7010_s7 = inlined_call_operand.vmem [shape: f32[61,28], index: 7, kind: input, shape index: {}]   ;;  %s7011_s8 = inlined_call_operand.vmem [shape: f32[4,28,13], index: 8, kind: input, shape index: {}]   ;;  %s7012_s9 = inlined_call_operand.vmem [shape: f32[28,280], index: 9, kind: input, shape index: {}]   ;;  %s7013_s10 = inlined_call_operand.vmem [shape: f32[28,280], index: 10, kind: input, shape index: {}]   ;;  %s7014_s11 = inlined_call_operand.vmem [shape: f32[280,40], index: 11, kind: input, shape index: {}]   ;;  %s7015_s12 = inlined_call_operand.vmem [shape: f32[1,40], index: 12, kind: input, shape index: {}]   ;;  %s7016_s13 = inlined_call_operand.vmem [shape: f32[2,1,40], index: 13, kind: output, shape index: {}]  }
   0x1   :  { %7077 = sst [smem:[#allocation34_spill]] %s7003_s0 }
   0x2   :  { %7078 = sst [smem:[#allocation35_spill]] %s7004_s1 }
   0x3   :  { %7079 = sst [smem:[#allocation36_spill]] %s7005_s2 }
   0x4   :  { %7080 = sst [smem:[#allocation37_spill]] %s7006_s3 }
   0x5   :  { %7081 = sst [smem:[#allocation38_spill]] %s7007_s4 }
   0x6   :  { %7082 = sst [smem:[#allocation39_spill]] %s7008_s5 }
   0x7   :  { %7083 = sst [smem:[#allocation40_spill]] %s7009_s6 }
   0x8   :  { %7084 = sst [smem:[#allocation41_spill]] %s7010_s7 }
   0x9   :  { %7085 = sst [smem:[#allocation42_spill]] %s7012_s9 }
   0xa   :  { %7086 = sst [smem:[#allocation43_spill]] %s7013_s10 }
   0xb   :  { %7087 = sst [smem:[#allocation44_spill]] %s7014_s11 }
   0xc   :  { %7088 = sst [smem:[#allocation45_spill]] %s7015_s12 }
   0xd   :  { %7089 = sst [smem:[#allocation46_spill]] %s7016_s13 }
   0xe   :  { %18 = vsyncpa [#allocation3], 0 }
   0xf   :  { %19 = vsyncpa [#allocation5], 0 }
  0x10   :  { %20 = vsyncpa [#allocation8], 0  ;;  %s5012_s25 = smov 0  }
  0x11 LB: > { %7090 = sst [smem:[#allocation12_spill]] %s4932_s25  ;;  %s7091_s2 = sld [smem:[#allocation36_spill]]  ;;  %s4932_s25 = sphi %s5012_s25, %s26_s25  }
  0x12   : > { %s5021_s29 = sadd.s32 4294967295, %s4932_s25   ;;  %p3925_p0 = scmp.ge.s32.totalorder %s4932_s25, 1 }
  0x13   : > { %p335_p1 = scmp.lt.s32.totalorder %s4932_s25, 3  ;;  %p4800_p2 = scmp.eq.s32.totalorder %s5021_s29, 0 }
  0x14   : > { %s7093_s1 = sld [smem:[#allocation35_spill]]  ;;  %s7094_s3 = sld [smem:[#allocation37_spill]] }
  0x15   : > { %p5026_p3 = pnand %p3925_p0, %p335_p1  ;;  %s7096_s4 = sld [smem:[#allocation38_spill]] }
  0x17   : > { %s359_s28 = sshll.u32 %s7091_s2, 4  ;;  %p4787_p4 = pneg %p5026_p3  ;;  %s360_s28 = int_to_ptr.vmem [resolvable:$true] %s359_s28 }
  0x18   : > { %s4854_s24 = scalar_lea.vmem %s360_s28, 16  ;;  %p4862_p10 = scmp.lt.s32.totalorder %s360_s28, %s360_s28 }
  0x19   : > { %p5044_p5 = pnand %p4800_p2, %p4787_p4  ;;  %p4855_p6 = scmp.ne.s32.totalorder %s360_s28, %s4854_s24 }
  0x1a   : > { %s348_s16 = sshll.u32 %s7093_s1, 4  ;;  %s370_s19 = sshll.u32 %s7094_s3, 4  ;;  %s5033_s16 = int_to_ptr.vmem [resolvable:$true] %s348_s16  ;;  %s5040_s19 = int_to_ptr.vmem [resolvable:$true] %s370_s19 }
  0x1b   : > { %s381_s23 = sshll.u32 %s7096_s4, 4  ;;  %p4856_p7 = pneg %p5044_p5  ;;  %s5051_s23 = int_to_ptr.vmem [resolvable:$true] %s381_s23 }
  0x1c   : > { %p4863_p11 = scmp.lt.s32.totalorder %s4854_s24, %s4854_s24 }
  0x1d   : > { %p4857_p8 = pnand %p4856_p7, %p4855_p6 }
  0x1e   : > { %p4864_p12 = por %p4863_p11, %p4862_p10 }
  0x1f   : > { %p4858_p9 = pneg %p4857_p8 }
  0x21   : > { %p4865_p13 = pnand %p4864_p12, %p4858_p9 }
  0x23   : > { %4868 = shalt.err (!%p4865_p13)
}
  0x24   : > { %s4934_s26 = smov [#allocation4]   ;;  %s4869_s27 = scalar_lea.vmem %s5033_s16, 16 }
  0x25   : > { %4793 = dma.vmem_to_smem (!%p5044_p5), %s360_s28, 16, %s4934_s26, [#allocation5]  }
  0x26   : > { %p4870_p0 = scmp.ne.s32.totalorder %s5033_s16, %s4869_s27  ;;  %p4877_p6 = scmp.lt.s32.totalorder %s5033_s16, %s5033_s16 }
  0x27   : > { %p4878_p8 = scmp.lt.s32.totalorder %s4869_s27, %s4869_s27 }
  0x28   : > { %p4872_p1 = pnand %p4870_p0, %p4856_p7 }
  0x29   : > { %p4879_p10 = por %p4878_p8, %p4877_p6 }
  0x2a   : > { %p4873_p4 = pneg %p4872_p1 }
  0x2c   : > { %p4880_p9 = pnand %p4879_p10, %p4873_p4 }
  0x2e   : > { %4883 = shalt.err (!%p4880_p9)
}
  0x2f   : > { %s4935_s14 = smov [#allocation2]   ;;  %s4884_s28 = scalar_lea.vmem %s5040_s19, 16 }
  0x30   : > { %4790 = dma.vmem_to_smem (!%p5044_p5), %s5033_s16, 16, %s4935_s14, [#allocation3]  }
  0x31   : > { %p4885_p11 = scmp.ne.s32.totalorder %s5040_s19, %s4884_s28  ;;  %p4892_p0 = scmp.lt.s32.totalorder %s5040_s19, %s5040_s19 }
  0x32   : > { %p4893_p1 = scmp.lt.s32.totalorder %s4884_s28, %s4884_s28 }
  0x33   : > { %p4887_p12 = pnand %p4885_p11, %p4856_p7 }
  0x34   : > { %p4894_p4 = por %p4893_p1, %p4892_p0 }
  0x35   : > { %p4888_p13 = pneg %p4887_p12 }
  0x37   : > { %p4895_p6 = pnand %p4894_p4, %p4888_p13 }
  0x39   : > { %4898 = shalt.err (!%p4895_p6)
}
  0x3a   : > { %s4936_s15 = smov [#allocation6]   ;;  %s4899_s16 = scalar_lea.vmem %s5051_s23, 16 }
  0x3b   : > { %4796 = dma.vmem_to_smem (!%p5044_p5), %s5040_s19, 16, %s4936_s15, [#allocation5]  }
  0x3c   : > { %p4900_p8 = scmp.ne.s32.totalorder %s5051_s23, %s4899_s16  ;;  %p4907_p11 = scmp.lt.s32.totalorder %s5051_s23, %s5051_s23 }
  0x3d   : > { %p4908_p12 = scmp.lt.s32.totalorder %s4899_s16, %s4899_s16 }
  0x3e   : > { %p4902_p10 = pnand %p4900_p8, %p4856_p7 }
  0x3f   : > { %p4909_p13 = por %p4908_p12, %p4907_p11 }
  0x40   : > { %p4903_p9 = pneg %p4902_p10 }
  0x42   : > { %p4910_p0 = pnand %p4909_p13, %p4903_p9 }
  0x44   : > { %4913 = shalt.err (!%p4910_p0)
}
  0x45   : > { %s4937_s17 = smov [#allocation7]   ;;  %426 = sbr.rel (%p5026_p3) target bundleno = 2160 (0x870), region = 72 }
  0x46   : > { %4799 = dma.vmem_to_smem (!%p5044_p5), %s5051_s23, 16, %s4937_s17, [#allocation8]  }
  0x4c   : > { %4919 = dma.done.wait (%p4800_p2), [#allocation3], 16  }
  0x4d   : > { %4921 = vsyncadd (%p4800_p2), [#allocation3], 4294967280 }
  0x4e   : > { %4923 = dma.done.wait (%p4800_p2), [#allocation5], 32  }
  0x4f   : > { %4925 = vsyncadd (%p4800_p2), [#allocation5], 4294967264 }
  0x50   : > { %4927 = dma.done.wait (%p4800_p2), [#allocation8], 16  }
  0x51   : > { %4929 = vsyncadd (%p4800_p2), [#allocation8], 4294967280 }
  0x52   : > { %444 = sfence }
  0x53   : > { %p481_p3 = scmp.lt.s32.totalorder %s5021_s29, 1  ;;  %s3938_s30 = sld [smem:[#allocation2 + $0x1]]  ;;  %vm591_vm0 = vcmask 1046528   ;;  %vm665_vm1 = vcmask 1045504   ;;  %vm1051_vm2 = vcmask 220160   ;;  %vm1058_vm3 = vcmask 1042432  }
  0x54   : > { %s3939_s18 = sld [smem:[#allocation2 + $0x2]]  ;;  %s3941_s19 = sld [smem:[#allocation2 + $0x4]]  ;;  %vm4940_vm4 = vmmov 1   ;;  %vm1144_vm6 = vcmask 1044480   ;;  %vm1137_vm7 = vcmask 957440   ;;  %vm2492_vm8 = vcmask 105472  }
  0x55   : > { %s7215_s29 = smov (!%p481_p3, %s5021_s29), 1  ;;  %s7098_s0 = sld [smem:[#allocation34_spill]]  ;;  %vm5411_vm5 = vmpackc.low %vm1058_vm3, %vm4940_vm4  ;;  %vm3390_vm10 = vcmask 1043456   ;;  %vm2717_vm12 = vcmask 498688   ;;  %vm3377_vm13 = vcmask 228352   ;;  %vm3633_vm14 = vcmask 195584  }
  0x56   : > { %7097 = sst [smem:[#allocation13_spill]] %s7215_s29  ;;  %s4111_s20 = sshll.u32 %s7215_s29, 5  ;;  %vm6608_vm9 = vmpackc.low %vm1144_vm6, %vm4940_vm4  ;;  %vm3816_vm15 = vcmask 326656  }
  0x57   : > { %s3942_s24 = sld [smem:[#allocation2 + $0x5]]  ;;  %s7019_s26 = smov 127   ;;  %vm6763_vm11 = vmpackc.low %vm3390_vm10, %vm4940_vm4 }
  0x58   : > { %s7017_s27 = smov 126   ;;  %s3944_s14 = sld [smem:[#allocation2 + $0x7]] }
  0x59   : > { %v500_v1 = vstv %s3938_s30  ;;  %s3945_s28 = sld [smem:[#allocation2 + $0x8]]  ;;  %s3947_s15 = sld [smem:[#allocation2 + $0xa]] }
  0x5a   : > { %v506_v6 = vstv %s3939_s18  ;;  %v518_v9 = vstv %s3941_s19  ;;  %s3948_s16 = sld [smem:[#allocation2 + $0xb]]  ;;  %s3950_s17 = sld [smem:[#allocation2 + $0xd]] }
  0x5b   : > { %s485_s23 = scalar_lea.vmem %s7098_s0, %s4111_s20  ;;  %s3951_s30 = sld [smem:[#allocation2 + $0xe]] }
  0x5c   : > { %v5112_v0 = vld [vmem:[%s485_s23 + $0x10] sm:$0xff]  ;;  %v5114_v2 = vld [vmem:[%s485_s23] sm:$0xff]  ;;  %v5116_v3 = vld [vmem:[%s485_s23 + $0x8] sm:$0xff]  ;;  %s3953_s18 = sld [smem:[#allocation2 + $0x10]]  ;;  %s3954_s19 = sld [smem:[#allocation2 + $0x11]] }
  0x5d   : > { %v503_v4 = vmul.f32 %v500_v1, %v5112_v0  ;;  %v501_v5 = vmul.f32 %v500_v1, %v5114_v2  ;;  %v507_v7 = vmul.f32 %v506_v6, %v5114_v2  ;;  %v502_v8 = vmul.f32 %v500_v1, %v5116_v3  ;;  %v5128_v12 = vld [vmem:[%s485_s23 + $0x18] sm:$0x3f]  ;;  %s3940_s20 = sld [smem:[#allocation2 + $0x3]]  ;;  %s493_s21 = sld [smem:[#allocation2]] }
  0x5e   : > { %v509_v10 = vmul.f32 %v506_v6, %v5112_v0  ;;  %v508_v11 = vmul.f32 %v506_v6, %v5116_v3  ;;  %v520_v13 = vmul.f32 %v518_v9, %v5116_v3  ;;  %v521_v14 = vmul.f32 %v518_v9, %v5112_v0  ;;  %s3943_s22 = sld [smem:[#allocation2 + $0x6]]  ;;  %s735_s23 = sld [smem:[#allocation4]] }
  0x5f   : > { %555 = vrot.lane.b32.xlu1 %v503_v4, %s7019_s26  ;;  %551 = vrot.lane.b32.xlu0 %v501_v5, %s7019_s26  ;;  %v519_v15 = vmul.f32 %v518_v9, %v5114_v2  ;;  %v524_v16 = vstv %s3942_s24  ;;  %v510_v17 = vmul.f32 %v506_v6, %v5128_v12  ;;  %v504_v18 = vmul.f32 %v500_v1, %v5128_v12  ;;  %s3946_s24 = sld [smem:[#allocation2 + $0x9]]  ;;  %s7100_s5 = sld [smem:[#allocation39_spill]] }
  0x60   : > { %v525_v19 = vmul.f32 %v524_v16, %v5114_v2  ;;  %v526_v20 = vmul.f32 %v524_v16, %v5116_v3  ;;  %v612_v21 = vrot.slane %v520_v13, 1  ;;  %v614_v22 = vrot.slane %v521_v14, 1  ;;  %s7099_s6 = sld [smem:[#allocation40_spill]]  ;;  %s5492_s0 = sld [smem:[#allocation6 + $0x1a]] }
  0x61   : > { %v611_v23 = vrot.slane %v519_v15, 1  ;;  %v522_v24 = vmul.f32 %v518_v9, %v5128_v12  ;;  %v527_v26 = vmul.f32 %v524_v16, %v5112_v0  ;;  %v528_v27 = vmul.f32 %v524_v16, %v5128_v12  ;;  %s5494_s1 = sld [smem:[#allocation6 + $0x28]]  ;;  %s5496_s2 = sld [smem:[#allocation6 + $0x29]] }
  0x62   : > { %v638_v25 = vrot.slane %v525_v19, 1  ;;  %v615_v28 = vsel %vm591_vm0, %v612_v21, %v614_v22  ;;  %v639_v30 = vrot.slane %v526_v20, 1  ;;  %v536_v36 = vstv %s3944_s14  ;;  %s3949_s14 = sld [smem:[#allocation2 + $0xc]]  ;;  %s5498_s3 = sld [smem:[#allocation6 + $0x2b]] }
  0x63   : > { %571 = vrot.lane.b32.xlu1 %v507_v7, %s7017_s27  ;;  %553 = vrot.lane.b32.xlu0 %v502_v8, %s7019_s26  ;;  %v613_v29 = vsel %vm591_vm0, %v611_v23, %v612_v21  ;;  %v616_v31 = vrot.slane %v522_v24, 1  ;;  %v641_v32 = vrot.slane %v527_v26, 1  ;;  %v643_v35 = vrot.slane %v528_v27, 1  ;;  %s5500_s4 = sld [smem:[#allocation6 + $0x2c]]  ;;  %s5506_s25 = sld [smem:[#allocation6 + $0x3d]] }
  0x64   : > { %v640_v33 = vsel %vm591_vm0, %v638_v25, %v639_v30  ;;  %v538_v38 = vmul.f32 %v536_v36, %v5116_v3  ;;  %v539_v40 = vmul.f32 %v536_v36, %v5112_v0  ;;  %v537_v41 = vmul.f32 %v536_v36, %v5114_v2  ;;  %s5508_s13 = sld [smem:[#allocation6 + $0x3]]  ;;  %s5510_s12 = sld [smem:[#allocation6 + $0x3e]] }
  0x65   : > { %v617_v34 = vsel %vm591_vm0, %v614_v22, %v616_v31  ;;  %v642_v37 = vsel %vm591_vm0, %v639_v30, %v641_v32  ;;  %v644_v39 = vsel %vm591_vm0, %v641_v32, %v643_v35  ;;  %v542_v42 = vstv %s3945_s28  ;;  %s5468_s28 = sld [smem:[#allocation6 + $0x14]]  ;;  %s5512_s29 = sld [smem:[#allocation6 + $0x6]] }
  0x66   : > { %v686_v43 = vrot.slane %v538_v38, 2  ;;  %v543_v44 = vmul.f32 %v542_v42, %v5114_v2  ;;  %v688_v45 = vrot.slane %v539_v40, 2  ;;  %v685_v46 = vrot.slane %v537_v41, 2  ;;  %s5514_s10 = sld [smem:[#allocation6 + $0x15]]  ;;  %s5516_s11 = sld [smem:[#allocation6 + $0x18]] }
  0x67   : > { %575 = vrot.lane.b32.xlu1 %v509_v10, %s7017_s27  ;;  %573 = vrot.lane.b32.xlu0 %v508_v11, %s7017_s27  ;;  %v544_v47 = vmul.f32 %v542_v42, %v5116_v3  ;;  %v540_v48 = vmul.f32 %v536_v36, %v5128_v12  ;;  %v545_v50 = vmul.f32 %v542_v42, %v5112_v0  ;;  %v752_v62 = vstv %s3947_s15  ;;  %s5470_s15 = sld [smem:[#allocation6 + $0x25]]  ;;  %s5518_s9 = sld [smem:[#allocation6 + $0x27]] }
  0x68   : > { %v712_v49 = vrot.slane %v543_v44, 2  ;;  %v546_v51 = vmul.f32 %v542_v42, %v5128_v12  ;;  %v689_v52 = vsel %vm665_vm1, %v686_v43, %v688_v45  ;;  %v687_v53 = vsel %vm665_vm1, %v685_v46, %v686_v43  ;;  %s5520_s7 = sld [smem:[#allocation6 + $0x2a]] }
  0x69   : > { %v713_v54 = vrot.slane %v544_v47, 2  ;;  %v690_v55 = vrot.slane %v540_v48, 2  ;;  %v715_v58 = vrot.slane %v545_v50, 2  ;;  %v754_v63 = vmul.f32 %v752_v62, %v5116_v3 }
  0x6a   : > { %v717_v59 = vrot.slane %v546_v51, 2  ;;  %v753_v1 = vmul.f32 %v752_v62, %v5114_v2  ;;  %v758_v4 = vstv %s3948_s16  ;;  %v755_v6 = vmul.f32 %v752_v62, %v5112_v0  ;;  %s3952_s16 = sld [smem:[#allocation2 + $0xf]] }
  0x6b   : > { %577 = vrot.lane.b32.xlu1 %v510_v17, %s7017_s27  ;;  %557 = vrot.lane.b32.xlu0 %v504_v18, %s7019_s26  ;;  %v714_v56 = vsel %vm665_vm1, %v712_v49, %v713_v54  ;;  %v691_v57 = vsel %vm665_vm1, %v688_v45, %v690_v55  ;;  %v716_v61 = vsel %vm665_vm1, %v713_v54, %v715_v58  ;;  %v770_v7 = vstv %s3950_s17  ;;  %s3955_s17 = sld [smem:[#allocation4 + $0x1]] }
  0x6c   : > { %v718_v60 = vsel %vm665_vm1, %v715_v58, %v717_v59  ;;  %v759_v5 = vmul.f32 %v758_v4, %v5114_v2  ;;  %v761_v8 = vmul.f32 %v758_v4, %v5112_v0  ;;  %v760_v9 = vmul.f32 %v758_v4, %v5116_v3 }
  0x6d   : > { %v772_v10 = vmul.f32 %v770_v7, %v5116_v3  ;;  %v773_v11 = vmul.f32 %v770_v7, %v5112_v0  ;;  %v771_v13 = vmul.f32 %v770_v7, %v5114_v2  ;;  %v776_v14 = vstv %s3951_s30  ;;  %s5476_s30 = sld [smem:[#allocation6 + $0x38]] }
  0x6e   : > { %v762_v15 = vmul.f32 %v758_v4, %v5128_v12  ;;  %v756_v16 = vmul.f32 %v752_v62, %v5128_v12  ;;  %v777_v17 = vmul.f32 %v776_v14, %v5114_v2  ;;  %v778_v18 = vmul.f32 %v776_v14, %v5116_v3 }
  0x6f   : > { %620 = vrot.lane.b32.xlu1 %v615_v28, %s7019_s26  ;;  %618 = vrot.lane.b32.xlu0 %v613_v29, %s7019_s26  ;;  %v863_v19 = vrot.slane %v772_v10, 1  ;;  %v865_v20 = vrot.slane %v773_v11, 1  ;;  %v862_v21 = vrot.slane %v771_v13, 1  ;;  %v774_v22 = vmul.f32 %v770_v7, %v5128_v12 }
  0x70   : > { %v889_v23 = vrot.slane %v777_v17, 1  ;;  %v779_v24 = vmul.f32 %v776_v14, %v5112_v0  ;;  %v780_v25 = vmul.f32 %v776_v14, %v5128_v12  ;;  %v890_v28 = vrot.slane %v778_v18, 1 }
  0x71   : > { %v866_v26 = vsel %vm591_vm0, %v863_v19, %v865_v20  ;;  %v864_v27 = vsel %vm591_vm0, %v862_v21, %v863_v19  ;;  %v867_v29 = vrot.slane %v774_v22, 1  ;;  %v788_v30 = vstv %s3953_s18  ;;  %s5478_s18 = sld [smem:[#allocation6 + $0x4]] }
  0x72   : > { %v794_v36 = vstv %s3954_s19  ;;  %v789_v40 = vmul.f32 %v788_v30, %v5114_v2  ;;  %v792_v46 = vmul.f32 %v788_v30, %v5128_v12  ;;  %s5480_s19 = sld [smem:[#allocation6 + $0x5]] }
  0x73   : > { %645 = vrot.lane.b32.xlu1 %v640_v33, %s7017_s27  ;;  %622 = vrot.lane.b32.xlu0 %v617_v34, %s7019_s26  ;;  %v868_v32 = vsel %vm591_vm0, %v865_v20, %v867_v29  ;;  %v892_v33 = vrot.slane %v779_v24, 1  ;;  %v894_v34 = vrot.slane %v780_v25, 1  ;;  %v795_v42 = vmul.f32 %v794_v36, %v5114_v2 }
  0x74   : > { %v935_v44 = vrot.slane %v789_v40, 2  ;;  %v796_v45 = vmul.f32 %v794_v36, %v5116_v3  ;;  %v797_v48 = vmul.f32 %v794_v36, %v5112_v0  ;;  %v798_v49 = vmul.f32 %v794_v36, %v5128_v12 }
  0x75   : > { %v893_v38 = vsel %vm591_vm0, %v890_v28, %v892_v33  ;;  %v962_v47 = vrot.slane %v795_v42, 2 }
  0x77   : > { %649 = vrot.lane.b32.xlu1 %v644_v39, %s7017_s27  ;;  %647 = vrot.lane.b32.xlu0 %v642_v37, %s7017_s27  ;;  %v895_v37 = vsel %vm591_vm0, %v892_v33, %v894_v34  ;;  %v791_v39 = vmul.f32 %v788_v30, %v5112_v0 }
  0x79   : > { %v938_v43 = vrot.slane %v791_v39, 2 }
  0x7b   : > { %651 = vrot.lane.b32.xlu1 %v643_v35, %s7017_s27  ;;  %624 = vrot.lane.b32.xlu0 %v616_v31, %s7019_s26  ;;  %v891_v31 = vsel %vm591_vm0, %v889_v23, %v890_v28  ;;  %v790_v35 = vmul.f32 %v788_v30, %v5116_v3 }
  0x7d   : > { %v936_v41 = vrot.slane %v790_v35, 2 }
  0x7f   : > { %694 = vrot.lane.b32.xlu1 %v689_v52, %s7019_s26  ;;  %692 = vrot.lane.b32.xlu0 %v687_v53, %s7019_s26  ;;  %v939_v50 = vsel %vm665_vm1, %v936_v41, %v938_v43  ;;  %v937_v51 = vsel %vm665_vm1, %v935_v44, %v936_v41  ;;  %v963_v52 = vrot.slane %v796_v45, 2  ;;  %v940_v53 = vrot.slane %v792_v46, 2 }
  0x81   : > { %v964_v54 = vsel %vm665_vm1, %v962_v47, %v963_v52 }
  0x83   : > { %719 = vrot.lane.b32.xlu1 %v714_v56, %s7017_s27  ;;  %696 = vrot.lane.b32.xlu0 %v691_v57, %s7019_s26  ;;  %v965_v56 = vrot.slane %v797_v48, 2  ;;  %v967_v57 = vrot.slane %v798_v49, 2 }
  0x85   : > { %v968_v58 = vsel %vm665_vm1, %v965_v56, %v967_v57 }
  0x87   : > { %723 = vrot.lane.b32.xlu1 %v718_v60, %s7017_s27  ;;  %721 = vrot.lane.b32.xlu0 %v716_v61, %s7017_s27 }
  0x8b   : > { %725 = vrot.lane.b32.xlu1 %v717_v59, %s7017_s27  ;;  %698 = vrot.lane.b32.xlu0 %v690_v55, %s7019_s26  ;;  %v941_v55 = vsel %vm665_vm1, %v938_v43, %v940_v53  ;;  %v966_v59 = vsel %vm665_vm1, %v963_v52, %v965_v56 }
  0x8f   : > { %805 = vrot.lane.b32.xlu1 %v754_v63, %s7019_s26  ;;  %803 = vrot.lane.b32.xlu0 %v753_v1, %s7019_s26 }
  0x93   : > { %823 = vrot.lane.b32.xlu1 %v759_v5, %s7017_s27  ;;  %807 = vrot.lane.b32.xlu0 %v755_v6, %s7019_s26  ;;  %v512_v5 = vstv %s3940_s20  ;;  %v494_v6 = vstv %s493_s21  ;;  %s5482_s20 = sld [smem:[#allocation6 + $0x7]]  ;;  %s5484_s21 = sld [smem:[#allocation6 + $0x8]] }
  0x94   : > { %v513_v10 = vmul.f32 %v512_v5, %v5114_v2  ;;  %v495_v11 = vmul.f32 %v494_v6, %v5114_v2  ;;  %v516_v19 = vmul.f32 %v512_v5, %v5128_v12  ;;  %v497_v20 = vmul.f32 %v494_v6, %v5112_v0 }
  0x95   : > { %v496_v22 = vmul.f32 %v494_v6, %v5116_v3 }
  0x96   : > { %v592_v18 = vrot.slane %v513_v10, 1  ;;  %v597_v30 = vrot.slane %v516_v19, 1 }
  0x97   : > { %827 = vrot.lane.b32.xlu1 %v761_v8, %s7017_s27  ;;  %825 = vrot.lane.b32.xlu0 %v760_v9, %s7017_s27  ;;  %v514_v9 = vmul.f32 %v512_v5, %v5116_v3 }
  0x99   : > { %v593_v17 = vrot.slane %v514_v9, 1 }
  0x9b   : > { %829 = vrot.lane.b32.xlu1 %v762_v15, %s7017_s27  ;;  %809 = vrot.lane.b32.xlu0 %v756_v16, %s7019_s26  ;;  %v530_v15 = vstv %s3943_s22  ;;  %v515_v16 = vmul.f32 %v512_v5, %v5112_v0  ;;  %s5486_s22 = sld [smem:[#allocation6 + $0x16]] }
  0x9c   : > { %v532_v25 = vmul.f32 %v530_v15, %v5116_v3  ;;  %v533_v36 = vmul.f32 %v530_v15, %v5112_v0  ;;  %v534_v45 = vmul.f32 %v530_v15, %v5128_v12 }
  0x9d   : > { %v595_v28 = vrot.slane %v515_v16, 1 }
  0x9f   : > { %871 = vrot.lane.b32.xlu1 %v866_v26, %s7019_s26  ;;  %869 = vrot.lane.b32.xlu0 %v864_v27, %s7019_s26  ;;  %v498_v27 = vmul.f32 %v494_v6, %v5128_v12  ;;  %v596_v42 = vsel %vm591_vm0, %v593_v17, %v595_v28  ;;  %v598_v43 = vsel %vm591_vm0, %v595_v28, %v597_v30 }
  0xa3   : > { %896 = vrot.lane.b32.xlu1 %v891_v31, %s7017_s27  ;;  %873 = vrot.lane.b32.xlu0 %v868_v32, %s7019_s26  ;;  %v531_v31 = vmul.f32 %v530_v15, %v5114_v2 }
  0xa5   : > { %v666_v44 = vrot.slane %v531_v31, 2 }
  0xa7   : > { %900 = vrot.lane.b32.xlu1 %v895_v37, %s7017_s27  ;;  %898 = vrot.lane.b32.xlu0 %v893_v38, %s7017_s27  ;;  %v667_v37 = vrot.slane %v532_v25, 2 }
  0xab   : > { %902 = vrot.lane.b32.xlu1 %v894_v34, %s7017_s27  ;;  %875 = vrot.lane.b32.xlu0 %v867_v29, %s7019_s26  ;;  %v594_v29 = vsel %vm591_vm0, %v592_v18, %v593_v17 }
  0xaf   : > { %944 = vrot.lane.b32.xlu1 %v939_v50, %s7019_s26  ;;  %942 = vrot.lane.b32.xlu0 %v937_v51, %s7019_s26 }
  0xb3   : > { %969 = vrot.lane.b32.xlu1 %v964_v54, %s7017_s27  ;;  %946 = vrot.lane.b32.xlu0 %v941_v55, %s7019_s26  ;;  %v668_v54 = vsel %vm665_vm1, %v666_v44, %v667_v37  ;;  %v671_v55 = vrot.slane %v534_v45, 2 }
  0xb7   : > { %973 = vrot.lane.b32.xlu1 %v968_v58, %s7017_s27  ;;  %971 = vrot.lane.b32.xlu0 %v966_v59, %s7017_s27 }
  0xbb   : > { %948 = vrot.lane.b32.xlu0 %v940_v53, %s7019_s26  ;;  %975 = vrot.lane.b32.xlu1 %v967_v57, %s7017_s27  ;;  %v669_v53 = vrot.slane %v533_v36, 2  ;;  %v746_v36 = vstv %s3946_s24  ;;  %s5464_s24 = sld [smem:[#allocation6 + $0x2]]  ;;  %s5488_s27 = sld [smem:[#allocation6 + $0x17]] }
  0xd1   : > { %v556_v60 = vpop.permute.xlu1 %555  ;;  %v552_v61 = vpop.permute.xlu0 %551 }
  0xd2   : > { %v563_v21 = vadd.f32 %v552_v61, %v495_v11  ;;  %v565_v32 = vadd.f32 %v556_v60, %v497_v20 }
  0xd5   : > { %v572_v62 = vpop.permute.xlu1 %571  ;;  %v554_v63 = vpop.permute.xlu0 %553 }
  0xd6   : > { %v583_v26 = vadd.f32 %v572_v62, %v563_v21  ;;  %v564_v33 = vadd.f32 %v554_v63, %v496_v22 }
  0xd8   : > { %v603_v41 = vadd.f32 %v594_v29, %v583_v26 }
  0xd9   : > { %v576_v1 = vpop.permute.xlu1 %575  ;;  %v574_v4 = vpop.permute.xlu0 %573 }
  0xda   : > { %v585_v38 = vadd.f32 %v576_v1, %v565_v32  ;;  %v584_v39 = vadd.f32 %v574_v4, %v564_v33  ;;  %v670_v1 = vsel %vm665_vm1, %v667_v37, %v669_v53  ;;  %v672_v4 = vsel %vm665_vm1, %v669_v53, %v671_v55 }
  0xdc   : > { %v604_v50 = vadd.f32 %v596_v42, %v584_v39  ;;  %v605_v52 = vadd.f32 %v598_v43, %v585_v38  ;;  %v764_v38 = vstv %s3949_s14  ;;  %v747_v42 = vmul.f32 %v746_v36, %v5114_v2  ;;  %s5466_s14 = sld [smem:[#allocation6 + $0x13]] }
  0xdd   : > { %v578_v7 = vpop.permute.xlu1 %577  ;;  %v558_v8 = vpop.permute.xlu0 %557  ;;  %v766_v43 = vmul.f32 %v764_v38, %v5116_v3  ;;  %v765_v44 = vmul.f32 %v764_v38, %v5114_v2  ;;  %v768_v53 = vmul.f32 %v764_v38, %v5128_v12 }
  0xde   : > { %v566_v40 = vadd.f32 %v558_v8, %v498_v27 }
  0xe0   : > { %v586_v49 = vadd.f32 %v578_v7, %v566_v40 }
  0xe1   : > { %v621_v13 = vpop.permute.xlu1 %620  ;;  %v619_v14 = vpop.permute.xlu0 %618 }
  0xe2   : > { %v630_v46 = vadd.f32 %v619_v14, %v603_v41  ;;  %v631_v56 = vadd.f32 %v621_v13, %v604_v50  ;;  %v606_v62 = vadd.f32 %v597_v30, %v586_v49  ;;  %v736_v14 = vstv %s735_s23  ;;  %v5281_v41 = vld [vmem:[%s7099_s6] sm:$0xff]  ;;  %s5462_s23 = sld [smem:[#allocation6 + $0x1]] }
  0xe3   : > { %4297 = vmatprep.mubr.msk.f32.mxu0 %vm1051_vm2, %v5281_v41  ;;  %v749_v49 = vmul.f32 %v746_v36, %v5112_v0  ;;  %v767_v50 = vmul.f32 %v764_v38, %v5112_v0 }
  0xe5   : > { %v646_v23 = vpop.permute.xlu1 %645  ;;  %v623_v24 = vpop.permute.xlu0 %622 }
  0xe6   : > { %v657_v51 = vadd.f32 %v646_v23, %v630_v46  ;;  %v632_v57 = vadd.f32 %v623_v24, %v605_v52  ;;  %v843_v52 = vrot.slane %v765_v44, 1 }
  0xe8   : > { %v677_v63 = vadd.f32 %v668_v54, %v657_v51  ;;  %v844_v51 = vrot.slane %v766_v43, 1 }
  0xe9   : > { %v650_v34 = vpop.permute.xlu1 %649  ;;  %v648_v35 = vpop.permute.xlu0 %647 }
  0xea   : > { %v659_v60 = vadd.f32 %v650_v34, %v632_v57  ;;  %v658_v61 = vadd.f32 %v648_v35, %v631_v56 }
  0xec   : > { %v678_v9 = vadd.f32 %v670_v1, %v658_v61  ;;  %v679_v11 = vadd.f32 %v672_v4, %v659_v60  ;;  %v845_v60 = vsel %vm591_vm0, %v843_v52, %v844_v51  ;;  %v848_v61 = vrot.slane %v768_v53, 1 }
  0xed   : > { %v652_v47 = vpop.permute.xlu1 %651  ;;  %v625_v48 = vpop.permute.xlu0 %624 }
  0xee   : > { %v633_v5 = vadd.f32 %v625_v48, %v606_v62  ;;  %v782_v62 = vstv %s3952_s16  ;;  %s5472_s16 = sld [smem:[#allocation6 + $0x26]] }
  0xf0   : > { %v660_v13 = vadd.f32 %v652_v47, %v633_v5  ;;  %v748_v47 = vmul.f32 %v746_v36, %v5116_v3 }
  0xf1   : > { %v695_v58 = vpop.permute.xlu1 %694  ;;  %v693_v59 = vpop.permute.xlu0 %692 }
  0xf2   : > { %v704_v6 = vadd.f32 %v693_v59, %v677_v63  ;;  %v705_v15 = vadd.f32 %v695_v58, %v678_v9  ;;  %v680_v24 = vadd.f32 %v671_v55, %v660_v13  ;;  %v846_v59 = vrot.slane %v767_v50, 1 }
  0xf4   : > { %v849_v9 = vsel %vm591_vm0, %v846_v59, %v848_v61 }
  0xf5   : > { %v720_v7 = vpop.permute.xlu1 %719  ;;  %v697_v8 = vpop.permute.xlu0 %696 }
  0xf6   : > { %v731_v10 = vadd.f32 %v720_v7, %v704_v6  ;;  %v706_v16 = vadd.f32 %v697_v8, %v679_v11  ;;  %v750_v6 = vmul.f32 %v746_v36, %v5128_v12  ;;  %v847_v8 = vsel %vm591_vm0, %v844_v51, %v846_v59 }
  0xf7   : > { %v783_v11 = vmul.f32 %v782_v62, %v5114_v2  ;;  %v986_v51 = vstv %s3955_s17  ;;  %s5474_s17 = sld [smem:[#allocation6 + $0x37]] }
  0xf8   : > { %v5258_v19 = vadd.f32 %v736_v14, %v731_v10  ;;  %v784_v10 = vmul.f32 %v782_v62, %v5116_v3 }
  0xf9   : > { %v724_v17 = vpop.permute.xlu1 %723  ;;  %v722_v18 = vpop.permute.xlu0 %721 }
  0xfa   : > { %v733_v20 = vadd.f32 %v724_v17, %v706_v16  ;;  %v732_v21 = vadd.f32 %v722_v18, %v705_v15  ;;  %v741_v27 = vmax.f32 %v5258_v19, 0.0 }
  0xfc   : > { %v5260_v22 = vadd.f32 %v736_v14, %v733_v20  ;;  %v5262_v23 = vadd.f32 %v736_v14, %v732_v21  ;;  %v785_v20 = vmul.f32 %v782_v62, %v5112_v0  ;;  %v917_v21 = vrot.slane %v784_v10, 2 }
  0xfd   : > { %v726_v25 = vpop.permute.xlu1 %725  ;;  %v699_v26 = vpop.permute.xlu0 %698 }
  0xfe   : > { %v742_v28 = vmax.f32 %v5262_v23, 0.0  ;;  %v707_v29 = vadd.f32 %v699_v26, %v680_v24  ;;  %v743_v30 = vmax.f32 %v5260_v22, 0.0  ;;  %v916_v24 = vrot.slane %v783_v11, 2 }
 0x100   : > { %v734_v31 = vadd.f32 %v726_v25, %v707_v29  ;;  %1020 = vrot.lane.b32.xlu1 %v743_v30, %s7019_s26  ;;  %v4824_v32 = vpack.i.bf16 %v742_v28, %v741_v27  ;;  %v786_v25 = vmul.f32 %v782_v62, %v5128_v12  ;;  %v918_v2 = vsel %vm665_vm1, %v916_v24, %v917_v21 }
 0x101   : > { %v806_v33 = vpop.permute.xlu1 %805  ;;  %v804_v34 = vpop.permute.xlu0 %803 }
 0x102   : > { %4825 = vrot.lane.b32.xlu0 %v4824_v32, %s7019_s26  ;;  %v5275_v35 = vadd.f32 %v736_v14, %v734_v31  ;;  %v815_v48 = vadd.f32 %v804_v34, %v747_v42  ;;  %v816_v56 = vadd.f32 %v806_v33, %v748_v47  ;;  %v919_v34 = vrot.slane %v785_v20, 2 }
 0x103   : > { %v921_v36 = vrot.slane %v786_v25, 2  ;;  %v999_v25 = vld [vmem:[%s7100_s5 + $0x20] sm:$0xff] }
 0x104   : > { %v744_v37 = vmax.f32 %v5275_v35, 0.0  ;;  %v920_v44 = vsel %vm665_vm1, %v917_v21, %v919_v34  ;;  %v998_v21 = vld [vmem:[%s7100_s5 + $0x18] sm:$0xff] }
 0x105   : > { %v824_v39 = vpop.permute.xlu1 %823  ;;  %v808_v40 = vpop.permute.xlu0 %807  ;;  %v922_v12 = vsel %vm665_vm1, %v919_v34, %v921_v36  ;;  %v1004_v34 = vld [vmem:[%s7100_s5 + $0x48] sm:$0xff] }
 0x106   : > { %1022 = vrot.lane.b32.xlu0 %v744_v37, %s7019_s26  ;;  %v835_v57 = vadd.f32 %v824_v39, %v815_v48  ;;  %v817_v58 = vadd.f32 %v808_v40, %v749_v49 }
 0x108   : > { %v854_v7 = vadd.f32 %v845_v60, %v835_v57 }
 0x109   : > { %v828_v45 = vpop.permute.xlu1 %827  ;;  %v826_v46 = vpop.permute.xlu0 %825 }
 0x10a   : > { %v837_v4 = vadd.f32 %v828_v45, %v817_v58  ;;  %v836_v5 = vadd.f32 %v826_v46, %v816_v56 }
 0x10c   : > { %v855_v16 = vadd.f32 %v847_v8, %v836_v5  ;;  %v856_v18 = vadd.f32 %v849_v9, %v837_v4 }
 0x10d   : > { %v830_v54 = vpop.permute.xlu1 %829  ;;  %v810_v55 = vpop.permute.xlu0 %809 }
 0x10e   : > { %v818_v15 = vadd.f32 %v810_v55, %v750_v6 }
 0x110   : > { %v838_v31 = vadd.f32 %v830_v54, %v818_v15 }
 0x111   : > { %v872_v63 = vpop.permute.xlu1 %871  ;;  %v870_v1 = vpop.permute.xlu0 %869 }
 0x112   : > { %v881_v17 = vadd.f32 %v870_v1, %v854_v7  ;;  %v882_v32 = vadd.f32 %v872_v63, %v855_v16  ;;  %v857_v0 = vadd.f32 %v848_v61, %v838_v31  ;;  %v995_v16 = vld [vmem:[%s7100_s5] sm:$0xff]  ;;  %v1001_v31 = vld [vmem:[%s7100_s5 + $0x30] sm:$0xff] }
 0x115   : > { %v897_v14 = vpop.permute.xlu1 %896  ;;  %v874_v13 = vpop.permute.xlu0 %873 }
 0x116   : > { %v908_v33 = vadd.f32 %v897_v14, %v881_v17  ;;  %v883_v3 = vadd.f32 %v874_v13, %v856_v18  ;;  %v996_v17 = vld [vmem:[%s7100_s5 + $0x8] sm:$0xff]  ;;  %v997_v18 = vld [vmem:[%s7100_s5 + $0x10] sm:$0xff] }
 0x117   : > { %v5338_v20 = vpack.c.bf16 %v996_v17, %v995_v16  ;;  %v5343_v24 = vpack.c.bf16 %v998_v21, %v997_v18 }
 0x118   : > { %v927_v43 = vadd.f32 %v918_v2, %v908_v33 }
 0x119   : > { %v901_v26 = vpop.permute.xlu1 %900  ;;  %v899_v29 = vpop.permute.xlu0 %898  ;;  %4542 = vmatprep.subr.bf16.mxu1 %v5338_v20 }
 0x11a   : > { %v910_v40 = vadd.f32 %v901_v26, %v883_v3  ;;  %v909_v42 = vadd.f32 %v899_v29, %v882_v32  ;;  %v1000_v26 = vld [vmem:[%s7100_s5 + $0x28] sm:$0xff]  ;;  %4544 = vmatpush3.bf16.msra.mxu1 %v5338_v20  ;;  %v1002_v32 = vld [vmem:[%s7100_s5 + $0x38] sm:$0xff]  ;;  %v1003_v3 = vld [vmem:[%s7100_s5 + $0x40] sm:$0xff] }
 0x11b   : > { %4546 = vmatprep.subr.bf16.mxu1 %v5343_v24  ;;  %v5354_v29 = vpack.c.bf16 %v1000_v26, %v999_v25  ;;  %v5364_v33 = vpack.c.bf16 %v1002_v32, %v1001_v31  ;;  %v5374_v2 = vpack.c.bf16 %v1004_v34, %v1003_v3  ;;  %v1430_v31 = vstv %s5464_s24  ;;  %s5998_s24 = sld [smem:[#allocation6 + $0x46]] }
 0x11c   : > { %v928_v48 = vadd.f32 %v920_v44, %v909_v42  ;;  %v929_v50 = vadd.f32 %v922_v12, %v910_v40  ;;  %v1007_v40 = vld [vmem:[%s7100_s5 + $0x60] sm:$0xff]  ;;  %v1008_v42 = vld [vmem:[%s7100_s5 + $0x68] sm:$0xff]  ;;  %v1686_v32 = vstv %s5466_s14  ;;  %v1946_v3 = vstv %s5470_s15  ;;  %s6002_s14 = sld [smem:[#allocation6 + $0x47]] }
 0x11d   : > { %v903_v38 = vpop.permute.xlu1 %902  ;;  %v876_v39 = vpop.permute.xlu0 %875  ;;  %v1950_v34 = vstv %s5472_s16  ;;  %s6103_s15 = sld [smem:[#allocation6 + $0xf]]  ;;  %s6105_s16 = sld [smem:[#allocation6 + $0x1e]] }
 0x11e   : > { %v884_v47 = vadd.f32 %v876_v39, %v857_v0  ;;  %4548 = vmatpush3.bf16.msra.mxu1 %v5343_v24  ;;  %v5394_v0 = vpack.c.bf16 %v1008_v42, %v1007_v40  ;;  %v1450_v40 = vstv %s5482_s20  ;;  %v1454_v42 = vstv %s5484_s21  ;;  %s6193_s20 = sld [smem:[#allocation6 + $0x45]]  ;;  %s6241_s21 = sld [smem:[#allocation6 + $0xa]] }
 0x11f   : > { %4550 = vmatprep.subr.bf16.mxu1 %v5354_v29 }
 0x120   : > { %v911_v54 = vadd.f32 %v903_v38, %v884_v47  ;;  %v1006_v38 = vld [vmem:[%s7100_s5 + $0x58] sm:$0xff] }
 0x121   : > { %v945_v45 = vpop.permute.xlu1 %944  ;;  %v943_v46 = vpop.permute.xlu0 %942 }
 0x122   : > { %v954_v49 = vadd.f32 %v943_v46, %v927_v43  ;;  %v955_v55 = vadd.f32 %v945_v45, %v928_v48  ;;  %v930_v63 = vadd.f32 %v921_v36, %v911_v54  ;;  %4552 = vmatpush3.bf16.msra.mxu1 %v5354_v29  ;;  %v1005_v36 = vld [vmem:[%s7100_s5 + $0x50] sm:$0xff] }
 0x123   : > { %4554 = vmatprep.subr.bf16.mxu1 %v5364_v33  ;;  %v5384_v39 = vpack.c.bf16 %v1006_v38, %v1005_v36  ;;  %v2210_v36 = vstv %s5476_s30  ;;  %v1438_v38 = vstv %s5478_s18  ;;  %s6123_s30 = sld [smem:[#allocation6 + $0x30]]  ;;  %s6130_s18 = sld [smem:[#allocation6 + $0x33]] }
 0x125   : > { %v970_v52 = vpop.permute.xlu1 %969  ;;  %v947_v53 = vpop.permute.xlu0 %946 }
 0x126   : > { %v981_v56 = vadd.f32 %v970_v52, %v954_v49  ;;  %v956_v57 = vadd.f32 %v947_v53, %v929_v50  ;;  %4556 = vmatpush3.bf16.msra.mxu1 %v5364_v33 }
 0x127   : > { %4558 = vmatprep.subr.bf16.mxu1 %v5374_v2 }
 0x128   : > { %v5306_v58 = vadd.f32 %v986_v51, %v981_v56 }
 0x129   : > { %v974_v59 = vpop.permute.xlu1 %973  ;;  %v972_v60 = vpop.permute.xlu0 %971 }
 0x12a   : > { %v983_v61 = vadd.f32 %v974_v59, %v956_v57  ;;  %v982_v62 = vadd.f32 %v972_v60, %v955_v55  ;;  %v991_v1 = vmax.f32 %v5306_v58, 0.0  ;;  %4560 = vmatpush3.bf16.msra.mxu1 %v5374_v2  ;;  %v1011_v57 = vld [vmem:[%s7099_s6 + $0x8] sm:$0xff]  ;;  %s5504_s6 = sld [smem:[#allocation6 + $0x3b]] }
 0x12b   : > { %4562 = vmatprep.subr.bf16.mxu1 %v5384_v39 }
 0x12c   : > { %v5309_v4 = vadd.f32 %v986_v51, %v983_v61  ;;  %v5311_v5 = vadd.f32 %v986_v51, %v982_v62 }
 0x12d   : > { %v949_v6 = vpop.permute.xlu0 %948  ;;  %v976_v7 = vpop.permute.xlu1 %975 }
 0x12e   : > { %v992_v8 = vmax.f32 %v5311_v5, 0.0  ;;  %v957_v9 = vadd.f32 %v949_v6, %v930_v63  ;;  %v993_v10 = vmax.f32 %v5309_v4, 0.0  ;;  %4564 = vmatpush3.bf16.msra.mxu1 %v5384_v39 }
 0x12f   : > { %4566 = vmatprep.subr.bf16.mxu1 %v5394_v0 }
 0x130   : > { %v984_v11 = vadd.f32 %v976_v7, %v957_v9  ;;  %1231 = vrot.lane.b32.xlu0 %v993_v10, %s7019_s26  ;;  %v4829_v14 = vpack.i.bf16 %v992_v8, %v991_v1 }
 0x132   : > { %v5322_v13 = vadd.f32 %v986_v51, %v984_v11  ;;  %4830 = vrot.lane.b32.xlu1 %v4829_v14, %s7019_s26  ;;  %4568 = vmatpush3.bf16.msra.mxu1 %v5394_v0 }
 0x134   : > { %v994_v15 = vmax.f32 %v5322_v13, 0.0  ;;  %v1009_v13 = vld [vmem:[%s7100_s5 + $0x70] sm:$0x1f]  ;;  %s5502_s5 = sld [smem:[#allocation6 + $0x3a]] }
 0x135   : > { %4328 = vmatprep.subr.msk.mxu1 %vm1144_vm6, %v1009_v13 }
 0x136   : > { %1233 = vrot.lane.b32.xlu1 %v994_v15, %s7019_s26  ;;  %4329 = vmatpush3.msk.msra.mxu1 %vm1144_vm6, %v1009_v13  ;;  %s5490_s26 = sld [smem:[#allocation6 + $0x19]] }
 0x172   : > { %v1021_v43 = vpop.permute.xlu1 %1020 }
 0x173   : > { %v1030_v12 = vmax.f32 %v743_v30, %v1021_v43  ;;  %v1702_v43 = vstv %s5488_s27  ;;  %s7104_s27 = smov 126  }
 0x174   : > { %v4826_v44 = vpop.permute.xlu0 %4825 }
 0x175   : > { %v4828_v45 = vunpack.i.h.bf16 %v4826_v44  ;;  %v4827_v46 = vunpack.i.l.bf16 %v4826_v44  ;;  %v1039_v50 = vrot.slane %v1030_v12, 1  ;;  %v1710_v44 = vstv %s5490_s26  ;;  %s7103_s26 = smov 127  }
 0x177   : > { %v1028_v47 = vmax.f32 %v741_v27, %v4827_v46  ;;  %v1029_v48 = vmax.f32 %v742_v28, %v4828_v45  ;;  %v1958_v45 = vstv %s5494_s1  ;;  %v1962_v46 = vstv %s5496_s2  ;;  %s5906_s1 = sld [smem:[#allocation6 + $0xd]]  ;;  %s5914_s2 = sld [smem:[#allocation6 + $0xe]] }
 0x178   : > { %v1023_v49 = vpop.permute.xlu0 %1022 }
 0x179   : > { %v1031_v51 = vmax.f32 %v744_v37, %v1023_v49  ;;  %v1036_v52 = vrot.slane %v1028_v47, 1  ;;  %v1037_v53 = vrot.slane %v1029_v48, 1 }
 0x17b   : > { %v1041_v54 = vrot.slane %v1031_v51, 1  ;;  %v1038_v55 = vsel %vm591_vm0, %v1036_v52, %v1037_v53  ;;  %v1040_v22 = vsel %vm591_vm0, %v1037_v53, %v1039_v50  ;;  %v2230_v52 = vstv %s5506_s25  ;;  %s5949_s25 = sld [smem:[#allocation6 + $0x43]] }
 0x17c   : > { %v1047_v30 = vmax.f32 %v1028_v47, %v1038_v55  ;;  %v1048_v56 = vmax.f32 %v1029_v48, %v1040_v22  ;;  %v1970_v47 = vstv %s5498_s3  ;;  %v1974_v48 = vstv %s5500_s4  ;;  %s5916_s3 = sld [smem:[#allocation6 + $0x10]]  ;;  %s5921_s4 = sld [smem:[#allocation6 + $0x11]] }
 0x17d   : > { %v1042_v19 = vsel %vm591_vm0, %v1039_v50, %v1041_v54  ;;  %v1050_v27 = vmax.f32 %v1031_v51, %v1041_v54  ;;  %v2218_v50 = vstv %s5502_s5  ;;  %v2222_v51 = vstv %s5504_s6  ;;  %s5923_s5 = sld [smem:[#allocation6 + $0x1f]]  ;;  %s5932_s6 = sld [smem:[#allocation6 + $0x20]] }
 0x17e   : > { %v1049_v23 = vmax.f32 %v1030_v12, %v1042_v19  ;;  %v4531_v28 = vpack.c.bf16 %v1048_v56, %v1047_v30  ;;  %v1714_v12 = vstv %s5492_s0  ;;  %v1434_v53 = vstv %s5508_s13  ;;  %s5660_s0 = sld [smem:[#allocation6 + $0x3c]]  ;;  %s5947_s13 = sld [smem:[#allocation6 + $0x35]] }
 0x17f   : > { %v2234_v22 = vstv %s5510_s12  ;;  %v1446_v30 = vstv %s5512_s29  ;;  %v1694_v56 = vstv %s5514_s10  ;;  %s5938_s10 = sld [smem:[#allocation6 + $0x31]]  ;;  %s5942_s12 = sld [smem:[#allocation6 + $0x34]] }
 0x180   : > { %v4535_v37 = vpack.c.bf16 %v1050_v27, %v1049_v23  ;;  %4532 = vmatprep.subr.bf16.mxu0 %v4531_v28  ;;  %v1706_v27 = vstv %s5516_s11  ;;  %v1954_v23 = vstv %s5518_s9  ;;  %s5936_s9 = sld [smem:[#allocation6 + $0x23]]  ;;  %s5940_s11 = sld [smem:[#allocation6 + $0x32]] }
 0x181   : > { %4534 = vmatpush3.bf16.msra.mxu0 %v4531_v28  ;;  %v1966_v28 = vstv %s5520_s7  ;;  %s5934_s7 = sld [smem:[#allocation6 + $0x22]]  ;;  %s5996_s29 = sld [smem:[#allocation6 + $0x44]] }
 0x182   : > { %4537 = vmatprep.subr.msk.bf16.mxu0 %vm5411_vm5, %v4535_v37 }
 0x185   : > { %4540 = vmatpush3.bf16.msk.msra.mxu0 %vm5411_vm5, %v4535_v37 }
 0x188   : > { %4298 = vmatmul.mubr.msk.f32.vlgmr.msra.gmra.mrb[0].mxu0 %vm1051_vm2, %v1011_v57 }
 0x189   : > { %4341 = vmatprep.mubr.msk.f32.mxu0 %vm1051_vm2, %v5281_v41 }
 0x1a2   : > { %v1232_v59 = vpop.permute.xlu0 %1231 }
 0x1a3   : > { %v1241_v61 = vmax.f32 %v993_v10, %v1232_v59 }
 0x1a4   : > { %v4831_v60 = vpop.permute.xlu1 %4830 }
 0x1a5   : > { %v4833_v62 = vunpack.i.h.bf16 %v4831_v60  ;;  %v4832_v63 = vunpack.i.l.bf16 %v4831_v60  ;;  %v1250_v11 = vrot.slane %v1241_v61, 1 }
 0x1a7   : > { %v1240_v6 = vmax.f32 %v992_v8, %v4833_v62  ;;  %v1239_v7 = vmax.f32 %v991_v1, %v4832_v63 }
 0x1a8   : > { %v1234_v9 = vpop.permute.xlu1 %1233 }
 0x1a9   : > { %v1248_v14 = vrot.slane %v1240_v6, 1  ;;  %v1247_v16 = vrot.slane %v1239_v7, 1  ;;  %v1242_v41 = vmax.f32 %v994_v15, %v1234_v9 }
 0x1ab   : > { %v1252_v17 = vrot.slane %v1242_v41, 1  ;;  %v1249_v18 = vsel %vm591_vm0, %v1247_v16, %v1248_v14  ;;  %v1251_v4 = vsel %vm591_vm0, %v1248_v14, %v1250_v11 }
 0x1ac   : > { %v1258_v10 = vmax.f32 %v1239_v7, %v1249_v18  ;;  %v1259_v21 = vmax.f32 %v1240_v6, %v1251_v4 }
 0x1ad   : > { %v1253_v5 = vsel %vm591_vm0, %v1250_v11, %v1252_v17  ;;  %v1261_v8 = vmax.f32 %v1242_v41, %v1252_v17 }
 0x1ae   : > { %v1260_v25 = vmax.f32 %v1241_v61, %v1253_v5  ;;  %v4569_v58 = vpack.c.bf16 %v1259_v21, %v1258_v10 }
 0x1b0   : > { %v4573_v1 = vpack.c.bf16 %v1261_v8, %v1260_v25  ;;  %4570 = vmatprep.subr.bf16.mxu0 %v4569_v58 }
 0x1b1   : > { %4572 = vmatpush3.bf16.msra.mxu0 %v4569_v58 }
 0x1b2   : > { %4575 = vmatprep.subr.msk.bf16.mxu0 %vm5411_vm5, %v4573_v1 }
 0x1b5   : > { %4578 = vmatpush3.bf16.msk.msra.mxu0 %vm5411_vm5, %v4573_v1 }
 0x1b6   : > { %4580 = vmatprep.subr.bf16.mxu0 %v5338_v20 }
 0x1b8   : > { %4342 = vmatmul.mubr.msk.f32.vlgmr.msra.gmra.mrb[2].mxu0 %vm1051_vm2, %v1011_v57 }
 0x1b9   : > { %4582 = vmatpush3.bf16.msra.mxu0 %v5338_v20 }
 0x1ba   : > { %4584 = vmatprep.subr.bf16.mxu0 %v5343_v24 }
 0x1bd   : > { %4586 = vmatpush3.bf16.msra.mxu0 %v5343_v24 }
 0x1be   : > { %4588 = vmatprep.subr.bf16.mxu0 %v5354_v29 }
 0x1c1   : > { %4590 = vmatpush3.bf16.msra.mxu0 %v5354_v29  ;;  %v1426_v29 = vstv %s5462_s23  ;;  %s5649_s23 = sld [smem:[#allocation6 + $0x39]] }
 0x1c2   : > { %4592 = vmatprep.subr.bf16.mxu0 %v5364_v33 }
 0x1c5   : > { %4594 = vmatpush3.bf16.msra.mxu0 %v5364_v33  ;;  %v1690_v33 = vstv %s5468_s28  ;;  %s6039_s28 = sld [smem:[#allocation6 + $0xc]] }
 0x1c6   : > { %4596 = vmatprep.subr.bf16.mxu0 %v5374_v2 }
 0x1c9   : > { %4598 = vmatpush3.bf16.msra.mxu0 %v5374_v2  ;;  %v2206_v2 = vstv %s5474_s17  ;;  %s6121_s17 = sld [smem:[#allocation6 + $0x21]] }
 0x1ca   : > { %4600 = vmatprep.subr.bf16.mxu0 %v5384_v39 }
 0x1cd   : > { %4602 = vmatpush3.bf16.msra.mxu0 %v5384_v39  ;;  %v1442_v39 = vstv %s5480_s19  ;;  %s6132_s19 = sld [smem:[#allocation6 + $0x42]] }
 0x1ce   : > { %4604 = vmatprep.subr.bf16.mxu0 %v5394_v0 }
 0x1d1   : > { %4606 = vmatpush3.bf16.msra.mxu0 %v5394_v0  ;;  %v1698_v0 = vstv %s5486_s22  ;;  %s3978_s22 = sld [smem:[#allocation6 + $0xb]] }
 0x1d2   : > { %4372 = vmatprep.subr.msk.mxu0 %vm1144_vm6, %v1009_v13 }
 0x1d5   : > { %4373 = vmatpush3.msk.msra.mxu0 %vm1144_vm6, %v1009_v13 }
 0x25b   : > { %v4299_v15 = vpop.f32.mrb[0].mxu0 }
 0x25c   : > { %v1128_v20 = vpop.f32.mrb[1].mxu0 }
 0x25d   : > { %4330 = vmatprep.mubr.msk.f32.mxu1 %vm1137_vm7, %v1128_v20 }
 0x25e   : > { %4331 = vmatmul.mubr.msk.f32.vlgmr.msra.gmra.mrb[0].mxu1 %vm1137_vm7, %v4299_v15 }
 0x28b   : > { %v4343_v24 = vpop.f32.mrb[2].mxu0 }
 0x28c   : > { %v1331_v26 = vpop.f32.mrb[3].mxu0 }
 0x28d   : > { %4374 = vmatprep.mubr.msk.f32.mxu0 %vm1137_vm7, %v1331_v26 }
 0x28e   : > { %4375 = vmatmul.mubr.msk.f32.vlgmr.msra.gmra.mrb[4].mxu0 %vm1137_vm7, %v4343_v24 }
 0x331   : > { %v5542_v49 = vpop.f32.mrb[0].mxu1 }
 0x332   : > { %v5548_v54 = vpop.f32.mrb[1].mxu1  ;;  %v1428_v55 = vmul.f32 %v5542_v49, %v1426_v29  ;;  %v1432_v35 = vmul.f32 %v5542_v49, %v1430_v31  ;;  %v1688_v57 = vmul.f32 %v5542_v49, %v1686_v32  ;;  %v1692_v59 = vmul.f32 %v5542_v49, %v1690_v33 }
 0x333   : > { %v1427_v19 = vmul.f32 %v1426_v29, %v5548_v54  ;;  %v1431_v37 = vmul.f32 %v1430_v31, %v5548_v54  ;;  %v1687_v60 = vmul.f32 %v1686_v32, %v5548_v54  ;;  %v1691_v61 = vmul.f32 %v1690_v33, %v5548_v54 }
 0x334   : > { %1497 = vrot.lane.b32.xlu1 %v1428_v55, %s7103_s26  ;;  %v5567_v62 = vmul.f32 %v5542_v49, %v1946_v3  ;;  %v5570_v63 = vmul.f32 %v1946_v3, %v5548_v54  ;;  %v5573_v6 = vmul.f32 %v5542_v49, %v1438_v38  ;;  %v1439_v7 = vmul.f32 %v1438_v38, %v5548_v54 }
 0x335   : > { %1495 = vrot.lane.b32.xlu0 %v1427_v19, %s7103_s26  ;;  %v5577_v9 = vmul.f32 %v5542_v49, %v1442_v39  ;;  %v1443_v11 = vmul.f32 %v1442_v39, %v5548_v54  ;;  %v5581_v14 = vmul.f32 %v5542_v49, %v1450_v40  ;;  %v1451_v16 = vmul.f32 %v1450_v40, %v5548_v54 }
 0x336   : > { %v5585_v41 = vmul.f32 %v5542_v49, %v1454_v42  ;;  %v1455_v17 = vmul.f32 %v1454_v42, %v5548_v54  ;;  %v1525_v18 = vrot.slane %v5573_v6, 1  ;;  %v1524_v4 = vrot.slane %v1439_v7, 1 }
 0x337   : > { %v1538_v10 = vrot.slane %v5577_v9, 1  ;;  %v1537_v21 = vrot.slane %v1443_v11, 1  ;;  %v1560_v5 = vrot.slane %v5581_v14, 2  ;;  %v1559_v8 = vrot.slane %v1451_v16, 2 }
 0x338   : > { %1507 = vrot.lane.b32.xlu1 %v1432_v35, %s7104_s27  ;;  %v1573_v25 = vrot.slane %v5585_v41, 2  ;;  %v1572_v58 = vrot.slane %v1455_v17, 2  ;;  %v5597_v1 = vsel %vm591_vm0, %v1524_v4, %v1525_v18  ;;  %v5605_v15 = vmul.f32 %v5542_v49, %v1698_v0 }
 0x339   : > { %1505 = vrot.lane.b32.xlu0 %v1431_v37, %s7104_s27  ;;  %v5602_v13 = vsel %vm591_vm0, %v1537_v21, %v1538_v10  ;;  %v1699_v20 = vmul.f32 %v1698_v0, %v5548_v54  ;;  %v5611_v24 = vsel %vm665_vm1, %v1559_v8, %v1560_v5  ;;  %v5619_v29 = vmul.f32 %v5542_v49, %v1702_v43 }
 0x33a   : > { %v5616_v26 = vsel %vm665_vm1, %v1572_v58, %v1573_v25  ;;  %v1703_v31 = vmul.f32 %v1702_v43, %v5548_v54  ;;  %v7040_v32 = vrot.slane %v5605_v15, 1  ;;  %v5625_v3 = vmul.f32 %v5542_v49, %v1710_v44 }
 0x33b   : > { %v1784_v33 = vrot.slane %v1699_v20, 1  ;;  %v1711_v38 = vmul.f32 %v1710_v44, %v5548_v54  ;;  %v7039_v39 = vrot.slane %v5619_v29, 1  ;;  %v5633_v42 = vmul.f32 %v5542_v49, %v1714_v12 }
 0x33c   : > { %1757 = vrot.lane.b32.xlu1 %v1688_v57, %s7103_s26  ;;  %v1797_v40 = vrot.slane %v1703_v31, 1  ;;  %v1715_v0 = vmul.f32 %v1714_v12, %v5548_v54  ;;  %v7038_v44 = vrot.slane %v5625_v3, 2  ;;  %v5647_v19 = vmul.f32 %v5542_v49, %v1958_v45 }
 0x33d   : > { %1755 = vrot.lane.b32.xlu0 %v1687_v60, %s7103_s26  ;;  %v5641_v43 = vsel %vm591_vm0, %v1784_v33, %v7040_v32  ;;  %v1819_v55 = vrot.slane %v1711_v38, 2  ;;  %v7037_v35 = vrot.slane %v5633_v42, 2  ;;  %v1959_v57 = vmul.f32 %v1958_v45, %v5548_v54 }
 0x33e   : > { %v5654_v12 = vsel %vm591_vm0, %v1797_v40, %v7039_v39  ;;  %v1832_v37 = vrot.slane %v1715_v0, 2  ;;  %v7032_v7 = vrot.slane %v5647_v19, 1  ;;  %v5672_v11 = vmul.f32 %v5542_v49, %v1962_v46 }
 0x33f   : > { %v5666_v60 = vsel %vm665_vm1, %v1819_v55, %v7038_v44  ;;  %v1963_v16 = vmul.f32 %v1962_v46, %v5548_v54  ;;  %v5686_v17 = vmul.f32 %v5542_v49, %v1970_v47  ;;  %v1971_v4 = vmul.f32 %v1970_v47, %v5548_v54 }
 0x340   : > { %1767 = vrot.lane.b32.xlu1 %v1692_v59, %s7104_s27  ;;  %v5681_v45 = vsel %vm665_vm1, %v1832_v37, %v7037_v35  ;;  %v2044_v59 = vrot.slane %v1959_v57, 1  ;;  %v7031_v21 = vrot.slane %v5672_v11, 1  ;;  %v1975_v8 = vmul.f32 %v1974_v48, %v5548_v54 }
 0x341   : > { %1765 = vrot.lane.b32.xlu0 %v1691_v61, %s7104_s27  ;;  %v2057_v46 = vrot.slane %v1963_v16, 1  ;;  %v5695_v61 = vmul.f32 %v5542_v49, %v1974_v48  ;;  %v7030_v47 = vrot.slane %v5686_v17, 2  ;;  %v2079_v20 = vrot.slane %v1971_v4, 2 }
 0x342   : > { %v5703_v58 = vsel %vm591_vm0, %v2044_v59, %v7032_v7  ;;  %v5709_v31 = vmul.f32 %v5542_v49, %v2218_v50  ;;  %v2092_v38 = vrot.slane %v1975_v8, 2  ;;  %v2219_v40 = vmul.f32 %v2218_v50, %v5548_v54 }
 0x343   : > { %v5716_v48 = vsel %vm591_vm0, %v2057_v46, %v7031_v21  ;;  %v7029_v33 = vrot.slane %v5695_v61, 2  ;;  %v5733_v55 = vmul.f32 %v5542_v49, %v2222_v51  ;;  %v2223_v50 = vmul.f32 %v2222_v51, %v5548_v54 }
 0x344   : > { %2017 = vrot.lane.b32.xlu1 %v5567_v62, %s7103_s26  ;;  %v5727_v62 = vsel %vm665_vm1, %v2079_v20, %v7030_v47  ;;  %v7028_v0 = vrot.slane %v5709_v31, 1  ;;  %v1952_v37 = vmul.f32 %v5542_v49, %v1950_v34  ;;  %v2304_v57 = vrot.slane %v2219_v40, 1 }
 0x345   : > { %2015 = vrot.lane.b32.xlu0 %v5570_v63, %s7103_s26  ;;  %v5744_v63 = vsel %vm665_vm1, %v2092_v38, %v7029_v33  ;;  %v2214_v16 = vstv %s5649_s23  ;;  %v1951_v59 = vmul.f32 %v1950_v34, %v5548_v54  ;;  %v7027_v51 = vrot.slane %v5733_v55, 1  ;;  %s3995_s23 = sld [smem:[#allocation6 + $0x1c]] }
 0x346   : > { %v2317_v4 = vrot.slane %v2223_v50, 1  ;;  %v2226_v46 = vstv %s5660_s0  ;;  %v2208_v8 = vmul.f32 %v5542_v49, %v2206_v2  ;;  %v2207_v20 = vmul.f32 %v2206_v2, %v5548_v54  ;;  %s3996_s0 = sld [smem:[#allocation6 + $0x1d]] }
 0x347   : > { %v2212_v38 = vmul.f32 %v5542_v49, %v2210_v36  ;;  %v5765_v34 = vsel %vm591_vm0, %v2304_v57, %v7028_v0  ;;  %v2211_v40 = vmul.f32 %v2210_v36, %v5548_v54  ;;  %v2231_v2 = vmul.f32 %v2230_v52, %v5548_v54 }
 0x348   : > { %2027 = vrot.lane.b32.xlu1 %v1952_v37, %s7104_s27  ;;  %v5774_v50 = vsel %vm591_vm0, %v2317_v4, %v7027_v51  ;;  %v5782_v37 = vmul.f32 %v5542_v49, %v2230_v52  ;;  %v5787_v57 = vmul.f32 %v5542_v49, %v1434_v53  ;;  %v2235_v36 = vmul.f32 %v2234_v22, %v5548_v54 }
 0x349   : > { %2025 = vrot.lane.b32.xlu0 %v1951_v59, %s7104_s27  ;;  %v1435_v59 = vmul.f32 %v1434_v53, %v5548_v54  ;;  %v5798_v4 = vmul.f32 %v5542_v49, %v2234_v22  ;;  %v2339_v51 = vrot.slane %v2231_v2, 2  ;;  %v5804_v0 = vmul.f32 %v5542_v49, %v1446_v30 }
 0x34a   : > { %7105 = vst [vmem:[#allocation14_spill] sm:$0xff] %v5782_v37  ;;  %v7033_v52 = vrot.slane %v5782_v37, 2  ;;  %v1447_v53 = vmul.f32 %v1446_v30, %v5548_v54  ;;  %v7035_v33 = vrot.slane %v5787_v57, 1  ;;  %v2352_v47 = vrot.slane %v2235_v36, 2 }
 0x34b   : > { %7106 = vst [vmem:[#allocation15_spill] sm:$0xff] %v5798_v4  ;;  %7107 = vst [vmem:[#allocation16_spill] sm:$0xff] %v5804_v0  ;;  %v1515_v22 = vrot.slane %v1435_v59, 1  ;;  %v7034_v2 = vrot.slane %v5798_v4, 2  ;;  %v7036_v30 = vrot.slane %v5804_v0, 2  ;;  %v5822_v7 = vmul.f32 %v5542_v49, %v1694_v56 }
 0x34c   : > { %2277 = vrot.lane.b32.xlu1 %v2208_v8, %s7103_s26  ;;  %v5816_v21 = vsel %vm665_vm1, %v2339_v51, %v7033_v52  ;;  %v1550_v8 = vrot.slane %v1447_v53, 2  ;;  %v1695_v51 = vmul.f32 %v1694_v56, %v5548_v54  ;;  %v5840_v36 = vmul.f32 %v5542_v49, %v1706_v27 }
 0x34d   : > { %2275 = vrot.lane.b32.xlu0 %v2207_v20, %s7103_s26  ;;  %v5827_v59 = vsel %vm591_vm0, %v1515_v22, %v7035_v33  ;;  %v5832_v20 = vsel %vm665_vm1, %v2352_v47, %v7034_v2  ;;  %v7046_v22 = vrot.slane %v5822_v7, 1  ;;  %v1707_v52 = vmul.f32 %v1706_v27, %v5548_v54 }
 0x34e   : > { %7108 = vst [vmem:[#allocation17_spill] sm:$0xff] %v5832_v20  ;;  %7109 = vst [vmem:[#allocation18_spill] sm:$0xff] %v5840_v36  ;;  %v5845_v53 = vsel %vm665_vm1, %v1550_v8, %v7036_v30  ;;  %v5854_v47 = vmul.f32 %v5542_v49, %v1954_v23  ;;  %v1775_v56 = vrot.slane %v1695_v51, 1  ;;  %v7043_v2 = vrot.slane %v5840_v36, 2 }
 0x34f   : > { %7110 = vst [vmem:[#allocation19_spill] sm:$0xff] %v5845_v53  ;;  %v1955_v33 = vmul.f32 %v1954_v23, %v5548_v54  ;;  %v5864_v8 = vmul.f32 %v5542_v49, %v1966_v28  ;;  %v1810_v30 = vrot.slane %v1707_v52, 2  ;;  %v1967_v35 = vmul.f32 %v1966_v28, %v5548_v54 }
 0x350   : > { %2287 = vrot.lane.b32.xlu1 %v2212_v38, %s7104_s27  ;;  %v7045_v27 = vrot.slane %v5854_v47, 1  ;;  %v5872_v38 = vmul.f32 %v5542_v49, %v2214_v16  ;;  %v5877_v51 = vsel %vm591_vm0, %v1775_v56, %v7046_v22  ;;  %v2215_v39 = vmul.f32 %v2214_v16, %v5548_v54 }
 0x351   : > { %7111 = vst [vmem:[#allocation20_spill] sm:$0xff] %v5864_v8  ;;  %2285 = vrot.lane.b32.xlu0 %v2211_v40, %s7104_s27  ;;  %v2035_v23 = vrot.slane %v1955_v33, 1  ;;  %v7042_v44 = vrot.slane %v5864_v8, 2  ;;  %v5884_v40 = vsel %vm665_vm1, %v1810_v30, %v7043_v2  ;;  %v2070_v52 = vrot.slane %v1967_v35, 2 }
 0x352   : > { %7112 = vst [vmem:[#allocation21_spill] sm:$0xff] %v5884_v40  ;;  %v7044_v28 = vrot.slane %v5872_v38, 1  ;;  %v2227_v32 = vmul.f32 %v2226_v46, %v5548_v54  ;;  %v2295_v16 = vrot.slane %v2215_v39, 1  ;;  %v5897_v56 = vmul.f32 %v5542_v49, %v2226_v46 }
 0x353   : > { %v5894_v33 = vsel %vm591_vm0, %v2035_v23, %v7045_v27  ;;  %v5904_v35 = vsel %vm665_vm1, %v2070_v52, %v7042_v44  ;;  %v1474_v14 = vstv %s5906_s1  ;;  %v1734_v39 = vstv %s5923_s5  ;;  %s4014_s1 = sld [smem:[#allocation6 + $0x2e]]  ;;  %s4004_s5 = sld [smem:[#allocation6 + $0x24]] }
 0x354   : > { %1529 = vrot.lane.b32.xlu1 %v1525_v18, %s7103_s26  ;;  %7113 = vst [vmem:[#allocation22_spill] sm:$0xff] %v5897_v56  ;;  %7114 = vst [vmem:[#allocation23_spill] sm:$0xff] %v5904_v35  ;;  %v2330_v30 = vrot.slane %v2227_v32, 2  ;;  %v5911_v6 = vsel %vm591_vm0, %v2295_v16, %v7044_v28  ;;  %v7041_v18 = vrot.slane %v5897_v56, 2  ;;  %v1490_v32 = vstv %s5921_s4  ;;  %s3985_s4 = sld [smem:[#allocation6 + $0x12]] }
 0x355   : > { %1527 = vrot.lane.b32.xlu0 %v5597_v1, %s7103_s26  ;;  %v1746_v46 = vstv %s5934_s7  ;;  %v1750_v23 = vstv %s5936_s9  ;;  %v7052_v41 = vstv %s5938_s10  ;;  %s6408_s7 = sld [smem:[#allocation6 + $0x40]]  ;;  %s6415_s9 = sld [smem:[#allocation6 + $0x41]] }
 0x356   : > { %v5928_v1 = vsel %vm665_vm1, %v2330_v30, %v7041_v18  ;;  %v2270_v56 = vstv %s6002_s14  ;;  %v1470_v36 = vstv %s6039_s28  ;;  %v7127_v4 = vstv %s5949_s25  ;;  %s6543_s25 = sld [smem:[#allocation6 + $0x3f]]  ;;  %s4022_s14 = sld [smem:[#allocation7 + $0x2]] }
 0x357   : > { %7115 = vst [vmem:[#allocation24_spill] sm:$0xff] %v5928_v1  ;;  %v7119_v1 = vstv %s5940_s11  ;;  %v7131_v37 = vmov %v7127_v4  ;;  %s3994_s11 = sld [smem:[#allocation6 + $0x1b]] }
 0x358   : > { %1542 = vrot.lane.b32.xlu1 %v1538_v10, %s7104_s27  ;;  %v1478_v10 = vstv %s5914_s2  ;;  %s4015_s2 = sld [smem:[#allocation6 + $0x2f]]  ;;  %s4041_s28 = sld [smem:[#allocation7 + $0x3]] }
 0x359   : > { %1540 = vrot.lane.b32.xlu0 %v5602_v13, %s7104_s27  ;;  %v1486_v13 = vstv %s5916_s3  ;;  %s1421_s3 = sld [smem:[#allocation6]] }
 0x35c   : > { %1564 = vrot.lane.b32.xlu1 %v1560_v5, %s7103_s26 }
 0x35d   : > { %1562 = vrot.lane.b32.xlu0 %v5611_v24, %s7103_s26  ;;  %v1738_v24 = vstv %s5932_s6  ;;  %s4023_s6 = sld [smem:[#allocation6 + $0x36]] }
 0x360   : > { %1577 = vrot.lane.b32.xlu1 %v1573_v25, %s7104_s27  ;;  %v7116_v25 = vrot.slane %v5605_v15, 1 }
 0x361   : > { %1575 = vrot.lane.b32.xlu0 %v5616_v26, %s7104_s27  ;;  %v5958_v9 = vpop.f32.mrb[4].mxu0 }
 0x362   : > { %v5962_v5 = vpop.f32.mrb[5].mxu0  ;;  %v5981_v18 = vmul.f32 %v5958_v9, %v1474_v14  ;;  %v5985_v2 = vmul.f32 %v5958_v9, %v1478_v10  ;;  %v5989_v27 = vmul.f32 %v5958_v9, %v1486_v13  ;;  %v6138_v53 = vmul.f32 %v5958_v9, %v7127_v4 }
 0x363   : > { %v1475_v44 = vmul.f32 %v1474_v14, %v5962_v5  ;;  %v1479_v28 = vmul.f32 %v1478_v10, %v5962_v5  ;;  %v1487_v15 = vmul.f32 %v1486_v13, %v5962_v5  ;;  %v7117_v13 = vrot.slane %v5619_v29, 1 }
 0x364   : > { %1789 = vrot.lane.b32.xlu1 %v7116_v25, %s7103_s26  ;;  %v5993_v25 = vmul.f32 %v5958_v9, %v1490_v32  ;;  %v7050_v14 = vrot.slane %v5981_v18, 1  ;;  %v7049_v30 = vrot.slane %v5985_v2, 1  ;;  %v7047_v16 = vrot.slane %v5989_v27, 2  ;;  %7128 = vst [vmem:[#allocation25_spill] sm:$0xff] %v6138_v53 }
 0x365   : > { %1787 = vrot.lane.b32.xlu0 %v5641_v43, %s7103_s26  ;;  %v1491_v43 = vmul.f32 %v1490_v32, %v5962_v5  ;;  %v1616_v22 = vrot.slane %v1475_v44, 1  ;;  %v1629_v10 = vrot.slane %v1479_v28, 1  ;;  %v1651_v26 = vrot.slane %v1487_v15, 2 }
 0x366   : > { %v7048_v32 = vrot.slane %v5993_v25, 2  ;;  %v6022_v29 = vmul.f32 %v5958_v9, %v1734_v39  ;;  %v1735_v15 = vmul.f32 %v1734_v39, %v5962_v5  ;;  %v2255_v20 = vmul.f32 %v7131_v37, %v5962_v5 }
 0x367   : > { %v1664_v52 = vrot.slane %v1491_v43, 2  ;;  %v6014_v44 = vsel %vm591_vm0, %v1616_v22, %v7050_v14  ;;  %v6019_v28 = vsel %vm591_vm0, %v1629_v10, %v7049_v30  ;;  %v6028_v43 = vsel %vm665_vm1, %v1651_v26, %v7047_v16 }
 0x368   : > { %1802 = vrot.lane.b32.xlu1 %v7117_v13, %s7104_s27  ;;  %v6036_v22 = vmul.f32 %v5958_v9, %v1738_v24  ;;  %v1739_v10 = vmul.f32 %v1738_v24, %v5962_v5  ;;  %v7051_v39 = vrot.slane %v6022_v29, 1  ;;  %v1876_v13 = vrot.slane %v1735_v15, 1 }
 0x369   : > { %1800 = vrot.lane.b32.xlu0 %v5654_v12, %s7104_s27  ;;  %v6033_v12 = vsel %vm665_vm1, %v1664_v52, %v7048_v32  ;;  %v6043_v26 = vmul.f32 %v5958_v9, %v1746_v46  ;;  %v1747_v16 = vmul.f32 %v1746_v46, %v5962_v5  ;;  %v7118_v52 = vrot.slane %v5625_v3, 2 }
 0x36a   : > { %v7054_v32 = vrot.slane %v6036_v22, 1  ;;  %v1889_v24 = vrot.slane %v1739_v10, 1  ;;  %v6051_v30 = vmul.f32 %v5958_v9, %v1750_v23  ;;  %v1751_v15 = vmul.f32 %v1750_v23, %v5962_v5 }
 0x36b   : > { %v6059_v3 = vsel %vm591_vm0, %v1876_v13, %v7051_v39  ;;  %v7055_v46 = vrot.slane %v6043_v26, 2  ;;  %v6065_v10 = vmul.f32 %v5958_v9, %v7052_v41  ;;  %v6076_v13 = vmul.f32 %v5958_v9, %v7119_v1 }
 0x36c   : > { %1824 = vrot.lane.b32.xlu1 %v7118_v52, %s7103_s26  ;;  %v1911_v52 = vrot.slane %v1747_v16, 2  ;;  %v6070_v23 = vsel %vm591_vm0, %v1889_v24, %v7054_v32  ;;  %v1924_v14 = vrot.slane %v1751_v15, 2  ;;  %v2258_v39 = vstv %s5996_s29 }
 0x36d   : > { %1822 = vrot.lane.b32.xlu0 %v5666_v60, %s7103_s26  ;;  %v7056_v60 = vrot.slane %v6051_v30, 2  ;;  %v2266_v41 = vstv %s5998_s24  ;;  %v7120_v24 = vrot.slane %v5633_v42, 2  ;;  %v7121_v32 = vstv %s5942_s12 }
 0x36e   : > { %v6081_v16 = vsel %vm665_vm1, %v1911_v52, %v7055_v46  ;;  %v6098_v52 = vmul.f32 %v5958_v9, %v7121_v32  ;;  %v7122_v46 = vstv %s5938_s10  ;;  %v7124_v32 = vmov %v7119_v1  ;;  %s3976_s10 = sld [smem:[#allocation6 + $0x9]] }
 0x36f   : > { %v6092_v15 = vsel %vm665_vm1, %v1924_v14, %v7056_v60  ;;  %v1995_v35 = vmul.f32 %v7122_v46, %v5962_v5  ;;  %v7123_v14 = vstv %s5947_s13  ;;  %v1999_v60 = vmul.f32 %v7124_v32, %v5962_v5  ;;  %s4003_s13 = sld [smem:[#allocation7 + $0x1]] }
 0x370   : > { %1837 = vrot.lane.b32.xlu1 %v7120_v24, %s7104_s27  ;;  %v6113_v24 = vmul.f32 %v5958_v9, %v7123_v14  ;;  %v7125_v1 = vstv %s5942_s12  ;;  %v7126_v42 = vmov %v7123_v14  ;;  %v7132_v4 = vrot.slane %v6076_v13, 1  ;;  %s4013_s12 = sld [smem:[#allocation6 + $0x2d]] }
 0x371   : > { %1835 = vrot.lane.b32.xlu0 %v5681_v45, %s7104_s27  ;;  %v2007_v46 = vmul.f32 %v7125_v1, %v5962_v5  ;;  %v2136_v8 = vrot.slane %v1995_v35, 1  ;;  %v2011_v40 = vmul.f32 %v7126_v42, %v5962_v5  ;;  %v2149_v32 = vrot.slane %v1999_v60, 1 }
 0x372   : > { %v7062_v14 = vrot.slane %v6113_v24, 2  ;;  %v7129_v45 = vrot.slane %v5647_v19, 1  ;;  %v7130_v35 = vrot.slane %v6065_v10, 1  ;;  %v6152_v60 = vmul.f32 %v5958_v9, %v2258_v39 }
 0x373   : > { %v2171_v1 = vrot.slane %v2007_v46, 2  ;;  %v2184_v0 = vrot.slane %v2011_v40, 2  ;;  %v6159_v19 = vsel %vm591_vm0, %v2149_v32, %v7132_v4  ;;  %v7133_v46 = vrot.slane %v6098_v52, 2 }
 0x374   : > { %2049 = vrot.lane.b32.xlu1 %v7129_v45, %s7103_s26  ;;  %v6146_v42 = vsel %vm591_vm0, %v2136_v8, %v7130_v35  ;;  %v7064_v37 = vrot.slane %v6138_v53, 1  ;;  %v2259_v40 = vmul.f32 %v2258_v39, %v5962_v5  ;;  %v2396_v45 = vrot.slane %v2255_v20, 1 }
 0x375   : > { %2047 = vrot.lane.b32.xlu0 %v5703_v58, %s7103_s26  ;;  %v6164_v8 = vsel %vm665_vm1, %v2171_v1, %v7133_v46  ;;  %v6171_v58 = vsel %vm665_vm1, %v2184_v0, %v7062_v14  ;;  %v7065_v35 = vrot.slane %v6152_v60, 1  ;;  %v6175_v32 = vmul.f32 %v5958_v9, %v2266_v41 }
 0x376   : > { %7134 = vst [vmem:[#allocation26_spill] sm:$0xff] %v6164_v8  ;;  %7135 = vst [vmem:[#allocation27_spill] sm:$0xff] %v6171_v58  ;;  %v2409_v4 = vrot.slane %v2259_v40, 1  ;;  %v2267_v1 = vmul.f32 %v2266_v41, %v5962_v5  ;;  %v6179_v46 = vmul.f32 %v5958_v9, %v2270_v56  ;;  %v2271_v39 = vmul.f32 %v2270_v56, %v5962_v5 }
 0x377   : > { %7136 = vst [vmem:[#allocation28_spill] sm:$0xff] %v6175_v32  ;;  %v7138_v0 = vrot.slane %v5672_v11, 1  ;;  %v6188_v20 = vsel %vm591_vm0, %v2396_v45, %v7064_v37  ;;  %v1482_v14 = vstv %s6103_s15  ;;  %v1730_v41 = vstv %s6105_s16  ;;  %s7210_s15 = sld [smem:[#allocation13_spill]] }
 0x378   : > { %7137 = vst [vmem:[#allocation29_spill] sm:$0xff] %v6179_v46  ;;  %7139 = vst [vmem:[#allocation30_spill] sm:$0xff] %v6188_v20  ;;  %v6200_v56 = vsel %vm591_vm0, %v2409_v4, %v7065_v35  ;;  %v2431_v11 = vrot.slane %v2267_v1, 2  ;;  %v2444_v53 = vrot.slane %v2271_v39, 2  ;;  %v1742_v45 = vstv %s6121_s17  ;;  %s7211_s17 = sld [smem:[#allocation45_spill]] }
 0x379   : > { %2062 = vrot.lane.b32.xlu1 %v7138_v0, %s7104_s27  ;;  %2060 = vrot.lane.b32.xlu0 %v5716_v48, %s7104_s27  ;;  %v7067_v0 = vrot.slane %v6179_v46, 2  ;;  %v1990_v37 = vstv %s6123_s30  ;;  %v2002_v20 = vstv %s6130_s18  ;;  %v7140_v58 = vrot.slane %v6175_v32, 2  ;;  %s7209_s30 = sld [smem:[#allocation43_spill]] }
 0x37a   : > { %v2250_v40 = vstv %s6132_s19  ;;  %v1471_v4 = vmul.f32 %v1470_v36, %v5962_v5  ;;  %v6219_v1 = vmul.f32 %v5958_v9, %v1470_v36  ;;  %v7143_v39 = vrot.slane %v5686_v17, 2 }
 0x37b   : > { %v6210_v8 = vsel %vm665_vm1, %v2431_v11, %v7140_v58  ;;  %v6215_v48 = vsel %vm665_vm1, %v2444_v53, %v7067_v0  ;;  %v1483_v35 = vmul.f32 %v1482_v14, %v5962_v5  ;;  %v6226_v32 = vmul.f32 %v5958_v9, %v1482_v14 }
 0x37c   : > { %7141 = vst [vmem:[#allocation31_spill] sm:$0xff] %v6210_v8  ;;  %7142 = vst [vmem:[#allocation32_spill] sm:$0xff] %v6215_v48  ;;  %v1731_v58 = vmul.f32 %v1730_v41, %v5962_v5  ;;  %v6230_v11 = vmul.f32 %v5958_v9, %v1730_v41  ;;  %v1607_v53 = vrot.slane %v1471_v4, 1  ;;  %v7071_v36 = vrot.slane %v6219_v1, 1 }
 0x37d   : > { %2084 = vrot.lane.b32.xlu1 %v7143_v39, %s7103_s26  ;;  %2082 = vrot.lane.b32.xlu0 %v5727_v62, %s7103_s26  ;;  %v1743_v17 = vmul.f32 %v1742_v45, %v5962_v5  ;;  %v6237_v39 = vmul.f32 %v5958_v9, %v1742_v45  ;;  %v1642_v0 = vrot.slane %v1483_v35, 2  ;;  %v7069_v14 = vrot.slane %v6226_v32, 2 }
 0x37e   : > { %v1867_v48 = vrot.slane %v1731_v58, 1  ;;  %v7070_v46 = vrot.slane %v6230_v11, 1  ;;  %v6246_v62 = vsel %vm591_vm0, %v1607_v53, %v7071_v36  ;;  %v1991_v8 = vmul.f32 %v1990_v37, %v5962_v5 }
 0x37f   : > { %v1902_v41 = vrot.slane %v1743_v17, 2  ;;  %v7072_v4 = vrot.slane %v6237_v39, 2  ;;  %v7144_v35 = vrot.slane %v5695_v61, 2  ;;  %v6256_v45 = vsel %vm665_vm1, %v1642_v0, %v7069_v14 }
 0x380   : > { %v6261_v58 = vsel %vm591_vm0, %v1867_v48, %v7070_v46  ;;  %v6264_v53 = vmul.f32 %v5958_v9, %v1990_v37  ;;  %v2262_v17 = vstv %s6193_s20  ;;  %v2003_v0 = vmul.f32 %v2002_v20, %v5962_v5  ;;  %s7212_s20 = sld [smem:[#allocation46_spill]] }
 0x381   : > { %2097 = vrot.lane.b32.xlu1 %v7144_v35, %s7104_s27  ;;  %2095 = vrot.lane.b32.xlu0 %v5744_v63, %s7104_s27  ;;  %v6272_v61 = vsel %vm665_vm1, %v1902_v41, %v7072_v4  ;;  %v2127_v35 = vrot.slane %v1991_v8, 1  ;;  %v6276_v14 = vmul.f32 %v5958_v9, %v2002_v20  ;;  %v2251_v37 = vmul.f32 %v2250_v40, %v5962_v5 }
 0x382   : > { %7145 = vst [vmem:[#allocation33_spill] sm:$0xff] %v6272_v61  ;;  %v7076_v48 = vrot.slane %v6264_v53, 1  ;;  %v6281_v46 = vmul.f32 %v5958_v9, %v2250_v40  ;;  %v2162_v63 = vrot.slane %v2003_v0, 2  ;;  %v2263_v41 = vmul.f32 %v2262_v17, %v5962_v5 }
 0x383   : > { %v7075_v36 = vrot.slane %v6276_v14, 2  ;;  %v6286_v8 = vmul.f32 %v5958_v9, %v2262_v17  ;;  %v7146_v20 = vrot.slane %v5709_v31, 1  ;;  %v2387_v40 = vrot.slane %v2251_v37, 1 }
 0x384   : > { %v6294_v4 = vsel %vm591_vm0, %v2127_v35, %v7076_v48  ;;  %v7074_v61 = vrot.slane %v6281_v46, 1  ;;  %v2422_v0 = vrot.slane %v2263_v41, 2  ;;  %v1462_v35 = vstv %s6241_s21 }
 0x385   : > { %2309 = vrot.lane.b32.xlu1 %v7146_v20, %s7103_s26  ;;  %2307 = vrot.lane.b32.xlu0 %v5765_v34, %s7103_s26  ;;  %v6302_v17 = vsel %vm665_vm1, %v2162_v63, %v7075_v36  ;;  %v7073_v31 = vrot.slane %v6286_v8, 2  ;;  %v7147_v34 = vrot.slane %v5733_v55, 1  ;;  %v1464_v63 = vmul.f32 %v5958_v9, %v1462_v35 }
 0x386   : > { %v6308_v20 = vsel %vm591_vm0, %v2387_v40, %v7074_v61  ;;  %v1463_v41 = vmul.f32 %v1462_v35, %v5962_v5  ;;  %v1466_v40 = vstv %s3978_s22  ;;  %v1722_v61 = vstv %s3995_s23  ;;  %s488_s21 = scalar_lea.vmem %s7212_s20, %s7210_s15 }
 0x387   : > { %v6314_v37 = vsel %vm665_vm1, %v2422_v0, %v7073_v31  ;;  %v1468_v0 = vmul.f32 %v5958_v9, %v1466_v40  ;;  %v1467_v31 = vmul.f32 %v1466_v40, %v5962_v5  ;;  %v1724_v55 = vmul.f32 %v5958_v9, %v1722_v61 }
 0x388   : > { %v1726_v35 = vstv %s3996_s0  ;;  %v7150_v48 = vrot.slane %v5989_v27, 2  ;;  %v7152_v27 = vrot.slane %v5993_v25, 2  ;;  %v7154_v25 = vrot.slane %v5822_v7, 1 }
 0x389   : > { %2322 = vrot.lane.b32.xlu1 %v7147_v34, %s7104_s27  ;;  %2320 = vrot.lane.b32.xlu0 %v5774_v50, %s7104_s27  ;;  %v1723_v50 = vmul.f32 %v1722_v61, %v5962_v5  ;;  %v1728_v34 = vmul.f32 %v5958_v9, %v1726_v35  ;;  %v1986_v61 = vstv %s4015_s2  ;;  %v2202_v7 = vstv %s4023_s6 }
 0x38a   : > { %vm3833_vm1 = vcmask 319488  }
 0x38d   : > { %1589 = vrot.lane.b32.xlu1 %v1464_v63, %s7103_s26  ;;  %1587 = vrot.lane.b32.xlu0 %v1463_v41, %s7103_s26  ;;  %v1727_v63 = vmul.f32 %v1726_v35, %v5962_v5  ;;  %v1982_v41 = vstv %s4014_s1  ;;  %v1422_v35 = vstv %s1421_s3  ;;  %s7204_s1 = sld [smem:[#allocation41_spill]] }
 0x38e   : > { %v1983_v40 = vmul.f32 %v1982_v41, %v5962_v5 }
 0x391   : > { %1599 = vrot.lane.b32.xlu1 %v1468_v0, %s7104_s27  ;;  %1597 = vrot.lane.b32.xlu0 %v1467_v31, %s7104_s27  ;;  %v1984_v31 = vmul.f32 %v5958_v9, %v1982_v41  ;;  %v1988_v0 = vmul.f32 %v5958_v9, %v1986_v61 }
 0x395   : > { %1849 = vrot.lane.b32.xlu1 %v1724_v55, %s7103_s26  ;;  %1847 = vrot.lane.b32.xlu0 %v1723_v50, %s7103_s26  ;;  %v1987_v55 = vmul.f32 %v1986_v61, %v5962_v5  ;;  %v7148_v50 = vrot.slane %v5981_v18, 1 }
 0x399   : > { %1859 = vrot.lane.b32.xlu1 %v1728_v34, %s7104_s27  ;;  %1857 = vrot.lane.b32.xlu0 %v1727_v63, %s7104_s27  ;;  %v1424_v63 = vmul.f32 %v5542_v49, %v1422_v35 }
 0x39d   : > { %2109 = vrot.lane.b32.xlu1 %v1984_v31, %s7103_s26  ;;  %2107 = vrot.lane.b32.xlu0 %v1983_v40, %s7103_s26  ;;  %v1423_v31 = vmul.f32 %v1422_v35, %v5548_v54  ;;  %v7149_v40 = vrot.slane %v5985_v2, 1  ;;  %v7151_v35 = vrot.slane %v5787_v57, 1 }
 0x3a1   : > { %2119 = vrot.lane.b32.xlu1 %v1988_v0, %s7104_s27  ;;  %2117 = vrot.lane.b32.xlu0 %v1987_v55, %s7104_s27  ;;  %v1682_v55 = vstv %s3985_s4 }
 0x3a2   : > { %v1684_v2 = vmul.f32 %v5542_v49, %v1682_v55 }
 0x3a5   : > { %1621 = vrot.lane.b32.xlu1 %v7148_v50, %s7103_s26  ;;  %1619 = vrot.lane.b32.xlu0 %v6014_v44, %s7103_s26 }
 0x3a6   : > { %v1498_v34 = vpop.permute.xlu1 %1497 }
 0x3a7   : > { %v1496_v41 = vpop.permute.xlu0 %1495  ;;  %v1502_v61 = vadd.f32 %v1498_v34, %v1424_v63  ;;  %v1683_v63 = vmul.f32 %v1682_v55, %v5548_v54  ;;  %v7153_v55 = vrot.slane %v6022_v29, 1  ;;  %v7155_v29 = vrot.slane %v6036_v22, 1 }
 0x3a8   : > { %v1501_v18 = vadd.f32 %v1496_v41, %v1423_v31  ;;  %v7157_v22 = vrot.slane %v5854_v47, 1 }
 0x3a9   : > { %1634 = vrot.lane.b32.xlu1 %v7149_v40, %s7104_s27  ;;  %1632 = vrot.lane.b32.xlu0 %v6019_v28, %s7104_s27 }
 0x3aa   : > { %v1508_v0 = vpop.permute.xlu1 %1507 }
 0x3ab   : > { %v1512_v50 = vadd.f32 %v1508_v0, %v1502_v61  ;;  %v1506_v44 = vpop.permute.xlu0 %1505 }
 0x3ac   : > { %v1511_v36 = vadd.f32 %v1506_v44, %v1501_v18 }
 0x3ad   : > { %1656 = vrot.lane.b32.xlu1 %v7150_v48, %s7103_s26  ;;  %1654 = vrot.lane.b32.xlu0 %v6028_v43, %s7103_s26  ;;  %v1521_v34 = vadd.f32 %v7151_v35, %v1512_v50  ;;  %v1942_v48 = vstv %s4004_s5  ;;  %s7208_s5 = sld [smem:[#allocation44_spill]] }
 0x3ae   : > { %v1758_v28 = vpop.permute.xlu1 %1757  ;;  %v1520_v41 = vadd.f32 %v5827_v59, %v1511_v36  ;;  %v1944_v59 = vmul.f32 %v5542_v49, %v1942_v48  ;;  %v1943_v50 = vmul.f32 %v1942_v48, %v5548_v54 }
 0x3af   : > { %v1762_v31 = vadd.f32 %v1758_v28, %v1684_v2  ;;  %v1756_v40 = vpop.permute.xlu0 %1755 }
 0x3b0   : > { %v1761_v61 = vadd.f32 %v1756_v40, %v1683_v63 }
 0x3b1   : > { %1669 = vrot.lane.b32.xlu1 %v7152_v27, %s7104_s27  ;;  %1667 = vrot.lane.b32.xlu0 %v6033_v12, %s7104_s27 }
 0x3b2   : > { %v1768_v43 = vpop.permute.xlu1 %1767 }
 0x3b3   : > { %v1772_v57 = vadd.f32 %v1768_v43, %v1762_v31  ;;  %v1766_v18 = vpop.permute.xlu0 %1765 }
 0x3b4   : > { %v1771_v0 = vadd.f32 %v1766_v18, %v1761_v61  ;;  %v7156_v61 = vrot.slane %v6043_v26, 2  ;;  %v7158_v26 = vrot.slane %v6051_v30, 2  ;;  %v7160_v30 = vrot.slane %v5872_v38, 1 }
 0x3b5   : > { %1881 = vrot.lane.b32.xlu1 %v7153_v55, %s7103_s26  ;;  %1879 = vrot.lane.b32.xlu0 %v6059_v3, %s7103_s26  ;;  %v6380_v36 = vadd.f32 %v7154_v25, %v1772_v57 }
 0x3b6   : > { %v2018_v12 = vpop.permute.xlu1 %2017  ;;  %v6384_v44 = vadd.f32 %v5877_v51, %v1771_v0  ;;  %v2204_v51 = vmul.f32 %v5542_v49, %v2202_v7 }
 0x3b7   : > { %v2022_v2 = vadd.f32 %v2018_v12, %v1944_v59  ;;  %v2016_v35 = vpop.permute.xlu0 %2015 }
 0x3b8   : > { %v2021_v28 = vadd.f32 %v2016_v35, %v1943_v50 }
 0x3b9   : > { %1894 = vrot.lane.b32.xlu1 %v7155_v29, %s7104_s27  ;;  %1892 = vrot.lane.b32.xlu0 %v6070_v23, %s7104_s27  ;;  %v2203_v23 = vmul.f32 %v2202_v7, %v5548_v54 }
 0x3ba   : > { %v2028_v3 = vpop.permute.xlu1 %2027 }
 0x3bb   : > { %v2032_v63 = vadd.f32 %v2028_v3, %v2022_v2  ;;  %v2026_v31 = vpop.permute.xlu0 %2025  ;;  %v2242_v2 = vstv %s6408_s7 }
 0x3bc   : > { %v2031_v40 = vadd.f32 %v2026_v31, %v2021_v28  ;;  %v2243_v29 = vmul.f32 %v2242_v2, %v5962_v5 }
 0x3bd   : > { %1916 = vrot.lane.b32.xlu1 %v7156_v61, %s7103_s26  ;;  %1914 = vrot.lane.b32.xlu0 %v6081_v16, %s7103_s26  ;;  %v6399_v27 = vadd.f32 %v7157_v22, %v2032_v63 }
 0x3be   : > { %v2278_v43 = vpop.permute.xlu1 %2277  ;;  %v6403_v48 = vadd.f32 %v5894_v33, %v2031_v40  ;;  %v7159_v33 = vrot.slane %v6065_v10, 1  ;;  %v7161_v10 = vrot.slane %v6076_v13, 1  ;;  %v7165_v13 = vld [vmem:[#allocation16_spill] sm:$0xff]  ;;  %v7167_v40 = vld [vmem:[#allocation19_spill] sm:$0xff] }
 0x3bf   : > { %v2282_v57 = vadd.f32 %v2278_v43, %v2204_v51  ;;  %v2276_v18 = vpop.permute.xlu0 %2275  ;;  %v7166_v7 = vrot.slane %v7165_v13, 2 }
 0x3c0   : > { %v2281_v0 = vadd.f32 %v2276_v18, %v2203_v23 }
 0x3c1   : > { %1929 = vrot.lane.b32.xlu1 %v7158_v26, %s7104_s27  ;;  %1927 = vrot.lane.b32.xlu0 %v6092_v15, %s7104_s27 }
 0x3c2   : > { %v2288_v49 = vpop.permute.xlu1 %2287 }
 0x3c3   : > { %v2292_v47 = vadd.f32 %v2288_v49, %v2282_v57  ;;  %v2286_v16 = vpop.permute.xlu0 %2285  ;;  %v7168_v57 = vld [vmem:[#allocation15_spill] sm:$0xff] }
 0x3c4   : > { %v2291_v54 = vadd.f32 %v2286_v16, %v2281_v0  ;;  %v7169_v18 = vrot.slane %v7168_v57, 2  ;;  %v1458_v0 = vstv %s3976_s10  ;;  %v7177_v57 = vld [vmem:[#allocation25_spill] sm:$0xff]  ;;  %s7205_s10 = sld [smem:[#allocation42_spill]] }
 0x3c5   : > { %2141 = vrot.lane.b32.xlu1 %v7159_v33, %s7103_s26  ;;  %2342 = vrot.lane.b32.xlu0 %v5816_v21, %s7103_s26  ;;  %v6421_v55 = vadd.f32 %v7160_v30, %v2292_v47  ;;  %v7162_v21 = vld [vmem:[#allocation17_spill] sm:$0xff]  ;;  %v1460_v16 = vmul.f32 %v5958_v9, %v1458_v0  ;;  %v7170_v33 = vrot.slane %v6098_v52, 2  ;;  %v1459_v30 = vmul.f32 %v1458_v0, %v5962_v5  ;;  %v7179_v0 = vld [vmem:[#allocation30_spill] sm:$0xff] }
 0x3c6   : > { %v1530_v59 = vpop.permute.xlu1 %1529  ;;  %v6424_v15 = vadd.f32 %v5911_v6, %v2291_v54  ;;  %v7163_v6 = vld [vmem:[#allocation14_spill] sm:$0xff] }
 0x3c7   : > { %v1534_v25 = vadd.f32 %v1530_v59, %v1521_v34  ;;  %v1528_v12 = vpop.permute.xlu0 %1527  ;;  %v7164_v34 = vrot.slane %v7163_v6, 2 }
 0x3c8   : > { %v1533_v50 = vadd.f32 %v1528_v12, %v1520_v41  ;;  %v2246_v41 = vstv %s6415_s9 }
 0x3c9   : > { %2154 = vrot.lane.b32.xlu1 %v7161_v10, %s7104_s27  ;;  %2355 = vrot.lane.b32.xlu0 %v7162_v21, %s7104_s27  ;;  %v2247_v43 = vmul.f32 %v2246_v41, %v5962_v5 }
 0x3ca   : > { %v1543_v38 = vpop.permute.xlu1 %1542 }
 0x3cb   : > { %v1547_v35 = vadd.f32 %v1543_v38, %v1534_v25  ;;  %v1541_v28 = vpop.permute.xlu0 %1540  ;;  %v7171_v38 = vrot.slane %v6113_v24, 2 }
 0x3cc   : > { %v1546_v3 = vadd.f32 %v1541_v28, %v1533_v50 }
 0x3cd   : > { %2344 = vrot.lane.b32.xlu1 %v7164_v34, %s7103_s26  ;;  %2367 = vrot.lane.b32.xlu0 %v2243_v29, %s7103_s26  ;;  %v1556_v63 = vadd.f32 %v7166_v7, %v1547_v35  ;;  %v7175_v34 = vld [vmem:[#allocation21_spill] sm:$0xff]  ;;  %v2248_v7 = vmul.f32 %v5958_v9, %v2246_v41 }
 0x3ce   : > { %v1565_v31 = vpop.permute.xlu1 %1564  ;;  %v1555_v61 = vadd.f32 %v7167_v40, %v1546_v3  ;;  %v7176_v40 = vld [vmem:[#allocation27_spill] sm:$0xff] }
 0x3cf   : > { %v1569_v51 = vadd.f32 %v1565_v31, %v1556_v63  ;;  %v1563_v22 = vpop.permute.xlu0 %1562 }
 0x3d0   : > { %v1568_v23 = vadd.f32 %v1563_v22, %v1555_v61 }
 0x3d1   : > { %2357 = vrot.lane.b32.xlu1 %v7169_v18, %s7104_s27  ;;  %2377 = vrot.lane.b32.xlu0 %v2247_v43, %s7104_s27  ;;  %v7178_v18 = vrot.slane %v7177_v57, 1 }
 0x3d2   : > { %v1578_v26 = vpop.permute.xlu1 %1577 }
 0x3d3   : > { %v1582_v49 = vadd.f32 %v1578_v26, %v1569_v51  ;;  %v1576_v47 = vpop.permute.xlu0 %1575 }
 0x3d4   : > { %v1581_v54 = vadd.f32 %v1576_v47, %v1568_v23 }
 0x3d5   : > { %2176 = vrot.lane.b32.xlu1 %v7170_v33, %s7103_s26  ;;  %2139 = vrot.lane.b32.xlu0 %v6146_v42, %s7103_s26  ;;  %v6453_v59 = vadd.f32 %v1582_v49, %v1460_v16  ;;  %v2244_v42 = vmul.f32 %v5958_v9, %v2242_v2  ;;  %v1718_v2 = vstv %s3994_s11 }
 0x3d6   : > { %v1790_v25 = vpop.permute.xlu1 %1789  ;;  %v6455_v12 = vadd.f32 %v1581_v54, %v1459_v30  ;;  %v1720_v43 = vmul.f32 %v5958_v9, %v1718_v2  ;;  %v1719_v41 = vmul.f32 %v1718_v2, %v5962_v5  ;;  %v7180_v30 = vrot.slane %v6152_v60, 1 }
 0x3d7   : > { %v1794_v50 = vadd.f32 %v1790_v25, %v6380_v36  ;;  %v1788_v10 = vpop.permute.xlu0 %1787  ;;  %v7172_v36 = vld [vmem:[#allocation26_spill] sm:$0xff] }
 0x3d8   : > { %v1793_v21 = vadd.f32 %v1788_v10, %v6384_v44  ;;  %v7173_v44 = vld [vmem:[#allocation18_spill] sm:$0xff] }
 0x3d9   : > { %2189 = vrot.lane.b32.xlu1 %v7171_v38, %s7104_s27  ;;  %2152 = vrot.lane.b32.xlu0 %v6159_v19, %s7104_s27  ;;  %v7174_v3 = vrot.slane %v7173_v44, 2  ;;  %v7181_v38 = vld [vmem:[#allocation28_spill] sm:$0xff] }
 0x3da   : > { %v1803_v52 = vpop.permute.xlu1 %1802 }
 0x3db   : > { %v1807_v35 = vadd.f32 %v1803_v52, %v1794_v50  ;;  %v1801_v28 = vpop.permute.xlu0 %1800  ;;  %v7182_v52 = vrot.slane %v7181_v38, 2 }
 0x3dc   : > { %v1806_v29 = vadd.f32 %v1801_v28, %v1793_v21  ;;  %v7186_v28 = vld [vmem:[#allocation23_spill] sm:$0xff] }
 0x3dd   : > { %2369 = vrot.lane.b32.xlu1 %v2244_v42, %s7103_s26  ;;  %2174 = vrot.lane.b32.xlu0 %v7172_v36, %s7103_s26  ;;  %v1816_v6 = vadd.f32 %v7174_v3, %v1807_v35  ;;  %v7187_v3 = vld [vmem:[#allocation29_spill] sm:$0xff] }
 0x3de   : > { %v1825_v24 = vpop.permute.xlu1 %1824  ;;  %v1815_v13 = vadd.f32 %v7175_v34, %v1806_v29  ;;  %v7189_v34 = vld [vmem:[#allocation32_spill] sm:$0xff] }
 0x3df   : > { %v1829_v19 = vadd.f32 %v1825_v24, %v1816_v6  ;;  %v1823_v63 = vpop.permute.xlu0 %1822  ;;  %v7188_v6 = vrot.slane %v7187_v3, 2  ;;  %v1978_v24 = vstv %s4013_s12 }
 0x3e0   : > { %v1828_v31 = vadd.f32 %v1823_v63, %v1815_v13  ;;  %v1980_v63 = vmul.f32 %v5958_v9, %v1978_v24  ;;  %v1979_v2 = vmul.f32 %v1978_v24, %v5962_v5 }
 0x3e1   : > { %2379 = vrot.lane.b32.xlu1 %v2248_v7, %s7104_s27  ;;  %2187 = vrot.lane.b32.xlu0 %v7176_v40, %s7104_s27 }
 0x3e2   : > { %v1838_v61 = vpop.permute.xlu1 %1837 }
 0x3e3   : > { %v1842_v51 = vadd.f32 %v1838_v61, %v1829_v19  ;;  %v1836_v22 = vpop.permute.xlu0 %1835 }
 0x3e4   : > { %v1841_v23 = vadd.f32 %v1836_v22, %v1828_v31 }
 0x3e5   : > { %2401 = vrot.lane.b32.xlu1 %v7178_v18, %s7103_s26  ;;  %2399 = vrot.lane.b32.xlu0 %v7179_v0, %s7103_s26  ;;  %v1844_v26 = vadd.f32 %v1842_v51, %v1720_v43 }
 0x3e6   : > { %v2050_v49 = vpop.permute.xlu1 %2049  ;;  %v1843_v47 = vadd.f32 %v1841_v23, %v1719_v41 }
 0x3e7   : > { %v2054_v16 = vadd.f32 %v2050_v49, %v6399_v27  ;;  %v2048_v54 = vpop.permute.xlu0 %2047  ;;  %v7183_v27 = vld [vmem:[#allocation31_spill] sm:$0xff]  ;;  %v7190_v49 = vld [vmem:[#allocation22_spill] sm:$0xff] }
 0x3e8   : > { %v2053_v33 = vadd.f32 %v2048_v54, %v6403_v48  ;;  %v7184_v48 = vld [vmem:[#allocation20_spill] sm:$0xff] }
 0x3e9   : > { %2414 = vrot.lane.b32.xlu1 %v7180_v30, %s7104_s27  ;;  %2412 = vrot.lane.b32.xlu0 %v6200_v56, %s7104_s27  ;;  %v7185_v42 = vrot.slane %v7184_v48, 2  ;;  %v7192_v30 = vld [vmem:[#allocation24_spill] sm:$0xff] }
 0x3eb   : > { %v2063_v25 = vpop.permute.xlu1 %2062  ;;  %v2061_v10 = vpop.permute.xlu0 %2060 }
 0x3ec   : > { %v2067_v50 = vadd.f32 %v2063_v25, %v2054_v16  ;;  %v2066_v21 = vadd.f32 %v2061_v10, %v2053_v33  ;;  %v7191_v16 = vrot.slane %v7190_v49, 2 }
 0x3ed   : > { %2436 = vrot.lane.b32.xlu1 %v7182_v52, %s7103_s26  ;;  %2434 = vrot.lane.b32.xlu0 %v7183_v27, %s7103_s26  ;;  %v7193_v27 = vrot.slane %v6219_v1, 1 }
 0x3ee   : > { %v2076_v35 = vadd.f32 %v7185_v42, %v2067_v50  ;;  %v2075_v29 = vadd.f32 %v7186_v28, %v2066_v21 }
 0x3ef   : > { %v2085_v60 = vpop.permute.xlu1 %2084  ;;  %v2083_v44 = vpop.permute.xlu0 %2082 }
 0x3f0   : > { %v2089_v36 = vadd.f32 %v2085_v60, %v2076_v35  ;;  %v2088_v56 = vadd.f32 %v2083_v44, %v2075_v29 }
 0x3f1   : > { %2449 = vrot.lane.b32.xlu1 %v7188_v6, %s7104_s27  ;;  %2447 = vrot.lane.b32.xlu0 %v7189_v34, %s7104_s27  ;;  %s1675_s27 = sld [smem:[#allocation7]] }
 0x3f3   : > { %v2098_v13 = vpop.permute.xlu1 %2097  ;;  %v2096_v19 = vpop.permute.xlu0 %2095 }
 0x3f4   : > { %v2102_v7 = vadd.f32 %v2098_v13, %v2089_v36  ;;  %v2101_v31 = vadd.f32 %v2096_v19, %v2088_v56 }
 0x3f6   : > { %v2104_v40 = vadd.f32 %v2102_v7, %v1980_v63  ;;  %v2103_v51 = vadd.f32 %v2101_v31, %v1979_v2 }
 0x3f7   : > { %v2310_v61 = vpop.permute.xlu1 %2309  ;;  %v2308_v43 = vpop.permute.xlu0 %2307 }
 0x3f8   : > { %v2314_v22 = vadd.f32 %v2310_v61, %v6421_v55  ;;  %v2313_v23 = vadd.f32 %v2308_v43, %v6424_v15 }
 0x3fb   : > { %v2323_v57 = vpop.permute.xlu1 %2322  ;;  %v2321_v41 = vpop.permute.xlu0 %2320 }
 0x3fc   : > { %v2327_v18 = vadd.f32 %v2323_v57, %v2314_v22  ;;  %v2326_v0 = vadd.f32 %v2321_v41, %v2313_v23 }
 0x3fe   : > { %v6508_v54 = vadd.f32 %v7191_v16, %v2327_v18  ;;  %v6511_v25 = vadd.f32 %v7192_v30, %v2326_v0  ;;  %v1676_v16 = vstv %s1675_s27 }
 0x3ff   : > { %v1590_v33 = vpop.permute.xlu1 %1589  ;;  %v1588_v50 = vpop.permute.xlu0 %1587 }
 0x400   : > { %v1594_v10 = vadd.f32 %v1590_v33, %v6453_v59  ;;  %v1593_v55 = vadd.f32 %v1588_v50, %v6455_v12  ;;  %v7194_v59 = vrot.slane %v6230_v11, 1 }
 0x403   : > { %v1600_v21 = vpop.permute.xlu1 %1599  ;;  %v1598_v15 = vpop.permute.xlu0 %1597 }
 0x404   : > { %v1604_v38 = vadd.f32 %v1600_v21, %v1594_v10  ;;  %v1603_v52 = vadd.f32 %v1598_v15, %v1593_v55 }
 0x406   : > { %v1613_v48 = vadd.f32 %v7193_v27, %v1604_v38  ;;  %v1612_v35 = vadd.f32 %v6246_v62, %v1603_v52 }
 0x407   : > { %v1850_v42 = vpop.permute.xlu1 %1849  ;;  %v1848_v60 = vpop.permute.xlu0 %1847 }
 0x408   : > { %v1854_v28 = vadd.f32 %v1850_v42, %v1844_v26  ;;  %v1853_v29 = vadd.f32 %v1848_v60, %v1843_v47  ;;  %v7195_v26 = vrot.slane %v6264_v53, 1 }
 0x40b   : > { %v1860_v36 = vpop.permute.xlu1 %1859  ;;  %v1858_v56 = vpop.permute.xlu0 %1857 }
 0x40c   : > { %v1864_v44 = vadd.f32 %v1860_v36, %v1854_v28  ;;  %v1863_v3 = vadd.f32 %v1858_v56, %v1853_v29  ;;  %v7197_v28 = vrot.slane %v6237_v39, 2 }
 0x40e   : > { %v1873_v12 = vadd.f32 %v7194_v59, %v1864_v44  ;;  %v1872_v24 = vadd.f32 %v6261_v58, %v1863_v3  ;;  %v7198_v44 = vld [vmem:[#allocation33_spill] sm:$0xff] }
 0x40f   : > { %v2110_v6 = vpop.permute.xlu1 %2109  ;;  %v2108_v34 = vpop.permute.xlu0 %2107 }
 0x410   : > { %v2114_v13 = vadd.f32 %v2110_v6, %v2104_v40  ;;  %v2113_v1 = vadd.f32 %v2108_v34, %v2103_v51  ;;  %v7196_v51 = vrot.slane %v6226_v32, 2  ;;  %v1936_v6 = vstv %s4003_s13 }
 0x413   : > { %v2120_v7 = vpop.permute.xlu1 %2119  ;;  %v2118_v63 = vpop.permute.xlu0 %2117 }
 0x414   : > { %v2124_v19 = vadd.f32 %v2120_v7, %v2114_v13  ;;  %v2123_v62 = vadd.f32 %v2118_v63, %v2113_v1  ;;  %v2488_v63 = vld [vmem:[%s7011_s8] sm:$0xff] }
 0x415   : > { %4381 = vmatprep.mubr.msk.f32.mxu1 %vm2492_vm8, %v2488_v63 }
 0x416   : > { %v2133_v47 = vadd.f32 %v7195_v26, %v2124_v19  ;;  %v6524_v2 = vadd.f32 %v6294_v4, %v2123_v62 }
 0x417   : > { %v1622_v31 = vpop.permute.xlu1 %1621  ;;  %v1620_v61 = vpop.permute.xlu0 %1619 }
 0x418   : > { %v1626_v11 = vadd.f32 %v1622_v31, %v1613_v48  ;;  %v1625_v22 = vadd.f32 %v1620_v61, %v1612_v35 }
 0x41b   : > { %v1635_v43 = vpop.permute.xlu1 %1634  ;;  %v1633_v23 = vpop.permute.xlu0 %1632 }
 0x41c   : > { %v1639_v58 = vadd.f32 %v1635_v43, %v1626_v11  ;;  %v1638_v40 = vadd.f32 %v1633_v23, %v1625_v22  ;;  %v2238_v11 = vstv %s6543_s25 }
 0x41e   : > { %v1648_v57 = vadd.f32 %v7196_v51, %v1639_v58  ;;  %v1647_v41 = vadd.f32 %v6256_v45, %v1638_v40 }
 0x41f   : > { %v1657_v18 = vpop.permute.xlu1 %1656  ;;  %v1655_v53 = vpop.permute.xlu0 %1654 }
 0x420   : > { %v1661_v0 = vadd.f32 %v1657_v18, %v1648_v57  ;;  %v1660_v49 = vadd.f32 %v1655_v53, %v1647_v41  ;;  %v2239_v57 = vmul.f32 %v2238_v11, %v5962_v5  ;;  %v7199_v18 = vrot.slane %v6276_v14, 2 }
 0x423   : > { %v1670_v4 = vpop.permute.xlu1 %1669  ;;  %v1668_v30 = vpop.permute.xlu0 %1667 }
 0x424   : > { %v1674_v33 = vadd.f32 %v1670_v4, %v1661_v0  ;;  %v1673_v50 = vadd.f32 %v1668_v30, %v1660_v49  ;;  %v2240_v30 = vmul.f32 %v5958_v9, %v2238_v11  ;;  %v4066_v11 = vld [vmem:[%s7011_s8 + $0x40] sm:$0xff] }
 0x425   : > { %4445 = vmatprep.mubr.msk.f32.mxu0 %vm2492_vm8, %v4066_v11 }
 0x426   : > { %v6529_v10 = vadd.f32 %v1676_v16, %v1674_v33  ;;  %v6531_v55 = vadd.f32 %v1676_v16, %v1673_v50 }
 0x427   : > { %v1882_v21 = vpop.permute.xlu1 %1881  ;;  %v1880_v32 = vpop.permute.xlu0 %1879 }
 0x428   : > { %v1680_v38 = vmax.f32 %v6529_v10, 0.0  ;;  %v1679_v15 = vmax.f32 %v6531_v55, 0.0  ;;  %v1886_v52 = vadd.f32 %v1882_v21, %v1873_v12  ;;  %v1885_v27 = vadd.f32 %v1880_v32, %v1872_v24  ;;  %v2489_v10 = vld [vmem:[%s7011_s8 + $0x8] sm:$0xff]  ;;  %v2490_v55 = vld [vmem:[%s7011_s8 + $0x10] sm:$0xff] }
 0x42a   : > { %v4834_v45 = vpack.i.bf16 %v1680_v38, %v1679_v15 }
 0x42b   : > { %v1895_v48 = vpop.permute.xlu1 %1894  ;;  %v1893_v35 = vpop.permute.xlu0 %1892 }
 0x42c   : > { %v1899_v42 = vadd.f32 %v1895_v48, %v1886_v52  ;;  %v1898_v60 = vadd.f32 %v1893_v35, %v1885_v27  ;;  %4835 = vrot.lane.b32.xlu0 %v4834_v45, %s7103_s26 }
 0x42e   : > { %v1908_v29 = vadd.f32 %v7197_v28, %v1899_v42  ;;  %v1907_v56 = vadd.f32 %v7198_v44, %v1898_v60 }
 0x42f   : > { %v1917_v36 = vpop.permute.xlu1 %1916  ;;  %v1915_v3 = vpop.permute.xlu0 %1914 }
 0x430   : > { %v1921_v59 = vadd.f32 %v1917_v36, %v1908_v29  ;;  %v1920_v12 = vadd.f32 %v1915_v3, %v1907_v56  ;;  %v2196_v29 = vstv %s4022_s14 }
 0x433   : > { %v1930_v24 = vpop.permute.xlu1 %1929  ;;  %v1928_v13 = vpop.permute.xlu0 %1927 }
 0x434   : > { %v1934_v34 = vadd.f32 %v1930_v24, %v1921_v59  ;;  %v1933_v1 = vadd.f32 %v1928_v13, %v1920_v12 }
 0x436   : > { %v6545_v7 = vadd.f32 %v1936_v6, %v1934_v34  ;;  %v6547_v19 = vadd.f32 %v1936_v6, %v1933_v1 }
 0x437   : > { %v2142_v39 = vpop.permute.xlu1 %2141  ;;  %v2343_v26 = vpop.permute.xlu0 %2342 }
 0x438   : > { %v1940_v62 = vmax.f32 %v6545_v7, 0.0  ;;  %v1939_v31 = vmax.f32 %v6547_v19, 0.0  ;;  %v2146_v61 = vadd.f32 %v2142_v39, %v2133_v47  ;;  %v2348_v43 = vadd.f32 %v2343_v26, %v6511_v25  ;;  %v2462_v7 = vld [vmem:[%s7204_s1 + $0x8] sm:$0xff] }
 0x43a   : > { %v4839_v22 = vpack.i.bf16 %v1940_v62, %v1939_v31 }
 0x43b   : > { %v2155_v58 = vpop.permute.xlu1 %2154  ;;  %v2356_v40 = vpop.permute.xlu0 %2355 }
 0x43c   : > { %v2159_v23 = vadd.f32 %v2155_v58, %v2146_v61  ;;  %v2361_v51 = vadd.f32 %v2356_v40, %v2348_v43  ;;  %4840 = vrot.lane.b32.xlu1 %v4839_v22, %s7103_s26  ;;  %v7201_v43 = vrot.slane %v6286_v8, 2 }
 0x43e   : > { %v2168_v41 = vadd.f32 %v7199_v18, %v2159_v23  ;;  %v2363_v53 = vadd.f32 %v2361_v51, %v2239_v57 }
 0x43f   : > { %v2345_v47 = vpop.permute.xlu1 %2344  ;;  %v2368_v0 = vpop.permute.xlu0 %2367 }
 0x440   : > { %v2349_v49 = vadd.f32 %v2345_v47, %v6508_v54  ;;  %v2373_v16 = vadd.f32 %v2368_v0, %v2363_v53 }
 0x443   : > { %v2358_v4 = vpop.permute.xlu1 %2357  ;;  %v2378_v25 = vpop.permute.xlu0 %2377 }
 0x444   : > { %v2362_v33 = vadd.f32 %v2358_v4, %v2349_v49  ;;  %v2383_v50 = vadd.f32 %v2378_v25, %v2373_v16 }
 0x446   : > { %v2364_v21 = vadd.f32 %v2362_v33, %v2240_v30  ;;  %v2392_v52 = vadd.f32 %v6308_v20, %v2383_v50 }
 0x447   : > { %v2177_v32 = vpop.permute.xlu1 %2176  ;;  %v2140_v5 = vpop.permute.xlu0 %2139 }
 0x448   : > { %v2145_v14 = vadd.f32 %v2140_v5, %v6524_v2  ;;  %v2181_v42 = vadd.f32 %v2177_v32, %v2168_v41  ;;  %v7200_v2 = vrot.slane %v6281_v46, 1  ;;  %v2456_v41 = vstv %s4041_s28 }
 0x44b   : > { %v2190_v45 = vpop.permute.xlu1 %2189  ;;  %v2153_v27 = vpop.permute.xlu0 %2152 }
 0x44c   : > { %v2158_v48 = vadd.f32 %v2153_v27, %v2145_v14  ;;  %v2194_v28 = vadd.f32 %v2190_v45, %v2181_v42 }
 0x44e   : > { %v2167_v35 = vadd.f32 %v6302_v17, %v2158_v48  ;;  %v6570_v20 = vadd.f32 %v2196_v29, %v2194_v28  ;;  %v3370_v48 = vld [vmem:[%s7205_s10 + $0x28] sm:$0xff] }
 0x44f   : > { %v2370_v54 = vpop.permute.xlu1 %2369  ;;  %v2175_v60 = vpop.permute.xlu0 %2174 }
 0x450   : > { %v2374_v9 = vadd.f32 %v2370_v54, %v2364_v21  ;;  %v2180_v36 = vadd.f32 %v2175_v60, %v2167_v35  ;;  %v2200_v17 = vmax.f32 %v6570_v20, 0.0  ;;  %v2491_v35 = vld [vmem:[%s7011_s8 + $0x18] sm:$0xf]  ;;  %v4047_v60 = vld [vmem:[%s7011_s8 + $0x20] sm:$0xff]  ;;  %v4067_v20 = vld [vmem:[%s7011_s8 + $0x48] sm:$0xff] }
 0x453   : > { %v2380_v44 = vpop.permute.xlu1 %2379  ;;  %v2188_v3 = vpop.permute.xlu0 %2187 }
 0x454   : > { %v2384_v56 = vadd.f32 %v2380_v44, %v2374_v9  ;;  %v2193_v59 = vadd.f32 %v2188_v3, %v2180_v36  ;;  %v2461_v3 = vld [vmem:[%s7204_s1] sm:$0xff] }
 0x456   : > { %v2393_v12 = vadd.f32 %v7200_v2, %v2384_v56  ;;  %v6574_v6 = vadd.f32 %v2196_v29, %v2193_v59  ;;  %v2463_v59 = vld [vmem:[%s7204_s1 + $0x10] sm:$0xff]  ;;  %v2464_v2 = vld [vmem:[%s7204_s1 + $0x18] sm:$0xff] }
 0x457   : > { %v2402_v24 = vpop.permute.xlu1 %2401  ;;  %v2400_v34 = vpop.permute.xlu0 %2399 }
 0x458   : > { %v2199_v13 = vmax.f32 %v6574_v6, 0.0  ;;  %v2406_v1 = vadd.f32 %v2402_v24, %v2393_v12  ;;  %v2405_v63 = vadd.f32 %v2400_v34, %v2392_v52  ;;  %v4048_v12 = vld [vmem:[%s7011_s8 + $0x28] sm:$0xff]  ;;  %v4049_v24 = vld [vmem:[%s7011_s8 + $0x30] sm:$0xff]  ;;  %v6662_v34 = vpack.c.bf16 %v2464_v2, %v2463_v59 }
 0x459   : > { %v4068_v6 = vld [vmem:[%s7011_s8 + $0x50] sm:$0xff] }
 0x45a   : > { %v4844_v39 = vpack.i.bf16 %v2200_v17, %v2199_v13 }
 0x45b   : > { %v2415_v26 = vpop.permute.xlu1 %2414  ;;  %v2413_v46 = vpop.permute.xlu0 %2412 }
 0x45c   : > { %v2419_v61 = vadd.f32 %v2415_v26, %v2406_v1  ;;  %v2418_v22 = vadd.f32 %v2413_v46, %v2405_v63  ;;  %4845 = vrot.lane.b32.xlu0 %v4844_v39, %s7103_s26  ;;  %v2465_v1 = vld [vmem:[%s7204_s1 + $0x20] sm:$0xff]  ;;  %v2466_v39 = vld [vmem:[%s7204_s1 + $0x28] sm:$0xff]  ;;  %v4050_v63 = vld [vmem:[%s7011_s8 + $0x38] sm:$0xf] }
 0x45d   : > { %v6677_v26 = vpack.c.bf16 %v2466_v39, %v2465_v1 }
 0x45e   : > { %v2428_v58 = vadd.f32 %v7201_v43, %v2419_v61  ;;  %v2427_v40 = vadd.f32 %v6314_v37, %v2418_v22 }
 0x45f   : > { %v2437_v23 = vpop.permute.xlu1 %2436  ;;  %v2435_v51 = vpop.permute.xlu0 %2434 }
 0x460   : > { %v2441_v57 = vadd.f32 %v2437_v23, %v2428_v58  ;;  %v2440_v18 = vadd.f32 %v2435_v51, %v2427_v40 }
 0x463   : > { %v2450_v47 = vpop.permute.xlu1 %2449  ;;  %v2448_v0 = vpop.permute.xlu0 %2447 }
 0x464   : > { %v2454_v53 = vadd.f32 %v2450_v47, %v2441_v57  ;;  %v2453_v49 = vadd.f32 %v2448_v0, %v2440_v18  ;;  %v4069_v47 = vld [vmem:[%s7011_s8 + $0x58] sm:$0xf] }
 0x466   : > { %v6590_v16 = vadd.f32 %v2456_v41, %v2454_v53  ;;  %v6592_v4 = vadd.f32 %v2456_v41, %v2453_v49  ;;  %v4080_v53 = vld [vmem:[%s7011_s8 + $0x60] sm:$0xff] }
 0x468   : > { %v2460_v33 = vmax.f32 %v6590_v16, 0.0  ;;  %v2459_v8 = vmax.f32 %v6592_v4, 0.0  ;;  %v4081_v16 = vld [vmem:[%s7011_s8 + $0x68] sm:$0xff]  ;;  %v4082_v4 = vld [vmem:[%s7011_s8 + $0x70] sm:$0xff] }
 0x46a   : > { %v4849_v37 = vpack.i.bf16 %v2460_v33, %v2459_v8 }
 0x46c   : > { %4850 = vrot.lane.b32.xlu1 %v4849_v37, %s7103_s26 }
 0x49e   : > { %v4836_v25 = vpop.permute.xlu0 %4835 }
 0x49f   : > { %v4838_v30 = vunpack.i.h.bf16 %v4836_v25  ;;  %v4837_v50 = vunpack.i.l.bf16 %v4836_v25 }
 0x4a1   : > { %v2478_v21 = vmax.f32 %v1680_v38, %v4838_v30  ;;  %v2477_v32 = vmax.f32 %v1679_v15, %v4837_v50 }
 0x4a3   : > { %v2482_v52 = vrot.slane %v2478_v21, 1  ;;  %v2481_v5 = vrot.slane %v2477_v32, 1 }
 0x4a5   : > { %v2487_v14 = vmax.f32 %v2478_v21, %v2482_v52  ;;  %v2483_v45 = vsel %vm591_vm0, %v2481_v5, %v2482_v52  ;;  %v2468_v52 = vld [vmem:[%s7204_s1 + $0x38] sm:$0x1f] }
 0x4a6   : > { %v2486_v27 = vmax.f32 %v2477_v32, %v2483_v45  ;;  %v3369_v45 = vld [vmem:[%s7205_s10 + $0x20] sm:$0xff] }
 0x4a8   : > { %v4607_v42 = vpack.c.bf16 %v2487_v14, %v2486_v27  ;;  %v3366_v14 = vld [vmem:[%s7205_s10 + $0x8] sm:$0xff]  ;;  %v3365_v27 = vld [vmem:[%s7205_s10] sm:$0xff] }
 0x4aa   : > { %4609 = vmatprep.subr.msk.bf16.mxu1 %vm6608_vm9, %v4607_v42 }
 0x4ab   : > { %4612 = vmatpush3.bf16.msk.msra.mxu1 %vm6608_vm9, %v4607_v42  ;;  %v4703_v42 = vpack.c.bf16 %v3369_v45, %v3366_v14  ;;  %v3623_v14 = vld [vmem:[%s7208_s5 + $0xc8] sm:$0xff] }
 0x4ae   : > { %v4841_v38 = vpop.permute.xlu1 %4840  ;;  %4382 = vmatmul.mubr.msk.f32.vlgmr.msra.gmra.mrb[2].mxu1 %vm2492_vm8, %v2489_v10  ;;  %v3368_v10 = vld [vmem:[%s7205_s10 + $0x18] sm:$0xff] }
 0x4af   : > { %v4843_v15 = vunpack.i.h.bf16 %v4841_v38  ;;  %v4842_v54 = vunpack.i.l.bf16 %v4841_v38  ;;  %4384 = vmatprep.mubr.msk.f32.mxu1 %vm2492_vm8, %v2490_v55  ;;  %v3372_v55 = vld [vmem:[%s7205_s10 + $0x38] sm:$0xff]  ;;  %v3375_v38 = vld [vmem:[%s7205_s10 + $0x50] sm:$0xf] }
 0x4b1   : > { %v2602_v28 = vmax.f32 %v1940_v62, %v4843_v15  ;;  %v2601_v29 = vmax.f32 %v1939_v31, %v4842_v54  ;;  %v6643_v31 = vpack.c.bf16 %v2462_v7, %v2461_v3  ;;  %v4705_v15 = vpack.c.bf16 %v3368_v10, %v3365_v27  ;;  %v3607_v10 = vld [vmem:[%s7208_s5 + $0x48] sm:$0xff] }
 0x4b2   : > { %4385 = vmatmul.mubr.msk.f32.gmra.mrb[4].mxu1 %vm2492_vm8, %v2491_v35  ;;  %v4707_v54 = vpack.c.bf16 %v3375_v38, %v3372_v55  ;;  %v3624_v55 = vld [vmem:[%s7208_s5 + $0xd0] sm:$0xff]  ;;  %v3625_v38 = vld [vmem:[%s7208_s5 + $0xd8] sm:$0xff] }
 0x4b3   : > { %v2606_v9 = vrot.slane %v2602_v28, 1  ;;  %v2605_v36 = vrot.slane %v2601_v29, 1  ;;  %4391 = vmatprep.mubr.msk.f32.mxu1 %vm2492_vm8, %v4047_v60  ;;  %v3371_v60 = vld [vmem:[%s7205_s10 + $0x30] sm:$0xff] }
 0x4b4   : > { %v3608_v35 = vld [vmem:[%s7208_s5 + $0x50] sm:$0xff] }
 0x4b5   : > { %v2611_v44 = vmax.f32 %v2602_v28, %v2606_v9  ;;  %v2607_v56 = vsel %vm591_vm0, %v2605_v36, %v2606_v9  ;;  %v3374_v28 = vld [vmem:[%s7205_s10 + $0x48] sm:$0xf] }
 0x4b6   : > { %v2610_v62 = vmax.f32 %v2601_v29, %v2607_v56  ;;  %v4710_v29 = vpack.c.bf16 %v3374_v28, %v3371_v60  ;;  %v3609_v60 = vld [vmem:[%s7208_s5 + $0x58] sm:$0xff]  ;;  %v3626_v28 = vld [vmem:[%s7208_s5 + $0xe0] sm:$0xff] }
 0x4b8   : > { %v4613_v19 = vpack.c.bf16 %v2611_v44, %v2610_v62 }
 0x4ba   : > { %4615 = vmatprep.subr.msk.bf16.mxu1 %vm6608_vm9, %v4613_v19 }
 0x4bb   : > { %4618 = vmatpush3.bf16.msk.msra.mxu1 %vm6608_vm9, %v4613_v19 }
 0x4bc   : > { %4620 = vmatprep.subr.bf16.mxu1 %v6643_v31 }
 0x4be   : > { %4392 = vmatmul.mubr.msk.f32.vlgmr.msra.gmra.mrb[6].mxu1 %vm2492_vm8, %v4048_v12 }
 0x4bf   : > { %4394 = vmatprep.mubr.msk.f32.mxu1 %vm2492_vm8, %v4049_v24  ;;  %4622 = vmatpush3.bf16.msra.mxu1 %v6643_v31 }
 0x4c0   : > { %4624 = vmatprep.subr.bf16.mxu1 %v6662_v34 }
 0x4c2   : > { %4395 = vmatmul.mubr.msk.f32.gmra.mrb[8].mxu1 %vm2492_vm8, %v4050_v63  ;;  %v4941_v63 = vmov 0.0  }
 0x4c3   : > { %4626 = vmatpush3.bf16.msra.mxu1 %v6662_v34 }
 0x4c4   : > { %4628 = vmatprep.subr.bf16.mxu1 %v6677_v26 }
 0x4c7   : > { %4630 = vmatpush3.bf16.msra.mxu1 %v6677_v26 }
 0x4ce   : > { %v4846_v61 = vpop.permute.xlu0 %4845 }
 0x4cf   : > { %v4848_v46 = vunpack.i.h.bf16 %v4846_v61  ;;  %v4847_v11 = vunpack.i.l.bf16 %v4846_v61 }
 0x4d1   : > { %v2924_v22 = vmax.f32 %v2200_v17, %v4848_v46  ;;  %v2923_v43 = vmax.f32 %v2199_v13, %v4847_v11  ;;  %v3373_v46 = vld [vmem:[%s7205_s10 + $0x40] sm:$0xff]  ;;  %v3376_v11 = vld [vmem:[%s7205_s10 + $0x58] sm:$0xf] }
 0x4d3   : > { %v2928_v58 = vrot.slane %v2924_v22, 1  ;;  %v2927_v23 = vrot.slane %v2923_v43, 1 }
 0x4d5   : > { %v2933_v40 = vmax.f32 %v2924_v22, %v2928_v58  ;;  %v2929_v51 = vsel %vm591_vm0, %v2927_v23, %v2928_v58  ;;  %v3614_v23 = vld [vmem:[%s7208_s5 + $0x80] sm:$0xff] }
 0x4d6   : > { %v2932_v57 = vmax.f32 %v2923_v43, %v2929_v51  ;;  %v4717_v43 = vpack.c.bf16 %v3376_v11, %v3373_v46  ;;  %v3578_v11 = vld [vmem:[%s7209_s30 + $0x20] sm:$0xff] }
 0x4d8   : > { %v4655_v18 = vpack.c.bf16 %v2933_v40, %v2932_v57  ;;  %v3615_v40 = vld [vmem:[%s7208_s5 + $0x88] sm:$0xff] }
 0x4d9   : > { %v4723_v57 = vpack.c.bf16 %v3615_v40, %v3614_v23 }
 0x4da   : > { %4657 = vmatprep.subr.msk.bf16.mxu0 %vm6608_vm9, %v4655_v18 }
 0x4db   : > { %4660 = vmatpush3.bf16.msk.msra.mxu0 %vm6608_vm9, %v4655_v18 }
 0x4de   : > { %v4851_v17 = vpop.permute.xlu1 %4850  ;;  %4446 = vmatmul.mubr.msk.f32.vlgmr.msra.gmra.mrb[6].mxu0 %vm2492_vm8, %v4067_v20  ;;  %v3598_v20 = vld [vmem:[%s7208_s5] sm:$0xff] }
 0x4df   : > { %v4853_v13 = vunpack.i.h.bf16 %v4851_v17  ;;  %v4852_v41 = vunpack.i.l.bf16 %v4851_v17  ;;  %4448 = vmatprep.mubr.msk.f32.mxu0 %vm2492_vm8, %v4068_v6  ;;  %v3599_v6 = vld [vmem:[%s7208_s5 + $0x8] sm:$0xff]  ;;  %v3616_v17 = vld [vmem:[%s7208_s5 + $0x90] sm:$0xff] }
 0x4e1   : > { %v3149_v0 = vmax.f32 %v2460_v33, %v4853_v13  ;;  %v3148_v49 = vmax.f32 %v2459_v8, %v4852_v41  ;;  %v4083_v33 = vld [vmem:[%s7011_s8 + $0x78] sm:$0xf]  ;;  %v2467_v8 = vld [vmem:[%s7204_s1 + $0x30] sm:$0xff]  ;;  %v4725_v41 = vpack.c.bf16 %v3599_v6, %v3598_v20 }
 0x4e2   : > { %4449 = vmatmul.mubr.msk.f32.gmra.mrb[8].mxu0 %vm2492_vm8, %v4069_v47  ;;  %v6735_v5 = vpack.c.bf16 %v2468_v52, %v2467_v8  ;;  %v3617_v13 = vld [vmem:[%s7208_s5 + $0x98] sm:$0xff]  ;;  %v3604_v8 = vld [vmem:[%s7208_s5 + $0x30] sm:$0xff] }
 0x4e3   : > { %v3153_v37 = vrot.slane %v3149_v0, 1  ;;  %v3152_v25 = vrot.slane %v3148_v49, 1  ;;  %4477 = vmatprep.mubr.msk.f32.mxu0 %vm2492_vm8, %v4080_v53  ;;  %v4727_v47 = vpack.c.bf16 %v3617_v13, %v3616_v17  ;;  %v3600_v53 = vld [vmem:[%s7208_s5 + $0x10] sm:$0xff]  ;;  %v3605_v52 = vld [vmem:[%s7208_s5 + $0x38] sm:$0xff] }
 0x4e4   : > { %4633 = vmatprep.subr.msk.bf16.mxu1 %vm6608_vm9, %v6735_v5  ;;  %v4737_v45 = vpack.c.bf16 %v3605_v52, %v3604_v8  ;;  %v3584_v13 = vld [vmem:[%s7209_s30 + $0x50] sm:$0xf] }
 0x4e5   : > { %v3158_v30 = vmax.f32 %v3149_v0, %v3153_v37  ;;  %v3154_v50 = vsel %vm591_vm0, %v3152_v25, %v3153_v37  ;;  %4636 = vmatpush3.bf16.msk.msra.mxu1 %vm6608_vm9, %v6735_v5  ;;  %v3601_v0 = vld [vmem:[%s7208_s5 + $0x18] sm:$0xff]  ;;  %v3619_v37 = vld [vmem:[%s7208_s5 + $0xa8] sm:$0xff]  ;;  %vm3822_vm0 = vcmask 322560  }
 0x4e6   : > { %v3157_v21 = vmax.f32 %v3148_v49, %v3154_v50  ;;  %4638 = vmatprep.subr.bf16.mxu1 %v6643_v31  ;;  %v3618_v49 = vld [vmem:[%s7208_s5 + $0xa0] sm:$0xff]  ;;  %v4729_v25 = vpack.c.bf16 %v3601_v0, %v3600_v53 }
 0x4e7   : > { %v3602_v50 = vld [vmem:[%s7208_s5 + $0x20] sm:$0xff] }
 0x4e8   : > { %v4679_v32 = vpack.c.bf16 %v3158_v30, %v3157_v21  ;;  %v4731_v30 = vpack.c.bf16 %v3619_v37, %v3618_v49  ;;  %v3603_v21 = vld [vmem:[%s7208_s5 + $0x28] sm:$0xff]  ;;  %v3576_v37 = vld [vmem:[%s7209_s30 + $0x10] sm:$0xff] }
 0x4ea   : > { %4681 = vmatprep.subr.msk.bf16.mxu0 %vm6608_vm9, %v4679_v32 }
 0x4eb   : > { %4684 = vmatpush3.bf16.msk.msra.mxu0 %vm6608_vm9, %v4679_v32  ;;  %v3620_v32 = vld [vmem:[%s7208_s5 + $0xb0] sm:$0xff] }
 0x4ec   : > { %4704 = vmatprep.subr.bf16.mxu0 %v4703_v42  ;;  %v3606_v42 = vld [vmem:[%s7208_s5 + $0x40] sm:$0xff] }
 0x4ee   : > { %4478 = vmatmul.mubr.msk.f32.vlgmr.msra.gmra.mrb[10].mxu0 %vm2492_vm8, %v4081_v16  ;;  %v3621_v16 = vld [vmem:[%s7208_s5 + $0xb8] sm:$0xff] }
 0x4ef   : > { %4480 = vmatprep.mubr.msk.f32.mxu0 %vm2492_vm8, %v4082_v4  ;;  %4706 = vmatpush1.bf16.msra.mxu0 %v4705_v15  ;;  %v4733_v4 = vpack.c.bf16 %v3603_v21, %v3602_v50  ;;  %v4741_v15 = vpack.c.bf16 %v3607_v10, %v3606_v42 }
 0x4f0   : > { %4709 = vmatprep.subr.msk.bf16.mxu0 %vm6763_vm11, %v4707_v54  ;;  %v4743_v54 = vpack.c.bf16 %v3625_v38, %v3624_v55 }
 0x4f2   : > { %4481 = vmatmul.mubr.msk.f32.gmra.mrb[12].mxu0 %vm2492_vm8, %v4083_v33  ;;  %v4735_v33 = vpack.c.bf16 %v3621_v16, %v3620_v32  ;;  %v3582_v16 = vld [vmem:[%s7209_s30 + $0x40] sm:$0xff] }
 0x4f3   : > { %4712 = vmatpush1.bf16.msk.msra.mxu0 %vm6763_vm11, %v4710_v29  ;;  %3464 = vmatprep.mubr.f32.mxu0 %v4941_v63  ;;  %v3627_v29 = vld [vmem:[%s7208_s5 + $0xe8] sm:$0xff] }
 0x581   : > { %v4383_v9 = vpop.f32.mrb[2].mxu1 }
 0x582   : > { %v2574_v36 = vpop.f32.mrb[3].mxu1 }
 0x585   : > { %v4386_v44 = vpop.f32.mrb[4].mxu1 }
 0x586   : > { %v2584_v56 = vpop.f32.mrb[5].mxu1 }
 0x591   : > { %v4393_v3 = vpop.f32.mrb[6].mxu1 }
 0x592   : > { %v2698_v7 = vpop.f32.mrb[7].mxu1 }
 0x593   : > { %4413 = vmatprep.mubr.msk.f32.mxu1 %vm2717_vm12, %v2698_v7  ;;  %v3628_v7 = vld [vmem:[%s7208_s5 + $0xf0] sm:$0xff] }
 0x594   : > { %4414 = vmatmul.mubr.msk.f32.vlgmr.msra.gmra.mrb[10].mxu1 %vm2717_vm12, %v4393_v3 }
 0x595   : > { %4640 = vmatpush3.bf16.msra.mxu1 %v6643_v31  ;;  %v4396_v62 = vpop.f32.mrb[8].mxu1 }
 0x596   : > { %v2708_v19 = vpop.f32.mrb[9].mxu1  ;;  %4642 = vmatprep.subr.bf16.mxu1 %v6662_v34 }
 0x597   : > { %4416 = vmatprep.mubr.msk.f32.mxu1 %vm2717_vm12, %v2708_v19  ;;  %v3612_v19 = vld [vmem:[%s7208_s5 + $0x70] sm:$0xff] }
 0x598   : > { %4417 = vmatmul.mubr.msk.f32.gmra.mrb[12].mxu1 %vm2717_vm12, %v4396_v62  ;;  %v3629_v62 = vld [vmem:[%s7208_s5 + $0xf8] sm:$0xff] }
 0x599   : > { %4644 = vmatpush3.bf16.msra.mxu1 %v6662_v34  ;;  %4435 = vmatprep.mubr.msk.f32.mxu1 %vm2717_vm12, %v2574_v36  ;;  %v4747_v36 = vpack.c.bf16 %v3627_v29, %v3626_v28 }
 0x59a   : > { %4646 = vmatprep.subr.bf16.mxu1 %v6677_v26 }
 0x59d   : > { %4648 = vmatpush3.bf16.msra.mxu1 %v6677_v26 }
 0x59e   : > { %4651 = vmatprep.subr.msk.bf16.mxu1 %vm6608_vm9, %v6735_v5 }
 0x5a1   : > { %4654 = vmatpush3.bf16.msk.msra.mxu1 %vm6608_vm9, %v6735_v5 }
 0x5a2   : > { %4662 = vmatprep.subr.bf16.mxu1 %v6643_v31 }
 0x5a4   : > { %4436 = vmatmul.mubr.msk.f32.vlgmr.msra.gmra.mrb[10].mxu1 %vm2717_vm12, %v4383_v9  ;;  %v4745_v9 = vpack.c.bf16 %v3609_v60, %v3608_v35 }
 0x5a5   : > { %4438 = vmatprep.mubr.msk.f32.mxu1 %vm2717_vm12, %v2584_v56  ;;  %4664 = vmatpush3.bf16.msra.mxu1 %v6643_v31  ;;  %v3611_v56 = vld [vmem:[%s7208_s5 + $0x68] sm:$0xff] }
 0x5a6   : > { %4666 = vmatprep.subr.bf16.mxu1 %v6662_v34 }
 0x5a8   : > { %4439 = vmatmul.mubr.msk.f32.gmra.mrb[12].mxu1 %vm2717_vm12, %v4386_v44  ;;  %v3610_v44 = vld [vmem:[%s7208_s5 + $0x60] sm:$0xff] }
 0x5a9   : > { %4668 = vmatpush3.bf16.msra.mxu1 %v6662_v34  ;;  %v4749_v3 = vpack.c.bf16 %v3611_v56, %v3610_v44 }
 0x5aa   : > { %4670 = vmatprep.subr.bf16.mxu1 %v6677_v26 }
 0x5ad   : > { %4672 = vmatpush3.bf16.msra.mxu1 %v6677_v26 }
 0x5ae   : > { %4675 = vmatprep.subr.msk.bf16.mxu1 %vm6608_vm9, %v6735_v5 }
 0x5b1   : > { %4678 = vmatpush3.bf16.msk.msra.mxu1 %vm6608_vm9, %v6735_v5  ;;  %v4447_v59 = vpop.f32.mrb[6].mxu0 }
 0x5b2   : > { %v3020_v2 = vpop.f32.mrb[7].mxu0  ;;  %4686 = vmatprep.subr.bf16.mxu1 %v6643_v31 }
 0x5b3   : > { %4467 = vmatprep.mubr.msk.f32.mxu1 %vm2717_vm12, %v3020_v2  ;;  %v3613_v2 = vld [vmem:[%s7208_s5 + $0x78] sm:$0xff] }
 0x5b4   : > { %4468 = vmatmul.mubr.msk.f32.vlgmr.msra.gmra.mrb[10].mxu1 %vm2717_vm12, %v4447_v59  ;;  %v4751_v59 = vpack.c.bf16 %v3629_v62, %v3628_v7 }
 0x5b5   : > { %4688 = vmatpush3.bf16.msra.mxu1 %v6643_v31  ;;  %v4450_v12 = vpop.f32.mrb[8].mxu0 }
 0x5b6   : > { %4690 = vmatprep.subr.bf16.mxu1 %v6662_v34  ;;  %v3030_v24 = vpop.f32.mrb[9].mxu0 }
 0x5b7   : > { %4470 = vmatprep.mubr.msk.f32.mxu1 %vm2717_vm12, %v3030_v24  ;;  %v3630_v24 = vld [vmem:[%s7208_s5 + $0x100] sm:$0xff] }
 0x5b8   : > { %4471 = vmatmul.mubr.msk.f32.gmra.mrb[12].mxu1 %vm2717_vm12, %v4450_v12  ;;  %v4753_v12 = vpack.c.bf16 %v3613_v2, %v3612_v19 }
 0x5b9   : > { %4692 = vmatpush3.bf16.msra.mxu1 %v6662_v34 }
 0x5ba   : > { %4694 = vmatprep.subr.bf16.mxu1 %v6677_v26 }
 0x5bd   : > { %4696 = vmatpush3.bf16.msra.mxu1 %v6677_v26  ;;  %v3367_v26 = vld [vmem:[%s7205_s10 + $0x10] sm:$0xff] }
 0x5be   : > { %4699 = vmatprep.subr.msk.bf16.mxu1 %vm6608_vm9, %v6735_v5  ;;  %v4713_v61 = vpack.c.bf16 %v3370_v48, %v3367_v26  ;;  %v3574_v26 = vld [vmem:[%s7209_s30] sm:$0xff] }
 0x5c0   : > { %4714 = vmatprep.subr.bf16.mxu0 %v4713_v61 }
 0x5c1   : > { %v4479_v1 = vpop.f32.mrb[10].mxu0  ;;  %4702 = vmatpush3.bf16.msk.msra.mxu1 %vm6608_vm9, %v6735_v5  ;;  %v3622_v5 = vld [vmem:[%s7208_s5 + $0xc0] sm:$0xff] }
 0x5c2   : > { %v3245_v31 = vpop.f32.mrb[11].mxu0  ;;  %v4739_v27 = vpack.c.bf16 %v3623_v14, %v3622_v5 }
 0x5c3   : > { %4499 = vmatprep.mubr.msk.f32.mxu1 %vm2717_vm12, %v3245_v31 }
 0x5c4   : > { %4500 = vmatmul.mubr.msk.f32.vlgmr.msra.gmra.mrb[10].mxu1 %vm2717_vm12, %v4479_v1  ;;  %v3631_v1 = vld [vmem:[%s7208_s5 + $0x108] sm:$0xff] }
 0x5c5   : > { %v4482_v39 = vpop.f32.mrb[12].mxu0  ;;  %v4755_v31 = vpack.c.bf16 %v3631_v1, %v3630_v24 }
 0x5c6   : > { %v3255_v34 = vpop.f32.mrb[13].mxu0 }
 0x5c7   : > { %4502 = vmatprep.mubr.msk.f32.mxu1 %vm2717_vm12, %v3255_v34  ;;  %4756 = vmatprep.subr.bf16.mxu1 %v4755_v31  ;;  %v3575_v34 = vld [vmem:[%s7209_s30 + $0x8] sm:$0xff] }
 0x5c8   : > { %4503 = vmatmul.mubr.msk.f32.gmra.mrb[12].mxu1 %vm2717_vm12, %v4482_v39  ;;  %v3632_v39 = vld [vmem:[%s7208_s5 + $0x110] sm:$0xff] }
 0x5c9   : > { %4758 = vmatpush3.bf16.msra.mxu1 %v4755_v31 }
 0x5ca   : > { %4523 = vmatprep.subr.mxu1 %v3632_v39 }
 0x5cd   : > { %4524 = vmatpush3.msra.mxu1 %v3632_v39 }
 0x697   : > { %v4501_v22 = vpop.f32.mrb[10].mxu1 }
 0x698   : > { %v3342_v58 = vpop.f32.mrb[11].mxu1 }
 0x699   : > { %4096 = vmatmul.mubr.msk.f32.vlgmr.msra.gmra.mrb[14].mxu0 %vm3377_vm13, %v3342_v58 }
 0x69a   : > { %3470 = vmatprep.mubr.f32.mxu0 %v4941_v63  ;;  %4716 = vmatpush3.bf16.msra.mxu0 %v4713_v61 }
 0x69b   : > { %v4504_v51 = vpop.f32.mrb[12].mxu1  ;;  %4719 = vmatprep.subr.msk.bf16.mxu0 %vm6763_vm11, %v4717_v43 }
 0x69c   : > { %v3352_v18 = vpop.f32.mrb[13].mxu1 }
 0x69d   : > { %4097 = vmatmul.mubr.msk.f32.gmra.mrb[16].mxu0 %vm3377_vm13, %v4501_v22 }
 0x69e   : > { %3476 = vmatprep.mubr.f32.mxu0 %v4941_v63  ;;  %4722 = vmatpush3.bf16.msk.msra.mxu0 %vm6763_vm11, %v4717_v43  ;;  %v3577_v43 = vld [vmem:[%s7209_s30 + $0x18] sm:$0xff] }
 0x69f   : > { %4724 = vmatprep.subr.bf16.mxu0 %v4723_v57 }
 0x6a1   : > { %4098 = vmatmul.mubr.msk.f32.gmra.mrb[18].mxu0 %vm3377_vm13, %v3352_v18 }
 0x6a2   : > { %3482 = vmatprep.mubr.f32.mxu0 %v4941_v63 }
 0x6a5   : > { %4099 = vmatmul.mubr.msk.f32.gmra.mrb[20].mxu0 %vm3377_vm13, %v4504_v51 }
 0x6a6   : > { %4513 = vmatprep.mubr.msk.f32.mxu0 %vm3377_vm13, %v3342_v58 }
 0x6a9   : > { %4514 = vmatmul.mubr.msk.f32.vlgmr.msra.gmra.mrb[22].mxu0 %vm3377_vm13, %v4501_v22 }
 0x6aa   : > { %4516 = vmatprep.mubr.msk.f32.mxu0 %vm3377_vm13, %v3352_v18  ;;  %4726 = vmatpush3.bf16.msra.mxu0 %v4725_v41  ;;  %v3580_v18 = vld [vmem:[%s7209_s30 + $0x30] sm:$0xff] }
 0x6ab   : > { %4728 = vmatprep.subr.bf16.mxu0 %v4727_v47  ;;  %v3583_v47 = vld [vmem:[%s7209_s30 + $0x48] sm:$0xf] }
 0x6ad   : > { %4517 = vmatmul.mubr.msk.f32.gmra.mrb[24].mxu0 %vm3377_vm13, %v4504_v51  ;;  %v3581_v51 = vld [vmem:[%s7209_s30 + $0x38] sm:$0xff] }
 0x6ae   : > { %4730 = vmatpush3.bf16.msra.mxu0 %v4729_v25 }
 0x6af   : > { %4732 = vmatprep.subr.bf16.mxu0 %v4731_v30  ;;  %v3579_v30 = vld [vmem:[%s7209_s30 + $0x28] sm:$0xff] }
 0x6b2   : > { %4734 = vmatpush3.bf16.msra.mxu0 %v4733_v4 }
 0x6b3   : > { %4736 = vmatprep.subr.bf16.mxu0 %v4735_v33  ;;  %v3585_v33 = vld [vmem:[%s7209_s30 + $0x58] sm:$0xf] }
 0x6b6   : > { %4738 = vmatpush3.bf16.msra.mxu0 %v4737_v45 }
 0x6b7   : > { %4740 = vmatprep.subr.bf16.mxu0 %v4739_v27 }
 0x6ba   : > { %4742 = vmatpush3.bf16.msra.mxu0 %v4741_v15 }
 0x6bb   : > { %4744 = vmatprep.subr.bf16.mxu0 %v4743_v54 }
 0x6be   : > { %4746 = vmatpush3.bf16.msra.mxu0 %v4745_v9 }
 0x6bf   : > { %4748 = vmatprep.subr.bf16.mxu0 %v4747_v36 }
 0x6c2   : > { %4750 = vmatpush3.bf16.msra.mxu0 %v4749_v3 }
 0x6c3   : > { %4752 = vmatprep.subr.bf16.mxu0 %v4751_v59 }
 0x6c6   : > { %4754 = vmatpush3.bf16.msra.mxu0 %v4753_v12 }
 0x76c   : > { %v3466_v63 = vpop.f32.mrb[14].mxu0 }
 0x76d   : > { %v3468_v48 = vpop.f32.mrb[15].mxu0  ;;  %v3586_v46 = vmul.f32 %v3574_v26, %v3466_v63 }
 0x76e   : > { %v3587_v61 = vmul.f32 %v3575_v34, %v3468_v48 }
 0x770   : > { %v3472_v22 = vpop.f32.mrb[16].mxu0  ;;  %3710 = vmatprep.mubr.f32.mxu0 %v3587_v61  ;;  %v3831_v61 = vld [vmem:[%s7211_s17] sm:$0x1] }
 0x771   : > { %v3474_v58 = vpop.f32.mrb[17].mxu0  ;;  %3711 = vmatmul.mubr.f32.vlgmr.msra.gmra.mrb[26].mxu0 %v3586_v46  ;;  %v3589_v40 = vmul.f32 %v3577_v43, %v3472_v22 }
 0x772   : > { %v3590_v23 = vmul.f32 %v3578_v11, %v3474_v58 }
 0x774   : > { %v3478_v57 = vpop.f32.mrb[18].mxu0  ;;  %3715 = vmatprep.mubr.f32.mxu0 %v3590_v23 }
 0x775   : > { %v3480_v20 = vpop.f32.mrb[19].mxu0  ;;  %3716 = vmatmul.mubr.f32.gmra.mrb[28].mxu0 %v3589_v40  ;;  %v3592_v17 = vmul.f32 %v3580_v18, %v3478_v57 }
 0x776   : > { %v3593_v6 = vmul.f32 %v3581_v51, %v3480_v20 }
 0x778   : > { %v3484_v41 = vpop.f32.mrb[20].mxu0  ;;  %3720 = vmatprep.mubr.f32.mxu0 %v3593_v6 }
 0x779   : > { %v3486_v53 = vpop.f32.mrb[21].mxu0  ;;  %3721 = vmatmul.mubr.f32.gmra.mrb[30].mxu0 %v3592_v17  ;;  %v3595_v49 = vmul.f32 %v3583_v47, %v3484_v41 }
 0x77a   : > { %v3596_v0 = vmul.f32 %v3584_v13, %v3486_v53 }
 0x77c   : > { %v4515_v25 = vpop.f32.mrb[22].mxu0  ;;  %3725 = vmatprep.mubr.f32.mxu0 %v3596_v0 }
 0x77d   : > { %v3555_v50 = vpop.f32.mrb[23].mxu0  ;;  %3726 = vmatmul.mubr.f32.gmra.mrb[32].mxu0 %v3595_v49  ;;  %v3591_v32 = vmul.f32 %v4515_v25, %v3579_v30 }
 0x77e   : > { %v3588_v21 = vmul.f32 %v3576_v37, %v3555_v50 }
 0x780   : > { %v4518_v4 = vpop.f32.mrb[24].mxu0  ;;  %4525 = vmatprep.mubr.msk.f32.mxu1 %vm3633_vm14, %v3588_v21 }
 0x781   : > { %v3565_v8 = vpop.f32.mrb[25].mxu0  ;;  %4526 = vmatmul.mubr.msk.f32.vlgmr.msra.gmra.mrb[14].mxu1 %vm3633_vm14, %v3591_v32  ;;  %v3597_v5 = vmul.f32 %v4518_v4, %v3585_v33 }
 0x782   : > { %v3594_v52 = vmul.f32 %v3582_v16, %v3565_v8 }
 0x784   : > { %4528 = vmatprep.mubr.msk.f32.mxu1 %vm3633_vm14, %v3594_v52 }
 0x785   : > { %4529 = vmatmul.mubr.msk.f32.gmra.mrb[16].mxu1 %vm3633_vm14, %v3597_v5 }
 0x844   : > { %v4270_v14 = vpop.f32.mrb[26].mxu0 }
 0x845   : > { %v4271_v45 = vpop.f32.mrb[27].mxu0 }
 0x846   : > { %v4272_v27 = vadd.f32 %v4271_v45, %v4270_v14 }
 0x848   : > { %v4273_v42 = vpop.f32.mrb[28].mxu0 }
 0x849   : > { %v4274_v10 = vpop.f32.mrb[29].mxu0 }
 0x84a   : > { %v4275_v55 = vadd.f32 %v4274_v10, %v4273_v42 }
 0x84c   : > { %v4276_v38 = vpop.f32.mrb[30].mxu0 }
 0x84d   : > { %v4277_v15 = vpop.f32.mrb[31].mxu0 }
 0x84e   : > { %v4278_v54 = vadd.f32 %v4277_v15, %v4276_v38 }
 0x850   : > { %v4279_v35 = vpop.f32.mrb[32].mxu0 }
 0x851   : > { %v4280_v60 = vpop.f32.mrb[33].mxu0 }
 0x852   : > { %v4281_v28 = vadd.f32 %v4280_v60, %v4279_v35 }
 0x854   : > { %v4527_v29 = vpop.f32.mrb[14].mxu1 }
 0x855   : > { %v3803_v9 = vadd.f32 %v4527_v29, %v4275_v55  ;;  %v3797_v36 = vpop.f32.mrb[15].mxu1 }
 0x856   : > { %v3798_v44 = vadd.f32 %v4272_v27, %v3797_v36 }
 0x857   : > { %v3818_v56 = vsel %vm3816_vm15, %v3803_v9, 0.0 }
 0x858   : > { %v3817_v3 = vsel %vm3816_vm15, %v3798_v44, 0.0  ;;  %v4530_v7 = vpop.f32.mrb[16].mxu1 }
 0x859   : > { %v3819_v62 = vadd.f32 %v3818_v56, %v3817_v3  ;;  %v3813_v19 = vadd.f32 %v4530_v7, %v4281_v28  ;;  %v3807_v59 = vpop.f32.mrb[17].mxu1 }
 0x85a   : > { %v3808_v2 = vadd.f32 %v4278_v54, %v3807_v59 }
 0x85b   : > { %v3823_v1 = vsel %vm3822_vm0, %v3813_v19, 0.0 }
 0x85c   : > { %v3820_v12 = vsel %vm3816_vm15, %v3808_v2, 0.0 }
 0x85d   : > { %v3821_v24 = vadd.f32 %v3820_v12, %v3819_v62 }
 0x85f   : > { %v3824_v31 = vadd.f32 %v3823_v1, %v3821_v24 }
 0x861   : > { %v3825_v39 = vrot.slane %v3824_v31, 4 }
 0x863   : > { %v3826_v34 = vadd.f32 %v3825_v39, %v3824_v31 }
 0x865   : > { %v3827_v63 = vrot.slane %v3826_v34, 2 }
 0x867   : > { %v3828_v26 = vadd.f32 %v3827_v63, %v3826_v34 }
 0x869   : > { %v3829_v48 = vrot.slane %v3828_v26, 1 }
 0x86b   : > { %v3830_v46 = vadd.f32 %v3829_v48, %v3828_v26 }
 0x86d   : > { %v3832_v11 = vadd.f32 %v3831_v61, %v3830_v46 }
 0x86f   : > { %3834 = vst.msk [vmem:[%s488_s21] sm:$0x1] %vm3833_vm1, %v3832_v11 }
 0x870 PF: > { %s7213_s22 = sld [smem:[#allocation12_spill]] }
 0x876   : > { %s26_s25 = sadd.s32 1, %s7213_s22  }
 0x877   : > { %p23_p2 = scmp.ge.s32.totalorder %s26_s25, 4  }
 0x879   :  { %25 = sbr.rel (!%p23_p2) target bundleno = 17 (0x11), region = 122 }
 0x880   :  { %3852 = vsyncpa [#allocation3], 1 }
 0x881   :  { %3854 = vsyncpa [#allocation3 + $0x1], 1 }
 0x882   :  { %3855 = vsyncpa [#allocation5], 1 }
 0x883   :  { %3856 = vsyncpa [#allocation8], 1 }

</bundles_post_ra>
